<compile_context>
chip_gen: v7x
topology: tpu7x:2x2x1
jax: 0.10.0
libtpu: 0.0.40
codegen_flags: <defaults>
</compile_context>

<pallas_src>
import jax
import jax.numpy as jnp
from jax.experimental import pallas as pl
from jax.experimental.pallas import tpu as pltpu


def _round_up(v, m):
    return (v + m - 1) // m * m


# ----------------------------- Pallas kernel --------------------------------
def _gemm_bias_relu_kernel(p_ref, w_ref, b_ref, o_ref):
    # MXU GEMM (bf16 in, f32 accumulate) + bias add + ReLU epilogue in f32.
    acc = jnp.dot(p_ref[...], w_ref[...], preferred_element_type=jnp.float32)
    o_ref[...] = jnp.maximum(acc + b_ref[...], 0.0)


def _gemm_bias_relu(patches, w_mat, bias2d, *, tm):
    """out[M, C] = relu(patches[M, K] @ w_mat[K, C] + bias2d[1, C]); M tiled by tm."""
    m, k = patches.shape
    _, c = w_mat.shape
    cost = pl.CostEstimate(
        flops=2 * m * k * c,
        transcendentals=0,
        bytes_accessed=m * k * 2 + k * c * 2 + c * 4 + m * c * 4,
    )
    return pl.pallas_call(
        _gemm_bias_relu_kernel,
        out_shape=jax.ShapeDtypeStruct((m, c), jnp.float32),
        grid=(m // tm,),
        in_specs=[
            pl.BlockSpec((tm, k), lambda i: (i, 0)),
            pl.BlockSpec((k, c), lambda i: (0, 0)),
            pl.BlockSpec((1, c), lambda i: (0, 0)),
        ],
        out_specs=pl.BlockSpec((tm, c), lambda i: (i, 0)),
        compiler_params=pltpu.CompilerParams(
            dimension_semantics=("parallel",)),
        cost_estimate=cost,
    )(patches, w_mat, bias2d)


# ------------------------------ conv wrapper ---------------------------------
def _im2col_nhwc(x_nhwc, kh, kw, stride, pad):
    x = jnp.pad(x_nhwc, ((0, 0), (pad, pad), (pad, pad), (0, 0)))
    n, hp, wp, c = x.shape
    ho = (hp - kh) // stride + 1
    wo = (wp - kw) // stride + 1
    cols = []
    for i in range(kh):
        for j in range(kw):
            cols.append(
                x[:, i:i + stride * (ho - 1) + 1:stride,
                     j:j + stride * (wo - 1) + 1:stride, :]
            )
    patches = jnp.stack(cols, axis=3)                    # (N, Ho, Wo, KH*KW, C)
    patches = patches.reshape(n, ho, wo, kh * kw * c)    # cols ordered (kh, kw, c)
    return patches, ho, wo


def _conv_relu_nhwc(x_nhwc, w_mat, bias2d, c_out, *, stride, pad, ksize=4):
    """Conv2d(kernel=ksize, stride, padding=pad, bias) + ReLU on an NHWC tensor.
    w_mat: (ksize*ksize*C_in, C_pad) bf16 (columns beyond c_out are zero-padding
    for lane density); bias2d: (1, C_pad) f32. Returns (N, Ho, Wo, c_out) f32."""
    n = x_nhwc.shape[0]
    patches, ho, wo = _im2col_nhwc(x_nhwc, ksize, ksize, stride, pad)
    m = n * ho * wo
    k = patches.shape[-1]
    p2d = patches.reshape(m, k).astype(jnp.bfloat16)     # bf16 into the MXU

    tm = 256 if m > 256 else _round_up(m, 8)             # 128-256 row tiles
    m_pad = _round_up(m, tm)
    if m_pad != m:
        p2d = jnp.pad(p2d, ((0, m_pad - m), (0, 0)))     # zero rows, sliced below

    out = _gemm_bias_relu(p2d, w_mat, bias2d, tm=tm)
    out = out[:m, :c_out]
    return out.reshape(n, ho, wo, c_out)


# ---------------------------- weight preparation -----------------------------
def _to_gemm_weight(w_oihw, pad_to=None):
    """PyTorch OIHW -> (KH*KW*C_in, C_out) bf16, matching im2col column order.
    Optionally zero-pad C_out up to `pad_to` for a lane-dense (>=128) output."""
    c_out, c_in, kh, kw = w_oihw.shape
    w = jnp.transpose(w_oihw, (2, 3, 1, 0)).reshape(kh * kw * c_in, c_out)
    if pad_to is not None and pad_to > c_out:
        w = jnp.pad(w, ((0, 0), (0, pad_to - c_out)))
    return w.astype(jnp.bfloat16)


def _to_gemm_bias(b, pad_to=None):
    b = b.astype(jnp.float32)
    if pad_to is not None and pad_to > b.shape[0]:
        b = jnp.pad(b, (0, pad_to - b.shape[0]))
    return b.reshape(1, -1)


# --------------------------------- forward -----------------------------------
def init_params(key):
    """Deterministic PyTorch-default-style init for all 6 conv layers."""
    def conv_param(k, cin, cout, ksz):
        kw_, kb_ = jax.random.split(k)
        fan_in = cin * ksz * ksz
        bound = 1.0 / (fan_in ** 0.5)
        w = jax.random.uniform(kw_, (cout, cin, ksz, ksz), jnp.float32, -bound, bound)
        b = jax.random.uniform(kb_, (cout,), jnp.float32, -bound, bound)
        return w, b

    keys = jax.random.split(key, 6)
    return {
        "backbone_0": conv_param(keys[0], 3, 64, 4),      # 3  -> 64,  s2
        "rung_0_0":   conv_param(keys[1], 64, 64, 4),     # 64 -> 64,  s2
        "rung_0_1":   conv_param(keys[2], 64, 64, 4),     # 64 -> 64,  s1
        "backbone_1": conv_param(keys[3], 64, 128, 4),    # 64 -> 128, s2
        "rung_1_0":   conv_param(keys[4], 128, 128, 4),   # 128 -> 128, s2
        "rung_1_1":   conv_param(keys[5], 128, 256, 4),   # 128 -> 256, s2
    }


def conv_vlae_encoder_celeba_forward(params, x):
    """x: (N, 3, 32, 32) float32 NCHW (in_dim = 3072).
    Returns [rung0 (N, 3136), rung1 (N, 1024)] matching the PyTorch module."""
    n = x.shape[0]
    x_nhwc = jnp.transpose(x, (0, 2, 3, 1))               # single NHWC conversion

    w_b0, b_b0 = params["backbone_0"]
    w_r00, b_r00 = params["rung_0_0"]
    w_r01, b_r01 = params["rung_0_1"]
    w_b1, b_b1 = params["backbone_1"]
    w_r10, b_r10 = params["rung_1_0"]
    w_r11, b_r11 = params["rung_1_1"]

    # GEMM-ready bf16 weights / f32 biases.
    wm_b0 = _to_gemm_weight(w_b0, pad_to=128)             # (48, 128)
    bb_b0 = _to_gemm_bias(b_b0, pad_to=128)
    # fused stage: backbone_1 (128 ch) ++ rung_0_0 (64 ch) -> 192 lane-dense cols
    wm_s2 = jnp.concatenate(
        [_to_gemm_weight(w_b1), _to_gemm_weight(w_r00)], axis=1)   # (1024, 192)
    bb_s2 = jnp.concatenate([b_b1, b_r00]).astype(jnp.float32).reshape(1, -1)
    wm_r01 = _to_gemm_weight(w_r01, pad_to=128)            # (1024, 128)
    bb_r01 = _to_gemm_bias(b_r01, pad_to=128)
    wm_r10 = _to_gemm_weight(w_r10)                        # (2048, 128)
    bb_r10 = _to_gemm_bias(b_r10)
    wm_r11 = _to_gemm_weight(w_r11)                        # (2048, 256)
    bb_r11 = _to_gemm_bias(b_r11)

    rung_list = []

    # backbone_0: 3 -> 64, s2 : 32 -> 16
    a0 = _conv_relu_nhwc(x_nhwc, wm_b0, bb_b0, 64, stride=2, pad=1)   # (N,16,16,64)

    # do_progressive_training is never set in __init__; treated as False => b_aux = b.
    # Fused GEMM: backbone_1 (64->128, s2) and rung_0_0 (64->64, s2) share patches.
    a1 = _conv_relu_nhwc(a0, wm_s2, bb_s2, 192, stride=2, pad=1)      # (N,8,8,192)
    b1 = a1[..., :128]                                                # backbone_1
    r00 = a1[..., 128:192]                                            # rung_0_0

    # rung_0_1: 64 -> 64, s1 : 8 -> 7
    r01 = _conv_relu_nhwc(r00, wm_r01, bb_r01, 64, stride=1, pad=1)   # (N,7,7,64)
    # PyTorch .view(N, -1) on an NCHW tensor is channel-major:
    rung_list.append(jnp.transpose(r01, (0, 3, 1, 2)).reshape(n, -1))  # (N, 3136)

    # rung_1_0: 128 -> 128, s2 : 8 -> 4
    r10 = _conv_relu_nhwc(b1, wm_r10, bb_r10, 128, stride=2, pad=1)   # (N,4,4,128)
    # rung_1_1: 128 -> 256, s2 : 4 -> 2
    r11 = _conv_relu_nhwc(r10, wm_r11, bb_r11, 256, stride=2, pad=1)  # (N,2,2,256)
    rung_list.append(jnp.transpose(r11, (0, 3, 1, 2)).reshape(n, -1))  # (N, 1024)

    return rung_list


# ---------------- pure-JAX f32 reference (for correctness check) -------------
def _ref_conv_relu(x, w, b, stride, pad):
    y = jax.lax.conv_general_dilated(
        x, w, (stride, stride), ((pad, pad), (pad, pad)),
        dimension_numbers=("NCHW", "OIHW", "NCHW"))
    return jnp.maximum(y + b[None, :, None, None], 0.0)


def _ref_forward(params, x):
    rungs = []
    b = _ref_conv_relu(x, *params["backbone_0"], 2, 1)
    r = _ref_conv_relu(b, *params["rung_0_0"], 2, 1)
    r = _ref_conv_relu(r, *params["rung_0_1"], 1, 1)
    rungs.append(r.reshape(r.shape[0], -1))
    b = _ref_conv_relu(b, *params["backbone_1"], 2, 1)
    r = _ref_conv_relu(b, *params["rung_1_0"], 2, 1)
    r = _ref_conv_relu(r, *params["rung_1_1"], 2, 1)
    rungs.append(r.reshape(r.shape[0], -1))
    return rungs


if __name__ == "__main__":
    key = jax.random.PRNGKey(0)
    k_params, k_x = jax.random.split(key)
    params = init_params(k_params)

    # CelebA-style input: in_dim = 3072 => 3 x 32 x 32 (spatial size fixed by arch)
    x = jax.random.normal(k_x, (2, 3, 32, 32), dtype=jnp.float32)

    fwd = jax.jit(conv_vlae_encoder_celeba_forward)
    rungs = fwd(params, x)
    rungs = [jax.block_until_ready(r) for r in rungs]

    assert rungs[0].shape == (2, 3136), rungs[0].shape
    assert rungs[1].shape == (2, 1024), rungs[1].shape

    ref = _ref_forward(params, x)
    for got, want in zip(rungs, ref):
        # bf16 MXU inputs vs. an all-f32 reference -> looser tolerance than f32.
        err = float(jnp.max(jnp.abs(got - want)))
        assert jnp.allclose(got, want, atol=3e-2, rtol=3e-2), err

    print("KERNEL_OK")
</pallas_src>

<mosaic_0001>
module attributes {stable_mosaic.version = 11 : i64} {
  func.func @_gemm_bias_relu_kernel(%arg0: i32, %arg1: memref<256x48xbf16, #tpu.memory_space<vmem>>, %arg2: memref<48x128xbf16, #tpu.memory_space<vmem>>, %arg3: memref<1x128xf32, #tpu.memory_space<vmem>>, %arg4: memref<256x128xf32, #tpu.memory_space<vmem>>) attributes {dimension_semantics = [#tpu.dimension_semantics<parallel>], iteration_bounds = array<i64: 2>, scalar_prefetch = 0 : i64, scratch_operands = 0 : i64, tpu.core_type = #tpu.core_type<tc>, window_params = [{transform_indices = @transform_0, window_bounds = array<i64: 256, 48>}, {pipeline_mode = #tpu.pipeline_mode<synchronous>, transform_indices = @transform_1, window_bounds = array<i64: 48, 128>}, {pipeline_mode = #tpu.pipeline_mode<synchronous>, transform_indices = @transform_2, window_bounds = array<i64: 1, 128>}, {transform_indices = @transform_3, window_bounds = array<i64: 256, 128>}]} {
    %c0 = arith.constant 0 : index
    %c0_0 = arith.constant 0 : index
    %0 = vector.load %arg1[%c0, %c0_0] : memref<256x48xbf16, #tpu.memory_space<vmem>>, vector<256x48xbf16>
    %c0_1 = arith.constant 0 : index
    %c0_2 = arith.constant 0 : index
    %1 = vector.load %arg2[%c0_1, %c0_2] : memref<48x128xbf16, #tpu.memory_space<vmem>>, vector<48x128xbf16>
    %cst = arith.constant dense<0.000000e+00> : vector<256x128xf32>
    %2 = tpu.matmul %0, %1, %cst {dimension_numbers = #tpu.dot_dimension_numbers<[1], [0], [0], [1], [0, 0, 1, 1], [], []>} : vector<256x48xbf16>, vector<48x128xbf16>, vector<256x128xf32> -> vector<256x128xf32>
    %c0_3 = arith.constant 0 : index
    %c0_4 = arith.constant 0 : index
    %3 = vector.load %arg3[%c0_3, %c0_4] : memref<1x128xf32, #tpu.memory_space<vmem>>, vector<1x128xf32>
    %4 = vector.broadcast %3 : vector<1x128xf32> to vector<256x128xf32>
    %5 = arith.addf %2, %4 : vector<256x128xf32>
    %cst_5 = arith.constant 0.000000e+00 : f32
    %6 = vector.broadcast %cst_5 : f32 to vector<256x128xf32>
    %7 = arith.maximumf %5, %6 : vector<256x128xf32>
    %c0_6 = arith.constant 0 : index
    %c0_7 = arith.constant 0 : index
    %8 = vector.load %arg4[%c0_6, %c0_7] : memref<256x128xf32, #tpu.memory_space<vmem>>, vector<256x128xf32>
    tpu.vector_store %arg4[%c0_6, %c0_7], %7 {strides = array<i32>} : memref<256x128xf32, #tpu.memory_space<vmem>>, vector<256x128xf32>,
    return
  }
  func.func @transform_0(%arg0: i32) -> (i32, i32) {
    %c0_i32 = arith.constant 0 : i32
    %c0_i32_0 = arith.constant 0 : i32
    return %arg0, %c0_i32 : i32, i32
  }
  func.func @transform_1(%arg0: i32) -> (i32, i32) {
    %c0_i32 = arith.constant 0 : i32
    %c0_i32_0 = arith.constant 0 : i32
    %c0_i32_1 = arith.constant 0 : i32
    return %c0_i32, %c0_i32_0 : i32, i32
  }
  func.func @transform_2(%arg0: i32) -> (i32, i32) {
    %c0_i32 = arith.constant 0 : i32
    %c0_i32_0 = arith.constant 0 : i32
    %c0_i32_1 = arith.constant 0 : i32
    return %c0_i32, %c0_i32_0 : i32, i32
  }
  func.func @transform_3(%arg0: i32) -> (i32, i32) {
    %c0_i32 = arith.constant 0 : i32
    %c0_i32_0 = arith.constant 0 : i32
    return %arg0, %c0_i32 : i32, i32
  }
}

module attributes {stable_mosaic.version = 11 : i64} {
  func.func @_gemm_bias_relu_kernel(%arg0: i32, %arg1: memref<128x1024xbf16, #tpu.memory_space<vmem>>, %arg2: memref<1024x192xbf16, #tpu.memory_space<vmem>>, %arg3: memref<1x192xf32, #tpu.memory_space<vmem>>, %arg4: memref<128x192xf32, #tpu.memory_space<vmem>>) attributes {dimension_semantics = [#tpu.dimension_semantics<parallel>], iteration_bounds = array<i64: 1>, scalar_prefetch = 0 : i64, scratch_operands = 0 : i64, tpu.core_type = #tpu.core_type<tc>, window_params = [{transform_indices = @transform_0, window_bounds = array<i64: 128, 1024>}, {pipeline_mode = #tpu.pipeline_mode<synchronous>, transform_indices = @transform_1, window_bounds = array<i64: 1024, 192>}, {pipeline_mode = #tpu.pipeline_mode<synchronous>, transform_indices = @transform_2, window_bounds = array<i64: 1, 192>}, {transform_indices = @transform_3, window_bounds = array<i64: 128, 192>}]} {
    %c0 = arith.constant 0 : index
    %c0_0 = arith.constant 0 : index
    %0 = vector.load %arg1[%c0, %c0_0] : memref<128x1024xbf16, #tpu.memory_space<vmem>>, vector<128x1024xbf16>
    %c0_1 = arith.constant 0 : index
    %c0_2 = arith.constant 0 : index
    %1 = vector.load %arg2[%c0_1, %c0_2] : memref<1024x192xbf16, #tpu.memory_space<vmem>>, vector<1024x192xbf16>
    %cst = arith.constant dense<0.000000e+00> : vector<128x192xf32>
    %2 = tpu.matmul %0, %1, %cst {dimension_numbers = #tpu.dot_dimension_numbers<[1], [0], [0], [1], [0, 0, 1, 1], [], []>} : vector<128x1024xbf16>, vector<1024x192xbf16>, vector<128x192xf32> -> vector<128x192xf32>
    %c0_3 = arith.constant 0 : index
    %c0_4 = arith.constant 0 : index
    %3 = vector.load %arg3[%c0_3, %c0_4] : memref<1x192xf32, #tpu.memory_space<vmem>>, vector<1x192xf32>
    %4 = vector.broadcast %3 : vector<1x192xf32> to vector<128x192xf32>
    %5 = arith.addf %2, %4 : vector<128x192xf32>
    %cst_5 = arith.constant 0.000000e+00 : f32
    %6 = vector.broadcast %cst_5 : f32 to vector<128x192xf32>
    %7 = arith.maximumf %5, %6 : vector<128x192xf32>
    %c0_6 = arith.constant 0 : index
    %c0_7 = arith.constant 0 : index
    %8 = vector.load %arg4[%c0_6, %c0_7] : memref<128x192xf32, #tpu.memory_space<vmem>>, vector<128x192xf32>
    tpu.vector_store %arg4[%c0_6, %c0_7], %7 {strides = array<i32>} : memref<128x192xf32, #tpu.memory_space<vmem>>, vector<128x192xf32>,
    return
  }
  func.func @transform_0(%arg0: i32) -> (i32, i32) {
    %c0_i32 = arith.constant 0 : i32
    %c0_i32_0 = arith.constant 0 : i32
    return %arg0, %c0_i32 : i32, i32
  }
  func.func @transform_1(%arg0: i32) -> (i32, i32) {
    %c0_i32 = arith.constant 0 : i32
    %c0_i32_0 = arith.constant 0 : i32
    %c0_i32_1 = arith.constant 0 : i32
    return %c0_i32, %c0_i32_0 : i32, i32
  }
  func.func @transform_2(%arg0: i32) -> (i32, i32) {
    %c0_i32 = arith.constant 0 : i32
    %c0_i32_0 = arith.constant 0 : i32
    %c0_i32_1 = arith.constant 0 : i32
    return %c0_i32, %c0_i32_0 : i32, i32
  }
  func.func @transform_3(%arg0: i32) -> (i32, i32) {
    %c0_i32 = arith.constant 0 : i32
    %c0_i32_0 = arith.constant 0 : i32
    return %arg0, %c0_i32 : i32, i32
  }
}

module attributes {stable_mosaic.version = 11 : i64} {
  func.func @_gemm_bias_relu_kernel(%arg0: i32, %arg1: memref<104x1024xbf16, #tpu.memory_space<vmem>>, %arg2: memref<1024x128xbf16, #tpu.memory_space<vmem>>, %arg3: memref<1x128xf32, #tpu.memory_space<vmem>>, %arg4: memref<104x128xf32, #tpu.memory_space<vmem>>) attributes {dimension_semantics = [#tpu.dimension_semantics<parallel>], iteration_bounds = array<i64: 1>, scalar_prefetch = 0 : i64, scratch_operands = 0 : i64, tpu.core_type = #tpu.core_type<tc>, window_params = [{transform_indices = @transform_0, window_bounds = array<i64: 104, 1024>}, {pipeline_mode = #tpu.pipeline_mode<synchronous>, transform_indices = @transform_1, window_bounds = array<i64: 1024, 128>}, {pipeline_mode = #tpu.pipeline_mode<synchronous>, transform_indices = @transform_2, window_bounds = array<i64: 1, 128>}, {transform_indices = @transform_3, window_bounds = array<i64: 104, 128>}]} {
    %c0 = arith.constant 0 : index
    %c0_0 = arith.constant 0 : index
    %0 = vector.load %arg1[%c0, %c0_0] : memref<104x1024xbf16, #tpu.memory_space<vmem>>, vector<104x1024xbf16>
    %c0_1 = arith.constant 0 : index
    %c0_2 = arith.constant 0 : index
    %1 = vector.load %arg2[%c0_1, %c0_2] : memref<1024x128xbf16, #tpu.memory_space<vmem>>, vector<1024x128xbf16>
    %cst = arith.constant dense<0.000000e+00> : vector<104x128xf32>
    %2 = tpu.matmul %0, %1, %cst {dimension_numbers = #tpu.dot_dimension_numbers<[1], [0], [0], [1], [0, 0, 1, 1], [], []>} : vector<104x1024xbf16>, vector<1024x128xbf16>, vector<104x128xf32> -> vector<104x128xf32>
    %c0_3 = arith.constant 0 : index
    %c0_4 = arith.constant 0 : index
    %3 = vector.load %arg3[%c0_3, %c0_4] : memref<1x128xf32, #tpu.memory_space<vmem>>, vector<1x128xf32>
    %4 = vector.broadcast %3 : vector<1x128xf32> to vector<104x128xf32>
    %5 = arith.addf %2, %4 : vector<104x128xf32>
    %cst_5 = arith.constant 0.000000e+00 : f32
    %6 = vector.broadcast %cst_5 : f32 to vector<104x128xf32>
    %7 = arith.maximumf %5, %6 : vector<104x128xf32>
    %c0_6 = arith.constant 0 : index
    %c0_7 = arith.constant 0 : index
    %8 = vector.load %arg4[%c0_6, %c0_7] : memref<104x128xf32, #tpu.memory_space<vmem>>, vector<104x128xf32>
    tpu.vector_store %arg4[%c0_6, %c0_7], %7 {strides = array<i32>} : memref<104x128xf32, #tpu.memory_space<vmem>>, vector<104x128xf32>,
    return
  }
  func.func @transform_0(%arg0: i32) -> (i32, i32) {
    %c0_i32 = arith.constant 0 : i32
    %c0_i32_0 = arith.constant 0 : i32
    return %arg0, %c0_i32 : i32, i32
  }
  func.func @transform_1(%arg0: i32) -> (i32, i32) {
    %c0_i32 = arith.constant 0 : i32
    %c0_i32_0 = arith.constant 0 : i32
    %c0_i32_1 = arith.constant 0 : i32
    return %c0_i32, %c0_i32_0 : i32, i32
  }
  func.func @transform_2(%arg0: i32) -> (i32, i32) {
    %c0_i32 = arith.constant 0 : i32
    %c0_i32_0 = arith.constant 0 : i32
    %c0_i32_1 = arith.constant 0 : i32
    return %c0_i32, %c0_i32_0 : i32, i32
  }
  func.func @transform_3(%arg0: i32) -> (i32, i32) {
    %c0_i32 = arith.constant 0 : i32
    %c0_i32_0 = arith.constant 0 : i32
    return %arg0, %c0_i32 : i32, i32
  }
}

module attributes {stable_mosaic.version = 11 : i64} {
  func.func @_gemm_bias_relu_kernel(%arg0: i32, %arg1: memref<32x2048xbf16, #tpu.memory_space<vmem>>, %arg2: memref<2048x128xbf16, #tpu.memory_space<vmem>>, %arg3: memref<1x128xf32, #tpu.memory_space<vmem>>, %arg4: memref<32x128xf32, #tpu.memory_space<vmem>>) attributes {dimension_semantics = [#tpu.dimension_semantics<parallel>], iteration_bounds = array<i64: 1>, scalar_prefetch = 0 : i64, scratch_operands = 0 : i64, tpu.core_type = #tpu.core_type<tc>, window_params = [{transform_indices = @transform_0, window_bounds = array<i64: 32, 2048>}, {pipeline_mode = #tpu.pipeline_mode<synchronous>, transform_indices = @transform_1, window_bounds = array<i64: 2048, 128>}, {pipeline_mode = #tpu.pipeline_mode<synchronous>, transform_indices = @transform_2, window_bounds = array<i64: 1, 128>}, {transform_indices = @transform_3, window_bounds = array<i64: 32, 128>}]} {
    %c0 = arith.constant 0 : index
    %c0_0 = arith.constant 0 : index
    %0 = vector.load %arg1[%c0, %c0_0] : memref<32x2048xbf16, #tpu.memory_space<vmem>>, vector<32x2048xbf16>
    %c0_1 = arith.constant 0 : index
    %c0_2 = arith.constant 0 : index
    %1 = vector.load %arg2[%c0_1, %c0_2] : memref<2048x128xbf16, #tpu.memory_space<vmem>>, vector<2048x128xbf16>
    %cst = arith.constant dense<0.000000e+00> : vector<32x128xf32>
    %2 = tpu.matmul %0, %1, %cst {dimension_numbers = #tpu.dot_dimension_numbers<[1], [0], [0], [1], [0, 0, 1, 1], [], []>} : vector<32x2048xbf16>, vector<2048x128xbf16>, vector<32x128xf32> -> vector<32x128xf32>
    %c0_3 = arith.constant 0 : index
    %c0_4 = arith.constant 0 : index
    %3 = vector.load %arg3[%c0_3, %c0_4] : memref<1x128xf32, #tpu.memory_space<vmem>>, vector<1x128xf32>
    %4 = vector.broadcast %3 : vector<1x128xf32> to vector<32x128xf32>
    %5 = arith.addf %2, %4 : vector<32x128xf32>
    %cst_5 = arith.constant 0.000000e+00 : f32
    %6 = vector.broadcast %cst_5 : f32 to vector<32x128xf32>
    %7 = arith.maximumf %5, %6 : vector<32x128xf32>
    %c0_6 = arith.constant 0 : index
    %c0_7 = arith.constant 0 : index
    %8 = vector.load %arg4[%c0_6, %c0_7] : memref<32x128xf32, #tpu.memory_space<vmem>>, vector<32x128xf32>
    tpu.vector_store %arg4[%c0_6, %c0_7], %7 {strides = array<i32>} : memref<32x128xf32, #tpu.memory_space<vmem>>, vector<32x128xf32>,
    return
  }
  func.func @transform_0(%arg0: i32) -> (i32, i32) {
    %c0_i32 = arith.constant 0 : i32
    %c0_i32_0 = arith.constant 0 : i32
    return %arg0, %c0_i32 : i32, i32
  }
  func.func @transform_1(%arg0: i32) -> (i32, i32) {
    %c0_i32 = arith.constant 0 : i32
    %c0_i32_0 = arith.constant 0 : i32
    %c0_i32_1 = arith.constant 0 : i32
    return %c0_i32, %c0_i32_0 : i32, i32
  }
  func.func @transform_2(%arg0: i32) -> (i32, i32) {
    %c0_i32 = arith.constant 0 : i32
    %c0_i32_0 = arith.constant 0 : i32
    %c0_i32_1 = arith.constant 0 : i32
    return %c0_i32, %c0_i32_0 : i32, i32
  }
  func.func @transform_3(%arg0: i32) -> (i32, i32) {
    %c0_i32 = arith.constant 0 : i32
    %c0_i32_0 = arith.constant 0 : i32
    return %arg0, %c0_i32 : i32, i32
  }
}

module attributes {stable_mosaic.version = 11 : i64} {
  func.func @_gemm_bias_relu_kernel(%arg0: i32, %arg1: memref<8x2048xbf16, #tpu.memory_space<vmem>>, %arg2: memref<2048x256xbf16, #tpu.memory_space<vmem>>, %arg3: memref<1x256xf32, #tpu.memory_space<vmem>>, %arg4: memref<8x256xf32, #tpu.memory_space<vmem>>) attributes {dimension_semantics = [#tpu.dimension_semantics<parallel>], iteration_bounds = array<i64: 1>, scalar_prefetch = 0 : i64, scratch_operands = 0 : i64, tpu.core_type = #tpu.core_type<tc>, window_params = [{transform_indices = @transform_0, window_bounds = array<i64: 8, 2048>}, {pipeline_mode = #tpu.pipeline_mode<synchronous>, transform_indices = @transform_1, window_bounds = array<i64: 2048, 256>}, {pipeline_mode = #tpu.pipeline_mode<synchronous>, transform_indices = @transform_2, window_bounds = array<i64: 1, 256>}, {transform_indices = @transform_3, window_bounds = array<i64: 8, 256>}]} {
    %c0 = arith.constant 0 : index
    %c0_0 = arith.constant 0 : index
    %0 = vector.load %arg1[%c0, %c0_0] : memref<8x2048xbf16, #tpu.memory_space<vmem>>, vector<8x2048xbf16>
    %c0_1 = arith.constant 0 : index
    %c0_2 = arith.constant 0 : index
    %1 = vector.load %arg2[%c0_1, %c0_2] : memref<2048x256xbf16, #tpu.memory_space<vmem>>, vector<2048x256xbf16>
    %cst = arith.constant dense<0.000000e+00> : vector<8x256xf32>
    %2 = tpu.matmul %0, %1, %cst {dimension_numbers = #tpu.dot_dimension_numbers<[1], [0], [0], [1], [0, 0, 1, 1], [], []>} : vector<8x2048xbf16>, vector<2048x256xbf16>, vector<8x256xf32> -> vector<8x256xf32>
    %c0_3 = arith.constant 0 : index
    %c0_4 = arith.constant 0 : index
    %3 = vector.load %arg3[%c0_3, %c0_4] : memref<1x256xf32, #tpu.memory_space<vmem>>, vector<1x256xf32>
    %4 = vector.broadcast %3 : vector<1x256xf32> to vector<8x256xf32>
    %5 = arith.addf %2, %4 : vector<8x256xf32>
    %cst_5 = arith.constant 0.000000e+00 : f32
    %6 = vector.broadcast %cst_5 : f32 to vector<8x256xf32>
    %7 = arith.maximumf %5, %6 : vector<8x256xf32>
    %c0_6 = arith.constant 0 : index
    %c0_7 = arith.constant 0 : index
    %8 = vector.load %arg4[%c0_6, %c0_7] : memref<8x256xf32, #tpu.memory_space<vmem>>, vector<8x256xf32>
    tpu.vector_store %arg4[%c0_6, %c0_7], %7 {strides = array<i32>} : memref<8x256xf32, #tpu.memory_space<vmem>>, vector<8x256xf32>,
    return
  }
  func.func @transform_0(%arg0: i32) -> (i32, i32) {
    %c0_i32 = arith.constant 0 : i32
    %c0_i32_0 = arith.constant 0 : i32
    return %arg0, %c0_i32 : i32, i32
  }
  func.func @transform_1(%arg0: i32) -> (i32, i32) {
    %c0_i32 = arith.constant 0 : i32
    %c0_i32_0 = arith.constant 0 : i32
    %c0_i32_1 = arith.constant 0 : i32
    return %c0_i32, %c0_i32_0 : i32, i32
  }
  func.func @transform_2(%arg0: i32) -> (i32, i32) {
    %c0_i32 = arith.constant 0 : i32
    %c0_i32_0 = arith.constant 0 : i32
    %c0_i32_1 = arith.constant 0 : i32
    return %c0_i32, %c0_i32_0 : i32, i32
  }
  func.func @transform_3(%arg0: i32) -> (i32, i32) {
    %c0_i32 = arith.constant 0 : i32
    %c0_i32_0 = arith.constant 0 : i32
    return %arg0, %c0_i32 : i32, i32
  }
}

</mosaic_0001>

<bundles_post_ra>
// kernel: conv_vlae_encoder_celeba_forward.5
= control target key start
LH: loop header
LB: loop body
LE: loop exit
PB: predicated region body
PF: predicated region fallthrough
CT: control target
= control target key end

     0   :  { %s813_s12 = smov 0   ;;  %s948_s0 = inlined_call_operand.vmem [shape: bf16[512,48], index: 0, kind: input, shape index: {}]   ;;  %s949_s1 = inlined_call_operand.vmem [shape: bf16[48,128], index: 1, kind: input, shape index: {}]   ;;  %s950_s2 = inlined_call_operand.vmem [shape: f32[1,128], index: 2, kind: input, shape index: {}]   ;;  %s951_s3 = inlined_call_operand.vmem [shape: f32[512,128], index: 3, kind: output, shape index: {}]  }
   0x1 LB: > { %s648_s13 = sadd.s32 4294967295, %s791_s12   ;;  %p652_p0 = scmp.ge.s32.totalorder %s791_s12, 1  ;;  %s791_s12 = sphi %s813_s12, %s13_s12  }
   0x2   : > { %p138_p1 = scmp.lt.s32.totalorder %s791_s12, 3 }
   0x4   : > { %p139_p2 = pnand %p652_p0, %p138_p1 }
   0x5   : > { %v766_v0 = vld [vmem:[%s949_s1] sm:$0xff] (!%p139_p2)   ;;  %s653_s16 = sshll.u32 (!%p139_p2), %s648_s13, 5  ;;  %v767_v1 = vld [vmem:[%s949_s1 + $0x8] sm:$0xff] (!%p139_p2)   ;;  %v768_v2 = vld [vmem:[%s949_s1 + $0x10] sm:$0xff] (!%p139_p2)   ;;  %vm318_vm0 = vcmask (!%p139_p2), 392192  }
   0x6   : > { %142 = sbr.rel (%p139_p2) target bundleno = 263 (0x107), region = 32  ;;  %p163_p3 = scmp.lt.s32.totalorder (!%p139_p2), %s653_s16, 63  ;;  %714 = vmatprep.subr.bf16.mxu0 (!%p139_p2), %v766_v0  ;;  %752 = vmatprep.subr.bf16.mxu1 (!%p139_p2), %v766_v0  ;;  %v873_v19 = vld [vmem:[%s950_s2] ss:$0 sm:$0xff] (!%p139_p2) }
   0x7   : > { %715 = vmatpush3.bf16.msra.mxu0 (!%p139_p2), %v766_v0  ;;  %755 = vmatpush3.bf16.msra.mxu1 (!%p139_p2), %v766_v0 }
   0x8   : > { %716 = vmatprep.subr.bf16.mxu0 (!%p139_p2), %v767_v1  ;;  %753 = vmatprep.subr.bf16.mxu1 (!%p139_p2), %v767_v1 }
   0xb   : > { %717 = vmatpush3.bf16.msra.mxu0 (!%p139_p2), %v767_v1  ;;  %756 = vmatpush3.bf16.msra.mxu1 (!%p139_p2), %v767_v1 }
   0xc   : > { %718 = vmatprep.subr.bf16.mxu0 (!%p139_p2), %v768_v2  ;;  %754 = vmatprep.subr.bf16.mxu1 (!%p139_p2), %v768_v2 }
   0xd   : > { %s953_s16 = smov (!%p163_p3, %s653_s16), 63 }
   0xe   : > { %s654_s21 = sshll.u32 %s953_s16, 2  ;;  %s656_s27 = sshll.u32 %s953_s16, 3 }
   0xf   : > { %s836_s24 = scalar_lea.vmem %s948_s0, %s654_s21  ;;  %719 = vmatpush3.bf16.msra.mxu0 %v768_v2  ;;  %757 = vmatpush3.bf16.msra.mxu1 %v768_v2  ;;  %s881_s30 = scalar_lea.vmem %s951_s3, %s656_s27 }
  0x10   : > { %v769_v3 = vld [vmem:[%s836_s24] sm:$0xff]   ;;  %v771_v5 = vld [vmem:[%s836_s24 + $0x8] sm:$0xff]   ;;  %v773_v7 = vld [vmem:[%s836_s24 + $0x10] sm:$0xff]  }
  0x11   : > { %v770_v4 = vld [vmem:[%s836_s24 + $0x40] sm:$0xff]   ;;  %720 = vmatprep.mubr.msk.bf16.mxu0 %vm318_vm0, %v769_v3  ;;  %v772_v6 = vld [vmem:[%s836_s24 + $0x48] sm:$0xff]   ;;  %v774_v8 = vld [vmem:[%s836_s24 + $0x50] sm:$0xff]  }
  0x12   : > { %736 = vmatprep.mubr.msk.bf16.mxu1 %vm318_vm0, %v770_v4  ;;  %721 = vmatmul.mubr.msk.bf16.vlgmr.msra.gmra.mrb[0].mxu0 %vm318_vm0, %v771_v5  ;;  %v775_v9 = vld [vmem:[%s836_s24 + $0x18] sm:$0xff]   ;;  %v777_v11 = vld [vmem:[%s836_s24 + $0x20] sm:$0xff]   ;;  %v779_v13 = vld [vmem:[%s836_s24 + $0x28] sm:$0xff]  }
  0x13   : > { %737 = vmatmul.mubr.msk.bf16.vlgmr.msra.gmra.mrb[0].mxu1 %vm318_vm0, %v772_v6  ;;  %724 = vmatprep.mubr.msk.bf16.mxu0 %vm318_vm0, %v773_v7  ;;  %v776_v10 = vld [vmem:[%s836_s24 + $0x58] sm:$0xff]   ;;  %v778_v12 = vld [vmem:[%s836_s24 + $0x60] sm:$0xff]   ;;  %v780_v14 = vld [vmem:[%s836_s24 + $0x68] sm:$0xff]  }
  0x14   : > { %740 = vmatprep.mubr.msk.bf16.mxu1 %vm318_vm0, %v774_v8  ;;  %v781_v15 = vld [vmem:[%s836_s24 + $0x30] sm:$0xff]   ;;  %v783_v17 = vld [vmem:[%s836_s24 + $0x38] sm:$0xff]  }
  0x15   : > { %v782_v16 = vld [vmem:[%s836_s24 + $0x70] sm:$0xff]   ;;  %v784_v18 = vld [vmem:[%s836_s24 + $0x78] sm:$0xff]  }
  0x1a   : > { %725 = vmatmul.mubr.msk.bf16.gmra.mrb[4].mxu0 %vm318_vm0, %v775_v9 }
  0x1b   : > { %741 = vmatmul.mubr.msk.bf16.gmra.mrb[4].mxu1 %vm318_vm0, %v776_v10  ;;  %728 = vmatprep.mubr.msk.bf16.mxu0 %vm318_vm0, %v777_v11 }
  0x1c   : > { %744 = vmatprep.mubr.msk.bf16.mxu1 %vm318_vm0, %v778_v12 }
  0x22   : > { %729 = vmatmul.mubr.msk.bf16.gmra.mrb[8].mxu0 %vm318_vm0, %v779_v13 }
  0x23   : > { %745 = vmatmul.mubr.msk.bf16.gmra.mrb[8].mxu1 %vm318_vm0, %v780_v14  ;;  %732 = vmatprep.mubr.msk.bf16.mxu0 %vm318_vm0, %v781_v15 }
  0x24   : > { %748 = vmatprep.mubr.msk.bf16.mxu1 %vm318_vm0, %v782_v16 }
  0x2a   : > { %733 = vmatmul.mubr.msk.bf16.gmra.mrb[12].mxu0 %vm318_vm0, %v783_v17 }
  0x2b   : > { %749 = vmatmul.mubr.msk.bf16.gmra.mrb[12].mxu1 %vm318_vm0, %v784_v18 }
  0xe5   : > { %v722_v20 = vpop.f32.mrb[0].mxu0 }
  0xe6   : > { %v738_v21 = vpop.f32.mrb[0].mxu1  ;;  %v410_v22 = vadd.f32 %v722_v20, %v873_v19  ;;  %v401_v24 = vpop.f32.mrb[1].mxu0 }
  0xe7   : > { %v474_v23 = vadd.f32 %v738_v21, %v873_v19  ;;  %v465_v25 = vpop.f32.mrb[1].mxu1  ;;  %v402_v26 = vadd.f32 %v873_v19, %v401_v24  ;;  %v723_v28 = vpop.f32.mrb[2].mxu0 }
  0xe8   : > { %v466_v27 = vadd.f32 %v873_v19, %v465_v25  ;;  %v739_v29 = vpop.f32.mrb[2].mxu1  ;;  %v530_v30 = vmax.f32 %v410_v22, 0.0  ;;  %v413_v32 = vadd.f32 %v723_v28, %v873_v19  ;;  %v404_v34 = vpop.f32.mrb[3].mxu0 }
  0xe9   : > { %v546_v31 = vmax.f32 %v474_v23, 0.0  ;;  %v477_v33 = vadd.f32 %v739_v29, %v873_v19  ;;  %v468_v35 = vpop.f32.mrb[3].mxu1  ;;  %v528_v36 = vmax.f32 %v402_v26, 0.0  ;;  %v405_v38 = vadd.f32 %v873_v19, %v404_v34 }
  0xea   : > { %v544_v37 = vmax.f32 %v466_v27, 0.0  ;;  %v469_v39 = vadd.f32 %v873_v19, %v468_v35  ;;  %562 = vst [vmem:[%s881_s30 + $0x10] sm:$0xff] %v530_v30  ;;  %v531_v40 = vmax.f32 %v413_v32, 0.0 }
  0xeb   : > { %578 = vst [vmem:[%s881_s30 + $0x90] sm:$0xff] %v546_v31  ;;  %v547_v41 = vmax.f32 %v477_v33, 0.0  ;;  %560 = vst [vmem:[%s881_s30] sm:$0xff] %v528_v36  ;;  %v529_v42 = vmax.f32 %v405_v38, 0.0 }
  0xec   : > { %576 = vst [vmem:[%s881_s30 + $0x80] sm:$0xff] %v544_v37  ;;  %v545_v43 = vmax.f32 %v469_v39, 0.0  ;;  %563 = vst [vmem:[%s881_s30 + $0x18] sm:$0xff] %v531_v40 }
  0xed   : > { %579 = vst [vmem:[%s881_s30 + $0x98] sm:$0xff] %v547_v41  ;;  %561 = vst [vmem:[%s881_s30 + $0x8] sm:$0xff] %v529_v42  ;;  %v726_v44 = vpop.f32.mrb[4].mxu0 }
  0xee   : > { %577 = vst [vmem:[%s881_s30 + $0x88] sm:$0xff] %v545_v43  ;;  %v742_v45 = vpop.f32.mrb[4].mxu1  ;;  %v426_v46 = vadd.f32 %v726_v44, %v873_v19  ;;  %v417_v48 = vpop.f32.mrb[5].mxu0 }
  0xef   : > { %v490_v47 = vadd.f32 %v742_v45, %v873_v19  ;;  %v481_v49 = vpop.f32.mrb[5].mxu1  ;;  %v418_v50 = vadd.f32 %v873_v19, %v417_v48  ;;  %v727_v52 = vpop.f32.mrb[6].mxu0 }
  0xf0   : > { %v482_v51 = vadd.f32 %v873_v19, %v481_v49  ;;  %v743_v53 = vpop.f32.mrb[6].mxu1  ;;  %v534_v54 = vmax.f32 %v426_v46, 0.0  ;;  %v429_v56 = vadd.f32 %v727_v52, %v873_v19  ;;  %v420_v58 = vpop.f32.mrb[7].mxu0 }
  0xf1   : > { %v550_v55 = vmax.f32 %v490_v47, 0.0  ;;  %v493_v57 = vadd.f32 %v743_v53, %v873_v19  ;;  %v484_v59 = vpop.f32.mrb[7].mxu1  ;;  %v532_v60 = vmax.f32 %v418_v50, 0.0  ;;  %v421_v62 = vadd.f32 %v873_v19, %v420_v58 }
  0xf2   : > { %v548_v61 = vmax.f32 %v482_v51, 0.0  ;;  %v485_v63 = vadd.f32 %v873_v19, %v484_v59  ;;  %566 = vst [vmem:[%s881_s30 + $0x30] sm:$0xff] %v534_v54  ;;  %v535_v0 = vmax.f32 %v429_v56, 0.0 }
  0xf3   : > { %582 = vst [vmem:[%s881_s30 + $0xb0] sm:$0xff] %v550_v55  ;;  %v551_v1 = vmax.f32 %v493_v57, 0.0  ;;  %564 = vst [vmem:[%s881_s30 + $0x20] sm:$0xff] %v532_v60  ;;  %v533_v2 = vmax.f32 %v421_v62, 0.0 }
  0xf4   : > { %580 = vst [vmem:[%s881_s30 + $0xa0] sm:$0xff] %v548_v61  ;;  %v549_v3 = vmax.f32 %v485_v63, 0.0  ;;  %567 = vst [vmem:[%s881_s30 + $0x38] sm:$0xff] %v535_v0 }
  0xf5   : > { %583 = vst [vmem:[%s881_s30 + $0xb8] sm:$0xff] %v551_v1  ;;  %565 = vst [vmem:[%s881_s30 + $0x28] sm:$0xff] %v533_v2  ;;  %v730_v4 = vpop.f32.mrb[8].mxu0 }
  0xf6   : > { %581 = vst [vmem:[%s881_s30 + $0xa8] sm:$0xff] %v549_v3  ;;  %v746_v5 = vpop.f32.mrb[8].mxu1  ;;  %v442_v6 = vadd.f32 %v730_v4, %v873_v19  ;;  %v433_v8 = vpop.f32.mrb[9].mxu0 }
  0xf7   : > { %v506_v7 = vadd.f32 %v746_v5, %v873_v19  ;;  %v497_v9 = vpop.f32.mrb[9].mxu1  ;;  %v434_v10 = vadd.f32 %v873_v19, %v433_v8  ;;  %v731_v12 = vpop.f32.mrb[10].mxu0 }
  0xf8   : > { %v498_v11 = vadd.f32 %v873_v19, %v497_v9  ;;  %v747_v13 = vpop.f32.mrb[10].mxu1  ;;  %v538_v14 = vmax.f32 %v442_v6, 0.0  ;;  %v445_v16 = vadd.f32 %v731_v12, %v873_v19  ;;  %v436_v18 = vpop.f32.mrb[11].mxu0 }
  0xf9   : > { %v554_v15 = vmax.f32 %v506_v7, 0.0  ;;  %v509_v17 = vadd.f32 %v747_v13, %v873_v19  ;;  %v500_v20 = vpop.f32.mrb[11].mxu1  ;;  %v536_v21 = vmax.f32 %v434_v10, 0.0  ;;  %v437_v23 = vadd.f32 %v873_v19, %v436_v18 }
  0xfa   : > { %v552_v22 = vmax.f32 %v498_v11, 0.0  ;;  %v501_v24 = vadd.f32 %v873_v19, %v500_v20  ;;  %570 = vst [vmem:[%s881_s30 + $0x50] sm:$0xff] %v538_v14  ;;  %v539_v25 = vmax.f32 %v445_v16, 0.0 }
  0xfb   : > { %586 = vst [vmem:[%s881_s30 + $0xd0] sm:$0xff] %v554_v15  ;;  %v555_v26 = vmax.f32 %v509_v17, 0.0  ;;  %568 = vst [vmem:[%s881_s30 + $0x40] sm:$0xff] %v536_v21  ;;  %v537_v27 = vmax.f32 %v437_v23, 0.0 }
  0xfc   : > { %584 = vst [vmem:[%s881_s30 + $0xc0] sm:$0xff] %v552_v22  ;;  %v553_v28 = vmax.f32 %v501_v24, 0.0  ;;  %571 = vst [vmem:[%s881_s30 + $0x58] sm:$0xff] %v539_v25 }
  0xfd   : > { %587 = vst [vmem:[%s881_s30 + $0xd8] sm:$0xff] %v555_v26  ;;  %569 = vst [vmem:[%s881_s30 + $0x48] sm:$0xff] %v537_v27  ;;  %v734_v29 = vpop.f32.mrb[12].mxu0 }
  0xfe   : > { %585 = vst [vmem:[%s881_s30 + $0xc8] sm:$0xff] %v553_v28  ;;  %v750_v30 = vpop.f32.mrb[12].mxu1  ;;  %v458_v31 = vadd.f32 %v734_v29, %v873_v19  ;;  %v449_v33 = vpop.f32.mrb[13].mxu0 }
  0xff   : > { %v522_v32 = vadd.f32 %v750_v30, %v873_v19  ;;  %v513_v34 = vpop.f32.mrb[13].mxu1  ;;  %v450_v35 = vadd.f32 %v873_v19, %v449_v33  ;;  %v735_v37 = vpop.f32.mrb[14].mxu0 }
 0x100   : > { %v514_v36 = vadd.f32 %v873_v19, %v513_v34  ;;  %v751_v38 = vpop.f32.mrb[14].mxu1  ;;  %v542_v39 = vmax.f32 %v458_v31, 0.0  ;;  %v461_v41 = vadd.f32 %v735_v37, %v873_v19  ;;  %v452_v43 = vpop.f32.mrb[15].mxu0 }
 0x101   : > { %v558_v40 = vmax.f32 %v522_v32, 0.0  ;;  %v525_v42 = vadd.f32 %v751_v38, %v873_v19  ;;  %v516_v44 = vpop.f32.mrb[15].mxu1  ;;  %v540_v45 = vmax.f32 %v450_v35, 0.0  ;;  %v453_v47 = vadd.f32 %v873_v19, %v452_v43 }
 0x102   : > { %v556_v46 = vmax.f32 %v514_v36, 0.0  ;;  %v517_v48 = vadd.f32 %v873_v19, %v516_v44  ;;  %574 = vst [vmem:[%s881_s30 + $0x70] sm:$0xff] %v542_v39  ;;  %v543_v49 = vmax.f32 %v461_v41, 0.0 }
 0x103   : > { %590 = vst [vmem:[%s881_s30 + $0xf0] sm:$0xff] %v558_v40  ;;  %v559_v50 = vmax.f32 %v525_v42, 0.0  ;;  %572 = vst [vmem:[%s881_s30 + $0x60] sm:$0xff] %v540_v45  ;;  %v541_v51 = vmax.f32 %v453_v47, 0.0 }
 0x104   : > { %588 = vst [vmem:[%s881_s30 + $0xe0] sm:$0xff] %v556_v46  ;;  %v557_v52 = vmax.f32 %v517_v48, 0.0  ;;  %575 = vst [vmem:[%s881_s30 + $0x78] sm:$0xff] %v543_v49 }
 0x105   : > { %591 = vst [vmem:[%s881_s30 + $0xf8] sm:$0xff] %v559_v50  ;;  %573 = vst [vmem:[%s881_s30 + $0x68] sm:$0xff] %v541_v51 }
 0x106   : > { %589 = vst [vmem:[%s881_s30 + $0xe8] sm:$0xff] %v557_v52 }
 0x107 PF: > { %s13_s12 = sadd.s32 1, %s791_s12  }
 0x108   : > { %p10_p4 = scmp.ge.s32.totalorder %s13_s12, 4  }
 0x10a   :  { %12 = sbr.rel (!%p10_p4) target bundleno = 1 (0x1), region = 62 }

// kernel: conv_vlae_encoder_celeba_forward.6
= control target key start
LH: loop header
LB: loop body
LE: loop exit
PB: predicated region body
PF: predicated region fallthrough
CT: control target
= control target key end

     0   :  { %vm1663_vm0 = vcmask 523264   ;;  %s2958_s1 = inlined_call_operand.vmem [shape: bf16[1024,192], index: 1, kind: input, shape index: {}]   ;;  %s2959_s0 = inlined_call_operand.vmem [shape: bf16[128,1024], index: 0, kind: input, shape index: {}]   ;;  %s2960_s2 = inlined_call_operand.vmem [shape: f32[1,192], index: 2, kind: input, shape index: {}]   ;;  %s2961_s3 = inlined_call_operand.vmem [shape: f32[128,192], index: 3, kind: output, shape index: {}]  }
   0x1   :  { %v2019_v0 = vld [vmem:[%s2958_s1 + $0x4] ss:$8 sps:$4 sm:$0xff]   ;;  %v2023_v2 = vld [vmem:[%s2958_s1] ss:$8 sps:$4 sm:$0xff]   ;;  %v2025_v4 = vld [vmem:[%s2958_s1 + $0x14] ss:$8 sps:$4 sm:$0xff]  }
   0x2   :  { %v2021_v1 = vld [vmem:[%s2958_s1 + $0x204] ss:$8 sps:$4 sm:$0xff]   ;;  %1178 = vmatprep.subr.bf16.mxu1 %v2019_v0  ;;  %v2024_v3 = vld [vmem:[%s2958_s1 + $0x200] ss:$8 sps:$4 sm:$0xff]   ;;  %v2027_v5 = vld [vmem:[%s2958_s1 + $0x214] ss:$8 sps:$4 sm:$0xff]  }
   0x3   :  { %1404 = vmatprep.subr.bf16.mxu0 %v2021_v1  ;;  %1179 = vmatpush1.bf16.msra.mxu1 %v2023_v2  ;;  %v2029_v6 = vld [vmem:[%s2958_s1 + $0x10] ss:$8 sps:$4 sm:$0xff]   ;;  %v2031_v8 = vld [vmem:[%s2958_s1 + $0x24] ss:$8 sps:$4 sm:$0xff]   ;;  %v2035_v10 = vld [vmem:[%s2958_s1 + $0x20] ss:$8 sps:$4 sm:$0xff]  }
   0x4   :  { %1405 = vmatpush1.bf16.msra.mxu0 %v2024_v3  ;;  %1180 = vmatprep.subr.bf16.mxu1 %v2025_v4  ;;  %v2030_v7 = vld [vmem:[%s2958_s1 + $0x210] ss:$8 sps:$4 sm:$0xff]   ;;  %v2033_v9 = vld [vmem:[%s2958_s1 + $0x224] ss:$8 sps:$4 sm:$0xff]   ;;  %v2036_v11 = vld [vmem:[%s2958_s1 + $0x220] ss:$8 sps:$4 sm:$0xff]  }
   0x5   :  { %1406 = vmatprep.subr.bf16.mxu0 %v2027_v5  ;;  %v2037_v12 = vld [vmem:[%s2958_s1 + $0x34] ss:$8 sps:$4 sm:$0xff]   ;;  %v2041_v14 = vld [vmem:[%s2958_s1 + $0x30] ss:$8 sps:$4 sm:$0xff]   ;;  %v2043_v16 = vld [vmem:[%s2958_s1 + $0x44] ss:$8 sps:$4 sm:$0xff]  }
   0x6   :  { %v2039_v13 = vld [vmem:[%s2958_s1 + $0x234] ss:$8 sps:$4 sm:$0xff]   ;;  %v2042_v15 = vld [vmem:[%s2958_s1 + $0x230] ss:$8 sps:$4 sm:$0xff]   ;;  %v2045_v17 = vld [vmem:[%s2958_s1 + $0x244] ss:$8 sps:$4 sm:$0xff]  }
   0x7   :  { %1181 = vmatpush1.bf16.msra.mxu1 %v2029_v6  ;;  %v2047_v18 = vld [vmem:[%s2958_s1 + $0x40] ss:$8 sps:$4 sm:$0xff]   ;;  %v2049_v20 = vld [vmem:[%s2958_s1 + $0x54] ss:$8 sps:$4 sm:$0xff]   ;;  %v2053_v22 = vld [vmem:[%s2958_s1 + $0x50] ss:$8 sps:$4 sm:$0xff]  }
   0x8   :  { %1407 = vmatpush1.bf16.msra.mxu0 %v2030_v7  ;;  %1182 = vmatprep.subr.bf16.mxu1 %v2031_v8  ;;  %v2048_v19 = vld [vmem:[%s2958_s1 + $0x240] ss:$8 sps:$4 sm:$0xff]   ;;  %v2051_v21 = vld [vmem:[%s2958_s1 + $0x254] ss:$8 sps:$4 sm:$0xff]   ;;  %v2054_v23 = vld [vmem:[%s2958_s1 + $0x250] ss:$8 sps:$4 sm:$0xff]  }
   0x9   :  { %1408 = vmatprep.subr.bf16.mxu0 %v2033_v9  ;;  %v2055_v24 = vld [vmem:[%s2958_s1 + $0x64] ss:$8 sps:$4 sm:$0xff]   ;;  %v2059_v26 = vld [vmem:[%s2958_s1 + $0x60] ss:$8 sps:$4 sm:$0xff]   ;;  %v2061_v28 = vld [vmem:[%s2958_s1 + $0x74] ss:$8 sps:$4 sm:$0xff]  }
   0xa   :  { %v2057_v25 = vld [vmem:[%s2958_s1 + $0x264] ss:$8 sps:$4 sm:$0xff]   ;;  %v2060_v27 = vld [vmem:[%s2958_s1 + $0x260] ss:$8 sps:$4 sm:$0xff]   ;;  %v2063_v29 = vld [vmem:[%s2958_s1 + $0x274] ss:$8 sps:$4 sm:$0xff]  }
   0xb   :  { %1183 = vmatpush1.bf16.msra.mxu1 %v2035_v10  ;;  %v2065_v30 = vld [vmem:[%s2958_s1 + $0x70] ss:$8 sps:$4 sm:$0xff]   ;;  %v2067_v32 = vld [vmem:[%s2958_s1 + $0x84] ss:$8 sps:$4 sm:$0xff]   ;;  %v2071_v34 = vld [vmem:[%s2958_s1 + $0x80] ss:$8 sps:$4 sm:$0xff]  }
   0xc   :  { %1409 = vmatpush1.bf16.msra.mxu0 %v2036_v11  ;;  %1184 = vmatprep.subr.bf16.mxu1 %v2037_v12  ;;  %v2066_v31 = vld [vmem:[%s2958_s1 + $0x270] ss:$8 sps:$4 sm:$0xff]   ;;  %v2069_v33 = vld [vmem:[%s2958_s1 + $0x284] ss:$8 sps:$4 sm:$0xff]   ;;  %v2072_v35 = vld [vmem:[%s2958_s1 + $0x280] ss:$8 sps:$4 sm:$0xff]  }
   0xd   :  { %1410 = vmatprep.subr.bf16.mxu0 %v2039_v13  ;;  %v2073_v36 = vld [vmem:[%s2958_s1 + $0x94] ss:$8 sps:$4 sm:$0xff]   ;;  %v2077_v38 = vld [vmem:[%s2958_s1 + $0x90] ss:$8 sps:$4 sm:$0xff]   ;;  %v2079_v40 = vld [vmem:[%s2958_s1 + $0xa4] ss:$8 sps:$4 sm:$0xff]  }
   0xe   :  { %v2075_v37 = vld [vmem:[%s2958_s1 + $0x294] ss:$8 sps:$4 sm:$0xff]   ;;  %v2078_v39 = vld [vmem:[%s2958_s1 + $0x290] ss:$8 sps:$4 sm:$0xff]   ;;  %v2081_v41 = vld [vmem:[%s2958_s1 + $0x2a4] ss:$8 sps:$4 sm:$0xff]  }
   0xf   :  { %1185 = vmatpush1.bf16.msra.mxu1 %v2041_v14  ;;  %v2083_v42 = vld [vmem:[%s2958_s1 + $0xa0] ss:$8 sps:$4 sm:$0xff]   ;;  %v2085_v44 = vld [vmem:[%s2958_s1 + $0xb4] ss:$8 sps:$4 sm:$0xff]   ;;  %v2089_v46 = vld [vmem:[%s2958_s1 + $0xb0] ss:$8 sps:$4 sm:$0xff]  }
  0x10   :  { %1411 = vmatpush1.bf16.msra.mxu0 %v2042_v15  ;;  %1186 = vmatprep.subr.bf16.mxu1 %v2043_v16  ;;  %v2084_v43 = vld [vmem:[%s2958_s1 + $0x2a0] ss:$8 sps:$4 sm:$0xff]   ;;  %v2087_v45 = vld [vmem:[%s2958_s1 + $0x2b4] ss:$8 sps:$4 sm:$0xff]   ;;  %v2090_v47 = vld [vmem:[%s2958_s1 + $0x2b0] ss:$8 sps:$4 sm:$0xff]  }
  0x11   :  { %1412 = vmatprep.subr.bf16.mxu0 %v2045_v17  ;;  %v14_v48 = vld [vmem:[%s2959_s0] sm:$0xff]  ;;  %v16_v50 = vld [vmem:[%s2959_s0 + $0x10] sm:$0xff] }
  0x12   :  { %v18_v49 = vld [vmem:[%s2959_s0 + $0x20] sm:$0xff]  ;;  %v20_v51 = vld [vmem:[%s2959_s0 + $0x30] sm:$0xff] }
  0x13   :  { %1187 = vmatpush1.bf16.msra.mxu1 %v2047_v18  ;;  %v2091_v52 = vld [vmem:[%s2958_s1 + $0xc4] ss:$8 sps:$4 sm:$0xff]   ;;  %v1700_v53 = vcombine.high %v14_v48, %v18_v49  ;;  %v1704_v55 = vcombine.high %v16_v50, %v20_v51  ;;  %v2095_v56 = vld [vmem:[%s2958_s1 + $0xc0] ss:$8 sps:$4 sm:$0xff]   ;;  %v2097_v58 = vld [vmem:[%s2958_s1 + $0xd4] ss:$8 sps:$4 sm:$0xff]   ;;  %v1699_v11 = vcombine.low %v14_v48, %v18_v49  ;;  %v1703_v12 = vcombine.low %v16_v50, %v20_v51 }
  0x14   :  { %1413 = vmatpush1.bf16.msra.mxu0 %v2048_v19  ;;  %1188 = vmatprep.subr.bf16.mxu1 %v2049_v20  ;;  %v2093_v54 = vld [vmem:[%s2958_s1 + $0x2c4] ss:$8 sps:$4 sm:$0xff]   ;;  %v2096_v57 = vld [vmem:[%s2958_s1 + $0x2c0] ss:$8 sps:$4 sm:$0xff]   ;;  %v2099_v59 = vld [vmem:[%s2958_s1 + $0x2d4] ss:$8 sps:$4 sm:$0xff]  }
  0x15   :  { %1414 = vmatprep.subr.bf16.mxu0 %v2051_v21  ;;  %1210 = vmatprep.mubr.bf16.mxu1 %v1700_v53  ;;  %v2101_v60 = vld [vmem:[%s2958_s1 + $0xd0] ss:$8 sps:$4 sm:$0xff]   ;;  %v2103_v62 = vld [vmem:[%s2958_s1 + $0xe4] ss:$8 sps:$4 sm:$0xff]   ;;  %v2107_v0 = vld [vmem:[%s2958_s1 + $0xe0] ss:$8 sps:$4 sm:$0xff]  }
  0x16   :  { %1436 = vmatprep.mubr.bf16.mxu0 %v1704_v55  ;;  %v2102_v61 = vld [vmem:[%s2958_s1 + $0x2d0] ss:$8 sps:$4 sm:$0xff]   ;;  %v2105_v63 = vld [vmem:[%s2958_s1 + $0x2e4] ss:$8 sps:$4 sm:$0xff]   ;;  %v2108_v1 = vld [vmem:[%s2958_s1 + $0x2e0] ss:$8 sps:$4 sm:$0xff]  }
  0x17   :  { %1189 = vmatpush1.bf16.msra.mxu1 %v2053_v22  ;;  %v2109_v2 = vld [vmem:[%s2958_s1 + $0xf4] ss:$8 sps:$4 sm:$0xff]   ;;  %v2113_v4 = vld [vmem:[%s2958_s1 + $0xf0] ss:$8 sps:$4 sm:$0xff]   ;;  %v2117_v6 = vld [vmem:[%s2958_s1 + $0x104] ss:$8 sps:$4 sm:$0xff]  }
  0x18   :  { %1415 = vmatpush1.bf16.msra.mxu0 %v2054_v23  ;;  %1190 = vmatprep.subr.bf16.mxu1 %v2055_v24  ;;  %v2111_v3 = vld [vmem:[%s2958_s1 + $0x2f4] ss:$8 sps:$4 sm:$0xff]   ;;  %v2114_v5 = vld [vmem:[%s2958_s1 + $0x2f0] ss:$8 sps:$4 sm:$0xff]   ;;  %v2120_v7 = vld [vmem:[%s2958_s1 + $0x304] ss:$8 sps:$4 sm:$0xff]  }
  0x19   :  { %1416 = vmatprep.subr.bf16.mxu0 %v2057_v25  ;;  %v2115_v8 = vld [vmem:[%s2958_s1 + $0x100] ss:$8 sps:$4 sm:$0xff]   ;;  %v24_v14 = vld [vmem:[%s2959_s0 + $0x50] sm:$0xff]  ;;  %v2129_v22 = vld [vmem:[%s2958_s1 + $0x124] ss:$8 sps:$4 sm:$0xff]  }
  0x1a   :  { %v2118_v9 = vld [vmem:[%s2958_s1 + $0x300] ss:$8 sps:$4 sm:$0xff]   ;;  %v28_v15 = vld [vmem:[%s2959_s0 + $0x70] sm:$0xff]  ;;  %v2132_v23 = vld [vmem:[%s2958_s1 + $0x324] ss:$8 sps:$4 sm:$0xff]  }
  0x1b   :  { %1191 = vmatpush1.bf16.msra.mxu1 %v2059_v26  ;;  %v22_v10 = vld [vmem:[%s2959_s0 + $0x40] sm:$0xff]  ;;  %v2123_v16 = vld [vmem:[%s2958_s1 + $0x114] ss:$8 sps:$4 sm:$0xff]   ;;  %v1712_v19 = vcombine.high %v24_v14, %v28_v15  ;;  %v2121_v20 = vld [vmem:[%s2958_s1 + $0x110] ss:$8 sps:$4 sm:$0xff]  }
  0x1c   :  { %1417 = vmatpush1.bf16.msra.mxu0 %v2060_v27  ;;  %1192 = vmatprep.subr.bf16.mxu1 %v2061_v28  ;;  %v26_v13 = vld [vmem:[%s2959_s0 + $0x60] sm:$0xff]  ;;  %v2126_v17 = vld [vmem:[%s2958_s1 + $0x314] ss:$8 sps:$4 sm:$0xff]   ;;  %v2124_v21 = vld [vmem:[%s2958_s1 + $0x310] ss:$8 sps:$4 sm:$0xff]  }
  0x1d   :  { %1418 = vmatprep.subr.bf16.mxu0 %v2063_v29  ;;  %v1708_v18 = vcombine.high %v22_v10, %v26_v13  ;;  %v2127_v24 = vld [vmem:[%s2958_s1 + $0x120] ss:$8 sps:$4 sm:$0xff]   ;;  %v1707_v28 = vcombine.low %v22_v10, %v26_v13  ;;  %v1711_v29 = vcombine.low %v24_v14, %v28_v15  ;;  %v2147_v48 = vld [vmem:[%s2958_s1 + $0x154] ss:$8 sps:$4 sm:$0xff]   ;;  %v2148_v53 = vld [vmem:[%s2958_s1 + $0x350] ss:$8 sps:$4 sm:$0xff]  }
  0x1e   :  { %v2130_v25 = vld [vmem:[%s2958_s1 + $0x320] ss:$8 sps:$4 sm:$0xff]   ;;  %v2150_v49 = vld [vmem:[%s2958_s1 + $0x354] ss:$8 sps:$4 sm:$0xff]   ;;  %v2156_v55 = vld [vmem:[%s2958_s1 + $0x364] ss:$8 sps:$4 sm:$0xff]  }
  0x1f   :  { %1193 = vmatpush1.bf16.msra.mxu1 %v2065_v30  ;;  %v30_v26 = vld [vmem:[%s2959_s0 + $0x80] sm:$0xff]  ;;  %v32_v30 = vld [vmem:[%s2959_s0 + $0x90] sm:$0xff] }
  0x20   :  { %1419 = vmatpush1.bf16.msra.mxu0 %v2066_v31  ;;  %1194 = vmatprep.subr.bf16.mxu1 %v2067_v32  ;;  %v34_v27 = vld [vmem:[%s2959_s0 + $0xa0] sm:$0xff]  ;;  %v36_v31 = vld [vmem:[%s2959_s0 + $0xb0] sm:$0xff] }
  0x21   :  { %1420 = vmatprep.subr.bf16.mxu0 %v2069_v33  ;;  %v2135_v32 = vld [vmem:[%s2958_s1 + $0x134] ss:$8 sps:$4 sm:$0xff]   ;;  %v2163_v14 = vld [vmem:[%s2958_s1 + $0x180] ss:$8 sps:$4 sm:$0xff]  }
  0x22   :  { %v2138_v33 = vld [vmem:[%s2958_s1 + $0x334] ss:$8 sps:$4 sm:$0xff]   ;;  %v2166_v15 = vld [vmem:[%s2958_s1 + $0x380] ss:$8 sps:$4 sm:$0xff]  }
  0x23   :  { %1195 = vmatpush1.bf16.msra.mxu1 %v2071_v34  ;;  %v1716_v34 = vcombine.high %v30_v26, %v34_v27  ;;  %v60_v13 = vld [vmem:[%s2959_s0 + $0x170] sm:$0xff] }
  0x24   :  { %1421 = vmatpush1.bf16.msra.mxu0 %v2072_v35  ;;  %1196 = vmatprep.subr.bf16.mxu1 %v2073_v36  ;;  %v1720_v35 = vcombine.high %v32_v30, %v36_v31  ;;  %v2133_v36 = vld [vmem:[%s2958_s1 + $0x130] ss:$8 sps:$4 sm:$0xff]  }
  0x25   :  { %1422 = vmatprep.subr.bf16.mxu0 %v2075_v37  ;;  %v2136_v37 = vld [vmem:[%s2958_s1 + $0x330] ss:$8 sps:$4 sm:$0xff]  }
  0x27   :  { %1197 = vmatpush1.bf16.msra.mxu1 %v2077_v38  ;;  %v2141_v38 = vld [vmem:[%s2958_s1 + $0x144] ss:$8 sps:$4 sm:$0xff]  }
  0x28   :  { %1423 = vmatpush1.bf16.msra.mxu0 %v2078_v39  ;;  %1198 = vmatprep.subr.bf16.mxu1 %v2079_v40  ;;  %v2144_v39 = vld [vmem:[%s2958_s1 + $0x344] ss:$8 sps:$4 sm:$0xff]   ;;  %v2139_v40 = vld [vmem:[%s2958_s1 + $0x140] ss:$8 sps:$4 sm:$0xff]  }
  0x29   :  { %1424 = vmatprep.subr.bf16.mxu0 %v2081_v41  ;;  %v2142_v41 = vld [vmem:[%s2958_s1 + $0x340] ss:$8 sps:$4 sm:$0xff]  }
  0x2b   :  { %1199 = vmatpush1.bf16.msra.mxu1 %v2083_v42  ;;  %v38_v42 = vld [vmem:[%s2959_s0 + $0xc0] sm:$0xff] }
  0x2c   :  { %1425 = vmatpush1.bf16.msra.mxu0 %v2084_v43  ;;  %1200 = vmatprep.subr.bf16.mxu1 %v2085_v44  ;;  %v42_v43 = vld [vmem:[%s2959_s0 + $0xe0] sm:$0xff]  ;;  %v1715_v44 = vcombine.low %v30_v26, %v34_v27 }
  0x2d   :  { %1426 = vmatprep.subr.bf16.mxu0 %v2087_v45  ;;  %v1719_v45 = vcombine.low %v32_v30, %v36_v31  ;;  %v1724_v50 = vcombine.high %v38_v42, %v42_v43  ;;  %v66_v27 = vld [vmem:[%s2959_s0 + $0x1a0] sm:$0xff] }
  0x2e   :  { %v2175_v30 = vld [vmem:[%s2958_s1 + $0x1a0] ss:$8 sps:$4 sm:$0xff]  }
  0x2f   :  { %1201 = vmatpush1.bf16.msra.mxu1 %v2089_v46  ;;  %v40_v46 = vld [vmem:[%s2959_s0 + $0xd0] sm:$0xff]  ;;  %v2178_v31 = vld [vmem:[%s2958_s1 + $0x3a0] ss:$8 sps:$4 sm:$0xff]  }
  0x30   :  { %1427 = vmatpush1.bf16.msra.mxu0 %v2090_v47  ;;  %1202 = vmatprep.subr.bf16.mxu1 %v2091_v52  ;;  %v44_v47 = vld [vmem:[%s2959_s0 + $0xf0] sm:$0xff] }
  0x31   :  { %1428 = vmatprep.subr.bf16.mxu0 %v2093_v54  ;;  %v1728_v51 = vcombine.high %v40_v46, %v44_v47  ;;  %v2145_v52 = vld [vmem:[%s2958_s1 + $0x150] ss:$8 sps:$4 sm:$0xff]   ;;  %v2153_v54 = vld [vmem:[%s2958_s1 + $0x164] ss:$8 sps:$4 sm:$0xff]  }
  0x33   :  { %1203 = vmatpush1.bf16.msra.mxu1 %v2095_v56  ;;  %v2151_v56 = vld [vmem:[%s2958_s1 + $0x160] ss:$8 sps:$4 sm:$0xff]  }
  0x34   :  { %1429 = vmatpush1.bf16.msra.mxu0 %v2096_v57  ;;  %1204 = vmatprep.subr.bf16.mxu1 %v2097_v58  ;;  %v46_v57 = vld [vmem:[%s2959_s0 + $0x100] sm:$0xff] }
  0x35   :  { %1430 = vmatprep.subr.bf16.mxu0 %v2099_v59  ;;  %v50_v58 = vld [vmem:[%s2959_s0 + $0x120] sm:$0xff]  ;;  %v1723_v59 = vcombine.low %v38_v42, %v42_v43 }
  0x36   :  { %v1731_v10 = vcombine.low %v46_v57, %v50_v58  ;;  %v74_v43 = vld [vmem:[%s2959_s0 + $0x1e0] sm:$0xff] }
  0x37   :  { %1205 = vmatpush1.bf16.msra.mxu1 %v2101_v60  ;;  %v1727_v60 = vcombine.low %v40_v46, %v44_v47  ;;  %v2187_v46 = vld [vmem:[%s2958_s1 + $0x1c0] ss:$8 sps:$4 sm:$0xff]  }
  0x38   :  { %1431 = vmatpush1.bf16.msra.mxu0 %v2102_v61  ;;  %1206 = vmatprep.subr.bf16.mxu1 %v2103_v62  ;;  %v48_v61 = vld [vmem:[%s2959_s0 + $0x110] sm:$0xff]  ;;  %v2190_v47 = vld [vmem:[%s2958_s1 + $0x3c0] ss:$8 sps:$4 sm:$0xff]  }
  0x39   :  { %1432 = vmatprep.subr.bf16.mxu0 %v2105_v63  ;;  %v52_v62 = vld [vmem:[%s2959_s0 + $0x130] sm:$0xff]  ;;  %v2154_v63 = vld [vmem:[%s2958_s1 + $0x360] ss:$8 sps:$4 sm:$0xff]  }
  0x3b   :  { %1207 = vmatpush1.bf16.msra.mxu1 %v2107_v0  ;;  %v2159_v0 = vld [vmem:[%s2958_s1 + $0x174] ss:$8 sps:$4 sm:$0xff]  }
  0x3c   :  { %1433 = vmatpush1.bf16.msra.mxu0 %v2108_v1  ;;  %1208 = vmatprep.subr.bf16.mxu1 %v2109_v2  ;;  %v2162_v1 = vld [vmem:[%s2958_s1 + $0x374] ss:$8 sps:$4 sm:$0xff]   ;;  %v1732_v2 = vcombine.high %v46_v57, %v50_v58 }
  0x3d   :  { %1434 = vmatprep.subr.bf16.mxu0 %v2111_v3  ;;  %v1736_v3 = vcombine.high %v48_v61, %v52_v62 }
  0x3f   :  { %1209 = vmatpush1.bf16.msra.mxu1 %v2113_v4  ;;  %v2157_v4 = vld [vmem:[%s2958_s1 + $0x170] ss:$8 sps:$4 sm:$0xff]  }
  0x40   :  { %1435 = vmatpush1.bf16.msra.mxu0 %v2114_v5  ;;  %1291 = vmatprep.subr.bf16.mxu1 %v2117_v6  ;;  %v2160_v5 = vld [vmem:[%s2958_s1 + $0x370] ss:$8 sps:$4 sm:$0xff]   ;;  %v2165_v6 = vld [vmem:[%s2958_s1 + $0x184] ss:$8 sps:$4 sm:$0xff]  }
  0x41   :  { %1517 = vmatprep.subr.bf16.mxu0 %v2120_v7  ;;  %v2168_v7 = vld [vmem:[%s2958_s1 + $0x384] ss:$8 sps:$4 sm:$0xff]  }
  0x42   :  { %1211 = vmatmul.mubr.bf16.vlgmr.msra.gmra.mrb[0].mxu1 %v1699_v11  ;;  %v1735_v11 = vcombine.low %v48_v61, %v52_v62  ;;  %v21_v61 = vld [vmem:[%s2959_s0 + $0x38] sm:$0xff]  ;;  %v2199_v62 = vld [vmem:[%s2958_s1 + $0x1e0] ss:$8 sps:$4 sm:$0xff]  }
  0x43   :  { %1437 = vmatmul.mubr.bf16.vlgmr.msra.gmra.mrb[0].mxu0 %v1703_v12  ;;  %1292 = vmatpush1.bf16.msra.mxu1 %v2115_v8  ;;  %v54_v8 = vld [vmem:[%s2959_s0 + $0x140] sm:$0xff]  ;;  %v56_v12 = vld [vmem:[%s2959_s0 + $0x150] sm:$0xff] }
  0x44   :  { %1518 = vmatpush1.bf16.msra.mxu0 %v2118_v9  ;;  %1293 = vmatprep.subr.bf16.mxu1 %v2123_v16  ;;  %v58_v9 = vld [vmem:[%s2959_s0 + $0x160] sm:$0xff]  ;;  %v2171_v16 = vld [vmem:[%s2958_s1 + $0x194] ss:$8 sps:$4 sm:$0xff]   ;;  %v1743_v26 = vcombine.low %v56_v12, %v60_v13 }
  0x45   :  { %1519 = vmatprep.subr.bf16.mxu0 %v2126_v17  ;;  %1220 = vmatprep.mubr.bf16.mxu1 %v1708_v18  ;;  %v2174_v17 = vld [vmem:[%s2958_s1 + $0x394] ss:$8 sps:$4 sm:$0xff]   ;;  %v1740_v18 = vcombine.high %v54_v8, %v58_v9 }
  0x46   :  { %1446 = vmatprep.mubr.bf16.mxu0 %v1712_v19  ;;  %v1744_v19 = vcombine.high %v56_v12, %v60_v13 }
  0x47   :  { %1294 = vmatpush1.bf16.msra.mxu1 %v2121_v20  ;;  %v2169_v20 = vld [vmem:[%s2958_s1 + $0x190] ss:$8 sps:$4 sm:$0xff]  }
  0x48   :  { %1520 = vmatpush1.bf16.msra.mxu0 %v2124_v21  ;;  %1295 = vmatprep.subr.bf16.mxu1 %v2129_v22  ;;  %v2172_v21 = vld [vmem:[%s2958_s1 + $0x390] ss:$8 sps:$4 sm:$0xff]   ;;  %v2177_v22 = vld [vmem:[%s2958_s1 + $0x1a4] ss:$8 sps:$4 sm:$0xff]  }
  0x49   :  { %1521 = vmatprep.subr.bf16.mxu0 %v2132_v23  ;;  %v2180_v23 = vld [vmem:[%s2958_s1 + $0x3a4] ss:$8 sps:$4 sm:$0xff]  }
  0x4a   :  { %1221 = vmatmul.mubr.bf16.gmra.mrb[4].mxu1 %v1707_v28  ;;  %v64_v28 = vld [vmem:[%s2959_s0 + $0x190] sm:$0xff] }
  0x4b   :  { %1447 = vmatmul.mubr.bf16.gmra.mrb[4].mxu0 %v1711_v29  ;;  %1296 = vmatpush1.bf16.msra.mxu1 %v2127_v24  ;;  %v62_v24 = vld [vmem:[%s2959_s0 + $0x180] sm:$0xff]  ;;  %v68_v29 = vld [vmem:[%s2959_s0 + $0x1b0] sm:$0xff] }
  0x4c   :  { %1522 = vmatpush1.bf16.msra.mxu0 %v2130_v25  ;;  %1297 = vmatprep.subr.bf16.mxu1 %v2135_v32  ;;  %v1739_v25 = vcombine.low %v54_v8, %v58_v9  ;;  %v2183_v32 = vld [vmem:[%s2958_s1 + $0x1b4] ss:$8 sps:$4 sm:$0xff]   ;;  %v1751_v42 = vcombine.low %v64_v28, %v68_v29 }
  0x4d   :  { %1523 = vmatprep.subr.bf16.mxu0 %v2138_v33  ;;  %1230 = vmatprep.mubr.bf16.mxu1 %v1716_v34  ;;  %v2186_v33 = vld [vmem:[%s2958_s1 + $0x3b4] ss:$8 sps:$4 sm:$0xff]   ;;  %v1748_v34 = vcombine.high %v62_v24, %v66_v27 }
  0x4e   :  { %1456 = vmatprep.mubr.bf16.mxu0 %v1720_v35  ;;  %v1752_v35 = vcombine.high %v64_v28, %v68_v29  ;;  %v25_v8 = vld [vmem:[%s2959_s0 + $0x58] sm:$0xff] }
  0x4f   :  { %1298 = vmatpush1.bf16.msra.mxu1 %v2133_v36  ;;  %v2181_v36 = vld [vmem:[%s2958_s1 + $0x1b0] ss:$8 sps:$4 sm:$0xff]  }
  0x50   :  { %1524 = vmatpush1.bf16.msra.mxu0 %v2136_v37  ;;  %1299 = vmatprep.subr.bf16.mxu1 %v2141_v38  ;;  %v2184_v37 = vld [vmem:[%s2958_s1 + $0x3b0] ss:$8 sps:$4 sm:$0xff]   ;;  %v2189_v38 = vld [vmem:[%s2958_s1 + $0x1c4] ss:$8 sps:$4 sm:$0xff]  }
  0x51   :  { %1525 = vmatprep.subr.bf16.mxu0 %v2144_v39  ;;  %v2192_v39 = vld [vmem:[%s2958_s1 + $0x3c4] ss:$8 sps:$4 sm:$0xff]   ;;  %v29_v9 = vld [vmem:[%s2959_s0 + $0x78] sm:$0xff] }
  0x52   :  { %1231 = vmatmul.mubr.bf16.gmra.mrb[8].mxu1 %v1715_v44  ;;  %v72_v44 = vld [vmem:[%s2959_s0 + $0x1d0] sm:$0xff]  ;;  %v1714_v13 = vcombine.high %v25_v8, %v29_v9 }
  0x53   :  { %1457 = vmatmul.mubr.bf16.gmra.mrb[8].mxu0 %v1719_v45  ;;  %1300 = vmatpush1.bf16.msra.mxu1 %v2139_v40  ;;  %v70_v40 = vld [vmem:[%s2959_s0 + $0x1c0] sm:$0xff]  ;;  %v76_v45 = vld [vmem:[%s2959_s0 + $0x1f0] sm:$0xff] }
  0x54   :  { %1526 = vmatpush1.bf16.msra.mxu0 %v2142_v41  ;;  %1301 = vmatprep.subr.bf16.mxu1 %v2147_v48  ;;  %v1747_v41 = vcombine.low %v62_v24, %v66_v27  ;;  %v2195_v48 = vld [vmem:[%s2958_s1 + $0x1d4] ss:$8 sps:$4 sm:$0xff]   ;;  %v1755_v57 = vcombine.low %v70_v40, %v74_v43  ;;  %v1759_v58 = vcombine.low %v72_v44, %v76_v45 }
  0x55   :  { %1527 = vmatprep.subr.bf16.mxu0 %v2150_v49  ;;  %1240 = vmatprep.mubr.bf16.mxu1 %v1724_v50  ;;  %v2198_v49 = vld [vmem:[%s2958_s1 + $0x3d4] ss:$8 sps:$4 sm:$0xff]   ;;  %v1756_v50 = vcombine.high %v70_v40, %v74_v43 }
  0x56   :  { %1466 = vmatprep.mubr.bf16.mxu0 %v1728_v51  ;;  %v1760_v51 = vcombine.high %v72_v44, %v76_v45  ;;  %v41_v24 = vld [vmem:[%s2959_s0 + $0xd8] sm:$0xff] }
  0x57   :  { %1302 = vmatpush1.bf16.msra.mxu1 %v2145_v52  ;;  %v2193_v52 = vld [vmem:[%s2958_s1 + $0x1d0] ss:$8 sps:$4 sm:$0xff]  }
  0x58   :  { %1528 = vmatpush1.bf16.msra.mxu0 %v2148_v53  ;;  %1303 = vmatprep.subr.bf16.mxu1 %v2153_v54  ;;  %v2196_v53 = vld [vmem:[%s2958_s1 + $0x3d0] ss:$8 sps:$4 sm:$0xff]   ;;  %v2201_v54 = vld [vmem:[%s2958_s1 + $0x1e4] ss:$8 sps:$4 sm:$0xff]  }
  0x59   :  { %1529 = vmatprep.subr.bf16.mxu0 %v2156_v55  ;;  %v2204_v55 = vld [vmem:[%s2958_s1 + $0x3e4] ss:$8 sps:$4 sm:$0xff]   ;;  %v57_v40 = vld [vmem:[%s2959_s0 + $0x158] sm:$0xff] }
  0x5a   :  { %1241 = vmatmul.mubr.bf16.gmra.mrb[12].mxu1 %v1723_v59  ;;  %v19_v59 = vld [vmem:[%s2959_s0 + $0x28] sm:$0xff] }
  0x5b   :  { %1467 = vmatmul.mubr.bf16.gmra.mrb[12].mxu0 %v1727_v60  ;;  %1304 = vmatpush1.bf16.msra.mxu1 %v2151_v56  ;;  %v15_v56 = vld [vmem:[%s2959_s0 + $0x8] sm:$0xff]  ;;  %v17_v60 = vld [vmem:[%s2959_s0 + $0x18] sm:$0xff] }
  0x5c   :  { %1530 = vmatpush1.bf16.msra.mxu0 %v2154_v63  ;;  %1305 = vmatprep.subr.bf16.mxu1 %v2159_v0  ;;  %v2202_v63 = vld [vmem:[%s2958_s1 + $0x3e0] ss:$8 sps:$4 sm:$0xff]   ;;  %v2207_v0 = vld [vmem:[%s2958_s1 + $0x1f4] ss:$8 sps:$4 sm:$0xff]  }
  0x5d   :  { %1531 = vmatprep.subr.bf16.mxu0 %v2162_v1  ;;  %1250 = vmatprep.mubr.bf16.mxu1 %v1732_v2  ;;  %v2210_v1 = vld [vmem:[%s2958_s1 + $0x3f4] ss:$8 sps:$4 sm:$0xff]   ;;  %v1702_v2 = vcombine.high %v15_v56, %v19_v59 }
  0x5e   :  { %1476 = vmatprep.mubr.bf16.mxu0 %v1736_v3  ;;  %v1706_v3 = vcombine.high %v17_v60, %v21_v61 }
  0x5f   :  { %1306 = vmatpush1.bf16.msra.mxu1 %v2157_v4  ;;  %v2205_v4 = vld [vmem:[%s2958_s1 + $0x1f0] ss:$8 sps:$4 sm:$0xff]  }
  0x60   :  { %1532 = vmatpush1.bf16.msra.mxu0 %v2160_v5  ;;  %1307 = vmatprep.subr.bf16.mxu1 %v2165_v6  ;;  %v2208_v5 = vld [vmem:[%s2958_s1 + $0x3f0] ss:$8 sps:$4 sm:$0xff]   ;;  %v23_v6 = vld [vmem:[%s2959_s0 + $0x48] sm:$0xff] }
  0x61   :  { %1533 = vmatprep.subr.bf16.mxu0 %v2168_v7  ;;  %v27_v7 = vld [vmem:[%s2959_s0 + $0x68] sm:$0xff] }
  0x62   :  { %1251 = vmatmul.mubr.bf16.gmra.mrb[16].mxu1 %v1731_v10  ;;  %v1701_v10 = vcombine.low %v15_v56, %v19_v59  ;;  %v1710_v12 = vcombine.high %v23_v6, %v27_v7  ;;  %v73_v56 = vld [vmem:[%s2959_s0 + $0x1d8] sm:$0xff] }
  0x63   :  { %1477 = vmatmul.mubr.bf16.gmra.mrb[16].mxu0 %v1735_v11  ;;  %1308 = vmatpush1.bf16.msra.mxu1 %v2163_v14  ;;  %v1705_v11 = vcombine.low %v17_v60, %v21_v61  ;;  %v31_v14 = vld [vmem:[%s2959_s0 + $0x88] sm:$0xff] }
  0x64   :  { %1534 = vmatpush1.bf16.msra.mxu0 %v2166_v15  ;;  %1309 = vmatprep.subr.bf16.mxu1 %v2171_v16  ;;  %v35_v15 = vld [vmem:[%s2959_s0 + $0xa8] sm:$0xff]  ;;  %v33_v16 = vld [vmem:[%s2959_s0 + $0x98] sm:$0xff] }
  0x65   :  { %1535 = vmatprep.subr.bf16.mxu0 %v2174_v17  ;;  %1260 = vmatprep.mubr.bf16.mxu1 %v1740_v18  ;;  %v37_v17 = vld [vmem:[%s2959_s0 + $0xb8] sm:$0xff]  ;;  %v1709_v18 = vcombine.low %v23_v6, %v27_v7 }
  0x66   :  { %1486 = vmatprep.mubr.bf16.mxu0 %v1744_v19  ;;  %v1713_v19 = vcombine.low %v25_v8, %v29_v9  ;;  %v1721_v27 = vcombine.low %v33_v16, %v37_v17 }
  0x67   :  { %1310 = vmatpush1.bf16.msra.mxu1 %v2169_v20  ;;  %v1718_v20 = vcombine.high %v31_v14, %v35_v15 }
  0x68   :  { %1536 = vmatpush1.bf16.msra.mxu0 %v2172_v21  ;;  %1311 = vmatprep.subr.bf16.mxu1 %v2177_v22  ;;  %v1722_v21 = vcombine.high %v33_v16, %v37_v17  ;;  %v39_v22 = vld [vmem:[%s2959_s0 + $0xc8] sm:$0xff] }
  0x69   :  { %1537 = vmatprep.subr.bf16.mxu0 %v2180_v23  ;;  %v43_v23 = vld [vmem:[%s2959_s0 + $0xe8] sm:$0xff] }
  0x6a   :  { %1261 = vmatmul.mubr.bf16.gmra.mrb[20].mxu1 %v1739_v25  ;;  %v45_v25 = vld [vmem:[%s2959_s0 + $0xf8] sm:$0xff]  ;;  %v1726_v28 = vcombine.high %v39_v22, %v43_v23 }
  0x6b   :  { %1487 = vmatmul.mubr.bf16.gmra.mrb[20].mxu0 %v1743_v26  ;;  %1312 = vmatpush1.bf16.msra.mxu1 %v2175_v30  ;;  %v1717_v26 = vcombine.low %v31_v14, %v35_v15  ;;  %v1730_v29 = vcombine.high %v41_v24, %v45_v25  ;;  %v47_v30 = vld [vmem:[%s2959_s0 + $0x108] sm:$0xff] }
  0x6c   :  { %1538 = vmatpush1.bf16.msra.mxu0 %v2178_v31  ;;  %1313 = vmatprep.subr.bf16.mxu1 %v2183_v32  ;;  %v51_v31 = vld [vmem:[%s2959_s0 + $0x128] sm:$0xff]  ;;  %v49_v32 = vld [vmem:[%s2959_s0 + $0x118] sm:$0xff] }
  0x6d   :  { %1539 = vmatprep.subr.bf16.mxu0 %v2186_v33  ;;  %1270 = vmatprep.mubr.bf16.mxu1 %v1748_v34  ;;  %v53_v33 = vld [vmem:[%s2959_s0 + $0x138] sm:$0xff]  ;;  %v1725_v34 = vcombine.low %v39_v22, %v43_v23 }
  0x6e   :  { %1496 = vmatprep.mubr.bf16.mxu0 %v1752_v35  ;;  %v1729_v35 = vcombine.low %v41_v24, %v45_v25  ;;  %v1737_v43 = vcombine.low %v49_v32, %v53_v33 }
  0x6f   :  { %1314 = vmatpush1.bf16.msra.mxu1 %v2181_v36  ;;  %v1734_v36 = vcombine.high %v47_v30, %v51_v31 }
  0x70   :  { %1540 = vmatpush1.bf16.msra.mxu0 %v2184_v37  ;;  %1315 = vmatprep.subr.bf16.mxu1 %v2189_v38  ;;  %v1738_v37 = vcombine.high %v49_v32, %v53_v33  ;;  %v55_v38 = vld [vmem:[%s2959_s0 + $0x148] sm:$0xff] }
  0x71   :  { %1541 = vmatprep.subr.bf16.mxu0 %v2192_v39  ;;  %v59_v39 = vld [vmem:[%s2959_s0 + $0x168] sm:$0xff] }
  0x72   :  { %1271 = vmatmul.mubr.bf16.gmra.mrb[24].mxu1 %v1747_v41  ;;  %v61_v41 = vld [vmem:[%s2959_s0 + $0x178] sm:$0xff]  ;;  %v1742_v44 = vcombine.high %v55_v38, %v59_v39 }
  0x73   :  { %1497 = vmatmul.mubr.bf16.gmra.mrb[24].mxu0 %v1751_v42  ;;  %1316 = vmatpush1.bf16.msra.mxu1 %v2187_v46  ;;  %v1733_v42 = vcombine.low %v47_v30, %v51_v31  ;;  %v1746_v45 = vcombine.high %v57_v40, %v61_v41  ;;  %v63_v46 = vld [vmem:[%s2959_s0 + $0x188] sm:$0xff] }
  0x74   :  { %1542 = vmatpush1.bf16.msra.mxu0 %v2190_v47  ;;  %1317 = vmatprep.subr.bf16.mxu1 %v2195_v48  ;;  %v67_v47 = vld [vmem:[%s2959_s0 + $0x1a8] sm:$0xff]  ;;  %v65_v48 = vld [vmem:[%s2959_s0 + $0x198] sm:$0xff] }
  0x75   :  { %1543 = vmatprep.subr.bf16.mxu0 %v2198_v49  ;;  %1280 = vmatprep.mubr.bf16.mxu1 %v1756_v50  ;;  %v69_v49 = vld [vmem:[%s2959_s0 + $0x1b8] sm:$0xff]  ;;  %v1741_v50 = vcombine.low %v55_v38, %v59_v39 }
  0x76   :  { %1506 = vmatprep.mubr.bf16.mxu0 %v1760_v51  ;;  %v1745_v51 = vcombine.low %v57_v40, %v61_v41  ;;  %v1753_v59 = vcombine.low %v65_v48, %v69_v49 }
  0x77   :  { %1318 = vmatpush1.bf16.msra.mxu1 %v2193_v52  ;;  %v1750_v52 = vcombine.high %v63_v46, %v67_v47 }
  0x78   :  { %1544 = vmatpush1.bf16.msra.mxu0 %v2196_v53  ;;  %1319 = vmatprep.subr.bf16.mxu1 %v2201_v54  ;;  %v1754_v53 = vcombine.high %v65_v48, %v69_v49  ;;  %v71_v54 = vld [vmem:[%s2959_s0 + $0x1c8] sm:$0xff] }
  0x79   :  { %1545 = vmatprep.subr.bf16.mxu0 %v2204_v55  ;;  %v75_v55 = vld [vmem:[%s2959_s0 + $0x1e8] sm:$0xff] }
  0x7a   :  { %1281 = vmatmul.mubr.bf16.gmra.mrb[28].mxu1 %v1755_v57  ;;  %v77_v57 = vld [vmem:[%s2959_s0 + $0x1f8] sm:$0xff]  ;;  %v1758_v60 = vcombine.high %v71_v54, %v75_v55 }
  0x7b   :  { %1507 = vmatmul.mubr.bf16.gmra.mrb[28].mxu0 %v1759_v58  ;;  %1320 = vmatpush1.bf16.msra.mxu1 %v2199_v62  ;;  %v1749_v58 = vcombine.low %v63_v46, %v67_v47  ;;  %v1762_v61 = vcombine.high %v73_v56, %v77_v57  ;;  %v1757_v62 = vcombine.low %v71_v54, %v75_v55 }
  0x7c   :  { %1546 = vmatpush1.bf16.msra.mxu0 %v2202_v63  ;;  %1321 = vmatprep.subr.bf16.mxu1 %v2207_v0  ;;  %v1761_v63 = vcombine.low %v73_v56, %v77_v57  ;;  %v208_v0 = vlaneseq }
  0x7d   :  { %1547 = vmatprep.subr.bf16.mxu0 %v2210_v1  ;;  %1323 = vmatprep.mubr.bf16.mxu1 %v1702_v2 }
  0x7e   :  { %1549 = vmatprep.mubr.bf16.mxu0 %v1706_v3  ;;  %v209_v1 = vshrl.u32 %v208_v0, 7  ;;  %v206_v3 = vld [vmem:[%s2960_s2] sm:$0x3] }
  0x7f   :  { %1322 = vmatpush1.bf16.msra.mxu1 %v2205_v4 }
  0x80   :  { %1548 = vmatpush1.bf16.msra.mxu0 %v2208_v5  ;;  %v210_v2 = vsub.s32 0, %v209_v1  ;;  %v214_v4 = vsub.s32 1, %v209_v1 }
  0x82   :  { %1324 = vmatmul.mubr.bf16.vlgmr.msra.gmra.mrb[0].mxu1 %v1701_v10  ;;  %v2810_v5 = vrot.slane %v206_v3, %v210_v2  ;;  %v2812_v6 = vrot.slane %v206_v3, %v214_v4 }
  0x83   :  { %1550 = vmatmul.mubr.bf16.vlgmr.msra.gmra.mrb[0].mxu0 %v1705_v11  ;;  %1333 = vmatprep.mubr.bf16.mxu1 %v1710_v12 }
  0x84   :  { %1559 = vmatprep.mubr.bf16.mxu0 %v1714_v13 }
  0x8a   :  { %1334 = vmatmul.mubr.bf16.gmra.mrb[4].mxu1 %v1709_v18 }
  0x8b   :  { %1560 = vmatmul.mubr.bf16.gmra.mrb[4].mxu0 %v1713_v19  ;;  %1343 = vmatprep.mubr.bf16.mxu1 %v1718_v20 }
  0x8c   :  { %1569 = vmatprep.mubr.bf16.mxu0 %v1722_v21 }
  0x92   :  { %1344 = vmatmul.mubr.bf16.gmra.mrb[8].mxu1 %v1717_v26 }
  0x93   :  { %1570 = vmatmul.mubr.bf16.gmra.mrb[8].mxu0 %v1721_v27  ;;  %1353 = vmatprep.mubr.bf16.mxu1 %v1726_v28 }
  0x94   :  { %1579 = vmatprep.mubr.bf16.mxu0 %v1730_v29 }
  0x9a   :  { %1354 = vmatmul.mubr.bf16.gmra.mrb[12].mxu1 %v1725_v34 }
  0x9b   :  { %1580 = vmatmul.mubr.bf16.gmra.mrb[12].mxu0 %v1729_v35  ;;  %1363 = vmatprep.mubr.bf16.mxu1 %v1734_v36 }
  0x9c   :  { %1589 = vmatprep.mubr.bf16.mxu0 %v1738_v37 }
  0xa2   :  { %1364 = vmatmul.mubr.bf16.gmra.mrb[16].mxu1 %v1733_v42 }
  0xa3   :  { %1590 = vmatmul.mubr.bf16.gmra.mrb[16].mxu0 %v1737_v43  ;;  %1373 = vmatprep.mubr.bf16.mxu1 %v1742_v44 }
  0xa4   :  { %1599 = vmatprep.mubr.bf16.mxu0 %v1746_v45 }
  0xaa   :  { %1374 = vmatmul.mubr.bf16.gmra.mrb[20].mxu1 %v1741_v50 }
  0xab   :  { %1600 = vmatmul.mubr.bf16.gmra.mrb[20].mxu0 %v1745_v51  ;;  %1383 = vmatprep.mubr.bf16.mxu1 %v1750_v52 }
  0xac   :  { %1609 = vmatprep.mubr.bf16.mxu0 %v1754_v53 }
  0xb2   :  { %1384 = vmatmul.mubr.bf16.gmra.mrb[24].mxu1 %v1749_v58 }
  0xb3   :  { %1610 = vmatmul.mubr.bf16.gmra.mrb[24].mxu0 %v1753_v59  ;;  %1393 = vmatprep.mubr.bf16.mxu1 %v1758_v60 }
  0xb4   :  { %1619 = vmatprep.mubr.bf16.mxu0 %v1762_v61 }
  0xba   :  { %1394 = vmatmul.mubr.bf16.gmra.mrb[28].mxu1 %v1757_v62 }
  0xbb   :  { %1620 = vmatmul.mubr.bf16.gmra.mrb[28].mxu0 %v1761_v63 }
 0x155   :  { %v1325_v7 = vpop.f32.mrb[0].mxu1 }
 0x156   :  { %v1551_v8 = vpop.f32.mrb[0].mxu0  ;;  %v1891_v9 = vadd.f32 %v1325_v7, %v2810_v5  ;;  %v1327_v10 = vpop.f32.mrb[1].mxu1 }
 0x157   :  { %v1553_v11 = vpop.f32.mrb[1].mxu0  ;;  %v1893_v12 = vadd.f32 %v1327_v10, %v2812_v6  ;;  %v1329_v13 = vpop.f32.mrb[2].mxu1 }
 0x158   :  { %v1555_v14 = vpop.f32.mrb[2].mxu0  ;;  %v1892_v15 = vadd.f32 %v1891_v9, %v1551_v8  ;;  %v1895_v16 = vadd.f32 %v1329_v13, %v2810_v5  ;;  %v1331_v17 = vpop.f32.mrb[3].mxu1 }
 0x159   :  { %v1557_v18 = vpop.f32.mrb[3].mxu0  ;;  %v1894_v19 = vadd.f32 %v1893_v12, %v1553_v11  ;;  %v1897_v20 = vadd.f32 %v1331_v17, %v2812_v6 }
 0x15a   :  { %v1630_v21 = vmax.f32 %v1892_v15, 0.0  ;;  %v1896_v22 = vadd.f32 %v1895_v16, %v1555_v14 }
 0x15b   :  { %v1631_v23 = vmax.f32 %v1894_v19, 0.0  ;;  %v1898_v24 = vadd.f32 %v1897_v20, %v1557_v18 }
 0x15c   :  { %1662 = vst [vmem:[%s2961_s3] sm:$0xff] %v1630_v21  ;;  %v1632_v25 = vmax.f32 %v1896_v22, 0.0 }
 0x15d   :  { %1664 = vst.msk [vmem:[%s2961_s3 + $0x8] sm:$0xff] %vm1663_vm0, %v1631_v23  ;;  %v1633_v26 = vmax.f32 %v1898_v24, 0.0  ;;  %v1335_v27 = vpop.f32.mrb[4].mxu1 }
 0x15e   :  { %v1561_v28 = vpop.f32.mrb[4].mxu0  ;;  %1665 = vst [vmem:[%s2961_s3 + $0x10] sm:$0xff] %v1632_v25  ;;  %v1899_v29 = vadd.f32 %v1335_v27, %v2810_v5  ;;  %v1337_v30 = vpop.f32.mrb[5].mxu1 }
 0x15f   :  { %v1563_v31 = vpop.f32.mrb[5].mxu0  ;;  %1666 = vst.msk [vmem:[%s2961_s3 + $0x18] sm:$0xff] %vm1663_vm0, %v1633_v26  ;;  %v1901_v32 = vadd.f32 %v1337_v30, %v2812_v6  ;;  %v1339_v33 = vpop.f32.mrb[6].mxu1 }
 0x160   :  { %v1565_v34 = vpop.f32.mrb[6].mxu0  ;;  %v1900_v35 = vadd.f32 %v1899_v29, %v1561_v28  ;;  %v1903_v36 = vadd.f32 %v1339_v33, %v2810_v5  ;;  %v1341_v37 = vpop.f32.mrb[7].mxu1 }
 0x161   :  { %v1567_v38 = vpop.f32.mrb[7].mxu0  ;;  %v1902_v39 = vadd.f32 %v1901_v32, %v1563_v31  ;;  %v1905_v40 = vadd.f32 %v1341_v37, %v2812_v6 }
 0x162   :  { %v1634_v41 = vmax.f32 %v1900_v35, 0.0  ;;  %v1904_v42 = vadd.f32 %v1903_v36, %v1565_v34 }
 0x163   :  { %v1635_v43 = vmax.f32 %v1902_v39, 0.0  ;;  %v1906_v44 = vadd.f32 %v1905_v40, %v1567_v38 }
 0x164   :  { %1667 = vst [vmem:[%s2961_s3 + $0x20] sm:$0xff] %v1634_v41  ;;  %v1636_v45 = vmax.f32 %v1904_v42, 0.0 }
 0x165   :  { %1668 = vst.msk [vmem:[%s2961_s3 + $0x28] sm:$0xff] %vm1663_vm0, %v1635_v43  ;;  %v1637_v46 = vmax.f32 %v1906_v44, 0.0  ;;  %v1345_v47 = vpop.f32.mrb[8].mxu1 }
 0x166   :  { %v1571_v48 = vpop.f32.mrb[8].mxu0  ;;  %1669 = vst [vmem:[%s2961_s3 + $0x30] sm:$0xff] %v1636_v45  ;;  %v1907_v49 = vadd.f32 %v1345_v47, %v2810_v5  ;;  %v1347_v50 = vpop.f32.mrb[9].mxu1 }
 0x167   :  { %v1573_v51 = vpop.f32.mrb[9].mxu0  ;;  %1670 = vst.msk [vmem:[%s2961_s3 + $0x38] sm:$0xff] %vm1663_vm0, %v1637_v46  ;;  %v1909_v52 = vadd.f32 %v1347_v50, %v2812_v6  ;;  %v1349_v53 = vpop.f32.mrb[10].mxu1 }
 0x168   :  { %v1575_v54 = vpop.f32.mrb[10].mxu0  ;;  %v1908_v55 = vadd.f32 %v1907_v49, %v1571_v48  ;;  %v1911_v56 = vadd.f32 %v1349_v53, %v2810_v5  ;;  %v1351_v57 = vpop.f32.mrb[11].mxu1 }
 0x169   :  { %v1577_v58 = vpop.f32.mrb[11].mxu0  ;;  %v1910_v59 = vadd.f32 %v1909_v52, %v1573_v51  ;;  %v1913_v60 = vadd.f32 %v1351_v57, %v2812_v6 }
 0x16a   :  { %v1638_v61 = vmax.f32 %v1908_v55, 0.0  ;;  %v1912_v62 = vadd.f32 %v1911_v56, %v1575_v54 }
 0x16b   :  { %v1639_v63 = vmax.f32 %v1910_v59, 0.0  ;;  %v1914_v0 = vadd.f32 %v1913_v60, %v1577_v58 }
 0x16c   :  { %1671 = vst [vmem:[%s2961_s3 + $0x40] sm:$0xff] %v1638_v61  ;;  %v1640_v1 = vmax.f32 %v1912_v62, 0.0 }
 0x16d   :  { %1672 = vst.msk [vmem:[%s2961_s3 + $0x48] sm:$0xff] %vm1663_vm0, %v1639_v63  ;;  %v1641_v2 = vmax.f32 %v1914_v0, 0.0  ;;  %v1355_v3 = vpop.f32.mrb[12].mxu1 }
 0x16e   :  { %v1581_v4 = vpop.f32.mrb[12].mxu0  ;;  %1673 = vst [vmem:[%s2961_s3 + $0x50] sm:$0xff] %v1640_v1  ;;  %v1915_v7 = vadd.f32 %v1355_v3, %v2810_v5  ;;  %v1357_v8 = vpop.f32.mrb[13].mxu1 }
 0x16f   :  { %v1583_v9 = vpop.f32.mrb[13].mxu0  ;;  %1674 = vst.msk [vmem:[%s2961_s3 + $0x58] sm:$0xff] %vm1663_vm0, %v1641_v2  ;;  %v1917_v10 = vadd.f32 %v1357_v8, %v2812_v6  ;;  %v1359_v11 = vpop.f32.mrb[14].mxu1 }
 0x170   :  { %v1585_v12 = vpop.f32.mrb[14].mxu0  ;;  %v1916_v13 = vadd.f32 %v1915_v7, %v1581_v4  ;;  %v1919_v14 = vadd.f32 %v1359_v11, %v2810_v5  ;;  %v1361_v15 = vpop.f32.mrb[15].mxu1 }
 0x171   :  { %v1587_v16 = vpop.f32.mrb[15].mxu0  ;;  %v1918_v17 = vadd.f32 %v1917_v10, %v1583_v9  ;;  %v1921_v18 = vadd.f32 %v1361_v15, %v2812_v6 }
 0x172   :  { %v1642_v19 = vmax.f32 %v1916_v13, 0.0  ;;  %v1920_v20 = vadd.f32 %v1919_v14, %v1585_v12 }
 0x173   :  { %v1643_v21 = vmax.f32 %v1918_v17, 0.0  ;;  %v1922_v22 = vadd.f32 %v1921_v18, %v1587_v16 }
 0x174   :  { %1675 = vst [vmem:[%s2961_s3 + $0x60] sm:$0xff] %v1642_v19  ;;  %v1644_v23 = vmax.f32 %v1920_v20, 0.0 }
 0x175   :  { %1676 = vst.msk [vmem:[%s2961_s3 + $0x68] sm:$0xff] %vm1663_vm0, %v1643_v21  ;;  %v1645_v24 = vmax.f32 %v1922_v22, 0.0  ;;  %v1365_v25 = vpop.f32.mrb[16].mxu1 }
 0x176   :  { %v1591_v26 = vpop.f32.mrb[16].mxu0  ;;  %1677 = vst [vmem:[%s2961_s3 + $0x70] sm:$0xff] %v1644_v23  ;;  %v1923_v27 = vadd.f32 %v1365_v25, %v2810_v5  ;;  %v1367_v28 = vpop.f32.mrb[17].mxu1 }
 0x177   :  { %v1593_v29 = vpop.f32.mrb[17].mxu0  ;;  %1678 = vst.msk [vmem:[%s2961_s3 + $0x78] sm:$0xff] %vm1663_vm0, %v1645_v24  ;;  %v1925_v30 = vadd.f32 %v1367_v28, %v2812_v6  ;;  %v1369_v31 = vpop.f32.mrb[18].mxu1 }
 0x178   :  { %v1595_v32 = vpop.f32.mrb[18].mxu0  ;;  %v1924_v33 = vadd.f32 %v1923_v27, %v1591_v26  ;;  %v1927_v34 = vadd.f32 %v1369_v31, %v2810_v5  ;;  %v1371_v35 = vpop.f32.mrb[19].mxu1 }
 0x179   :  { %v1597_v36 = vpop.f32.mrb[19].mxu0  ;;  %v1926_v37 = vadd.f32 %v1925_v30, %v1593_v29  ;;  %v1929_v38 = vadd.f32 %v1371_v35, %v2812_v6 }
 0x17a   :  { %v1646_v39 = vmax.f32 %v1924_v33, 0.0  ;;  %v1928_v40 = vadd.f32 %v1927_v34, %v1595_v32 }
 0x17b   :  { %v1647_v41 = vmax.f32 %v1926_v37, 0.0  ;;  %v1930_v42 = vadd.f32 %v1929_v38, %v1597_v36 }
 0x17c   :  { %1679 = vst [vmem:[%s2961_s3 + $0x80] sm:$0xff] %v1646_v39  ;;  %v1648_v43 = vmax.f32 %v1928_v40, 0.0 }
 0x17d   :  { %1680 = vst.msk [vmem:[%s2961_s3 + $0x88] sm:$0xff] %vm1663_vm0, %v1647_v41  ;;  %v1649_v44 = vmax.f32 %v1930_v42, 0.0  ;;  %v1375_v45 = vpop.f32.mrb[20].mxu1 }
 0x17e   :  { %v1601_v46 = vpop.f32.mrb[20].mxu0  ;;  %1681 = vst [vmem:[%s2961_s3 + $0x90] sm:$0xff] %v1648_v43  ;;  %v1931_v47 = vadd.f32 %v1375_v45, %v2810_v5  ;;  %v1377_v48 = vpop.f32.mrb[21].mxu1 }
 0x17f   :  { %v1603_v49 = vpop.f32.mrb[21].mxu0  ;;  %1682 = vst.msk [vmem:[%s2961_s3 + $0x98] sm:$0xff] %vm1663_vm0, %v1649_v44  ;;  %v1933_v50 = vadd.f32 %v1377_v48, %v2812_v6  ;;  %v1379_v51 = vpop.f32.mrb[22].mxu1 }
 0x180   :  { %v1605_v52 = vpop.f32.mrb[22].mxu0  ;;  %v1932_v53 = vadd.f32 %v1931_v47, %v1601_v46  ;;  %v1935_v54 = vadd.f32 %v1379_v51, %v2810_v5  ;;  %v1381_v55 = vpop.f32.mrb[23].mxu1 }
 0x181   :  { %v1607_v56 = vpop.f32.mrb[23].mxu0  ;;  %v1934_v57 = vadd.f32 %v1933_v50, %v1603_v49  ;;  %v1937_v58 = vadd.f32 %v1381_v55, %v2812_v6 }
 0x182   :  { %v1650_v59 = vmax.f32 %v1932_v53, 0.0  ;;  %v1936_v60 = vadd.f32 %v1935_v54, %v1605_v52 }
 0x183   :  { %v1651_v61 = vmax.f32 %v1934_v57, 0.0  ;;  %v1938_v62 = vadd.f32 %v1937_v58, %v1607_v56 }
 0x184   :  { %1683 = vst [vmem:[%s2961_s3 + $0xa0] sm:$0xff] %v1650_v59  ;;  %v1652_v63 = vmax.f32 %v1936_v60, 0.0 }
 0x185   :  { %1684 = vst.msk [vmem:[%s2961_s3 + $0xa8] sm:$0xff] %vm1663_vm0, %v1651_v61  ;;  %v1653_v0 = vmax.f32 %v1938_v62, 0.0  ;;  %v1385_v1 = vpop.f32.mrb[24].mxu1 }
 0x186   :  { %v1611_v2 = vpop.f32.mrb[24].mxu0  ;;  %1685 = vst [vmem:[%s2961_s3 + $0xb0] sm:$0xff] %v1652_v63  ;;  %v1939_v3 = vadd.f32 %v1385_v1, %v2810_v5  ;;  %v1387_v4 = vpop.f32.mrb[25].mxu1 }
 0x187   :  { %v1613_v7 = vpop.f32.mrb[25].mxu0  ;;  %1686 = vst.msk [vmem:[%s2961_s3 + $0xb8] sm:$0xff] %vm1663_vm0, %v1653_v0  ;;  %v1941_v8 = vadd.f32 %v1387_v4, %v2812_v6  ;;  %v1389_v9 = vpop.f32.mrb[26].mxu1 }
 0x188   :  { %v1615_v10 = vpop.f32.mrb[26].mxu0  ;;  %v1940_v11 = vadd.f32 %v1939_v3, %v1611_v2  ;;  %v1943_v12 = vadd.f32 %v1389_v9, %v2810_v5  ;;  %v1391_v13 = vpop.f32.mrb[27].mxu1 }
 0x189   :  { %v1617_v14 = vpop.f32.mrb[27].mxu0  ;;  %v1942_v15 = vadd.f32 %v1941_v8, %v1613_v7  ;;  %v1945_v16 = vadd.f32 %v1391_v13, %v2812_v6 }
 0x18a   :  { %v1654_v17 = vmax.f32 %v1940_v11, 0.0  ;;  %v1944_v18 = vadd.f32 %v1943_v12, %v1615_v10 }
 0x18b   :  { %v1655_v19 = vmax.f32 %v1942_v15, 0.0  ;;  %v1946_v20 = vadd.f32 %v1945_v16, %v1617_v14 }
 0x18c   :  { %1687 = vst [vmem:[%s2961_s3 + $0xc0] sm:$0xff] %v1654_v17  ;;  %v1656_v21 = vmax.f32 %v1944_v18, 0.0 }
 0x18d   :  { %1688 = vst.msk [vmem:[%s2961_s3 + $0xc8] sm:$0xff] %vm1663_vm0, %v1655_v19  ;;  %v1657_v22 = vmax.f32 %v1946_v20, 0.0  ;;  %v1395_v23 = vpop.f32.mrb[28].mxu1 }
 0x18e   :  { %v1621_v24 = vpop.f32.mrb[28].mxu0  ;;  %1689 = vst [vmem:[%s2961_s3 + $0xd0] sm:$0xff] %v1656_v21  ;;  %v1947_v25 = vadd.f32 %v1395_v23, %v2810_v5  ;;  %v1397_v26 = vpop.f32.mrb[29].mxu1 }
 0x18f   :  { %v1623_v27 = vpop.f32.mrb[29].mxu0  ;;  %1690 = vst.msk [vmem:[%s2961_s3 + $0xd8] sm:$0xff] %vm1663_vm0, %v1657_v22  ;;  %v1949_v28 = vadd.f32 %v1397_v26, %v2812_v6  ;;  %v1399_v29 = vpop.f32.mrb[30].mxu1 }
 0x190   :  { %v1625_v30 = vpop.f32.mrb[30].mxu0  ;;  %v1948_v31 = vadd.f32 %v1947_v25, %v1621_v24  ;;  %v1951_v32 = vadd.f32 %v1399_v29, %v2810_v5  ;;  %v1401_v33 = vpop.f32.mrb[31].mxu1 }
 0x191   :  { %v1627_v34 = vpop.f32.mrb[31].mxu0  ;;  %v1950_v35 = vadd.f32 %v1949_v28, %v1623_v27  ;;  %v1953_v36 = vadd.f32 %v1401_v33, %v2812_v6 }
 0x192   :  { %v1658_v37 = vmax.f32 %v1948_v31, 0.0  ;;  %v1952_v38 = vadd.f32 %v1951_v32, %v1625_v30 }
 0x193   :  { %v1659_v39 = vmax.f32 %v1950_v35, 0.0  ;;  %v1954_v40 = vadd.f32 %v1953_v36, %v1627_v34 }
 0x194   :  { %1691 = vst [vmem:[%s2961_s3 + $0xe0] sm:$0xff] %v1658_v37  ;;  %v1660_v41 = vmax.f32 %v1952_v38, 0.0 }
 0x195   :  { %1692 = vst.msk [vmem:[%s2961_s3 + $0xe8] sm:$0xff] %vm1663_vm0, %v1659_v39  ;;  %v1661_v5 = vmax.f32 %v1954_v40, 0.0 }
 0x196   :  { %1693 = vst [vmem:[%s2961_s3 + $0xf0] sm:$0xff] %v1660_v41 }
 0x197   :  { %1694 = vst.msk [vmem:[%s2961_s3 + $0xf8] sm:$0xff] %vm1663_vm0, %v1661_v5 }

// kernel: conv_vlae_encoder_celeba_forward.7
= control target key start
LH: loop header
LB: loop body
LE: loop exit
PB: predicated region body
PF: predicated region fallthrough
CT: control target
= control target key end

     0   :  { %s2125_s1 = inlined_call_operand.vmem [shape: bf16[1024,128], index: 1, kind: input, shape index: {}]   ;;  %s2126_s0 = inlined_call_operand.vmem [shape: bf16[104,1024], index: 0, kind: input, shape index: {}]   ;;  %s2127_s2 = inlined_call_operand.vmem [shape: f32[1,128], index: 2, kind: input, shape index: {}]   ;;  %s2128_s3 = inlined_call_operand.vmem [shape: f32[104,128], index: 3, kind: output, shape index: {}]  }
   0x1   :  { %v1589_v0 = vld [vmem:[%s2125_s1 + $0x40] sm:$0xff]   ;;  %v1593_v4 = vld [vmem:[%s2125_s1 + $0x48] sm:$0xff]   ;;  %v1597_v8 = vld [vmem:[%s2125_s1 + $0x50] sm:$0xff]  }
   0x2   :  { %v1590_v1 = vld [vmem:[%s2125_s1 + $0xc0] sm:$0xff]   ;;  %1357 = vmatprep.subr.bf16.mxu0 %v1589_v0  ;;  %v1594_v5 = vld [vmem:[%s2125_s1 + $0xc8] sm:$0xff]   ;;  %v1598_v9 = vld [vmem:[%s2125_s1 + $0xd0] sm:$0xff]  }
   0x3   :  { %v1591_v2 = vld [vmem:[%s2125_s1] sm:$0xff]   ;;  %1415 = vmatprep.subr.bf16.mxu1 %v1590_v1  ;;  %v1595_v6 = vld [vmem:[%s2125_s1 + $0x8] sm:$0xff]   ;;  %v1599_v10 = vld [vmem:[%s2125_s1 + $0x10] sm:$0xff]  }
   0x4   :  { %v1592_v3 = vld [vmem:[%s2125_s1 + $0x80] sm:$0xff]   ;;  %1358 = vmatpush3.bf16.msra.mxu0 %v1591_v2  ;;  %v1596_v7 = vld [vmem:[%s2125_s1 + $0x88] sm:$0xff]   ;;  %v1600_v11 = vld [vmem:[%s2125_s1 + $0x90] sm:$0xff]  }
   0x5   :  { %1416 = vmatpush3.bf16.msra.mxu1 %v1592_v3  ;;  %1359 = vmatprep.subr.bf16.mxu0 %v1593_v4  ;;  %v1601_v12 = vld [vmem:[%s2125_s1 + $0x58] sm:$0xff]   ;;  %v1605_v16 = vld [vmem:[%s2125_s1 + $0x60] sm:$0xff]   ;;  %v1609_v20 = vld [vmem:[%s2125_s1 + $0x68] sm:$0xff]  }
   0x6   :  { %1417 = vmatprep.subr.bf16.mxu1 %v1594_v5  ;;  %v1602_v13 = vld [vmem:[%s2125_s1 + $0xd8] sm:$0xff]   ;;  %v1606_v17 = vld [vmem:[%s2125_s1 + $0xe0] sm:$0xff]   ;;  %v1610_v21 = vld [vmem:[%s2125_s1 + $0xe8] sm:$0xff]  }
   0x7   :  { %v1603_v14 = vld [vmem:[%s2125_s1 + $0x18] sm:$0xff]   ;;  %v1607_v18 = vld [vmem:[%s2125_s1 + $0x20] sm:$0xff]   ;;  %v1611_v22 = vld [vmem:[%s2125_s1 + $0x28] sm:$0xff]  }
   0x8   :  { %1360 = vmatpush3.bf16.msra.mxu0 %v1595_v6  ;;  %v1604_v15 = vld [vmem:[%s2125_s1 + $0x98] sm:$0xff]   ;;  %v1608_v19 = vld [vmem:[%s2125_s1 + $0xa0] sm:$0xff]   ;;  %v1612_v23 = vld [vmem:[%s2125_s1 + $0xa8] sm:$0xff]  }
   0x9   :  { %1418 = vmatpush3.bf16.msra.mxu1 %v1596_v7  ;;  %1361 = vmatprep.subr.bf16.mxu0 %v1597_v8  ;;  %v1613_v24 = vld [vmem:[%s2125_s1 + $0x70] sm:$0xff]   ;;  %v1617_v28 = vld [vmem:[%s2125_s1 + $0x78] sm:$0xff]   ;;  %v15_v32 = vld [vmem:[%s2126_s0] sm:$0xff] }
   0xa   :  { %1419 = vmatprep.subr.bf16.mxu1 %v1598_v9  ;;  %v1614_v25 = vld [vmem:[%s2125_s1 + $0xf0] sm:$0xff]   ;;  %v1618_v29 = vld [vmem:[%s2125_s1 + $0xf8] sm:$0xff]   ;;  %v19_v33 = vld [vmem:[%s2126_s0 + $0x20] sm:$0xff] }
   0xb   :  { %v1615_v26 = vld [vmem:[%s2125_s1 + $0x30] sm:$0xff]   ;;  %v1619_v30 = vld [vmem:[%s2125_s1 + $0x38] sm:$0xff]   ;;  %v16_v34 = vld [vmem:[%s2126_s0 + $0x8] sm:$0xff]  ;;  %v1237_v35 = vcombine.low %v15_v32, %v19_v33  ;;  %v1238_v36 = vcombine.high %v15_v32, %v19_v33 }
   0xc   :  { %1362 = vmatpush3.bf16.msra.mxu0 %v1599_v10  ;;  %v1616_v27 = vld [vmem:[%s2125_s1 + $0xb0] sm:$0xff]   ;;  %v1620_v31 = vld [vmem:[%s2125_s1 + $0xb8] sm:$0xff]   ;;  %v20_v37 = vld [vmem:[%s2126_s0 + $0x28] sm:$0xff] }
   0xd   :  { %1420 = vmatpush3.bf16.msra.mxu1 %v1600_v11  ;;  %1363 = vmatprep.subr.bf16.mxu0 %v1601_v12  ;;  %v1239_v38 = vcombine.low %v16_v34, %v20_v37  ;;  %v1240_v39 = vcombine.high %v16_v34, %v20_v37  ;;  %v1621_v40 = vld [vmem:[%s2125_s1 + $0x140] sm:$0xff]   ;;  %v24_v47 = vld [vmem:[%s2126_s0 + $0x48] sm:$0xff]  ;;  %v1629_v56 = vld [vmem:[%s2125_s1 + $0x150] sm:$0xff]  }
   0xe   :  { %1421 = vmatprep.subr.bf16.mxu1 %v1602_v13  ;;  %886 = vmatprep.mubr.bf16.mxu0 %v1238_v36  ;;  %v1622_v41 = vld [vmem:[%s2125_s1 + $0x100] sm:$0xff]   ;;  %v28_v48 = vld [vmem:[%s2126_s0 + $0x68] sm:$0xff]  ;;  %v1630_v63 = vld [vmem:[%s2125_s1 + $0x110] sm:$0xff]  }
   0xf   :  { %974 = vmatprep.mubr.bf16.mxu1 %v1240_v39  ;;  %v1623_v42 = vld [vmem:[%s2125_s1 + $0x1c0] sm:$0xff]   ;;  %v1248_v49 = vcombine.high %v24_v47, %v28_v48  ;;  %v1625_v50 = vld [vmem:[%s2125_s1 + $0x148] sm:$0xff]   ;;  %v1247_v53 = vcombine.low %v24_v47, %v28_v48  ;;  %v1631_v0 = vld [vmem:[%s2125_s1 + $0x1d0] sm:$0xff]  }
  0x10   :  { %1364 = vmatpush3.bf16.msra.mxu0 %v1603_v14  ;;  %v1624_v43 = vld [vmem:[%s2125_s1 + $0x180] sm:$0xff]   ;;  %v1626_v52 = vld [vmem:[%s2125_s1 + $0x108] sm:$0xff]   ;;  %v1632_v1 = vld [vmem:[%s2125_s1 + $0x190] sm:$0xff]  }
  0x11   :  { %1422 = vmatpush3.bf16.msra.mxu1 %v1604_v15  ;;  %1365 = vmatprep.subr.bf16.mxu0 %v1605_v16  ;;  %v23_v44 = vld [vmem:[%s2126_s0 + $0x40] sm:$0xff]  ;;  %v1627_v54 = vld [vmem:[%s2125_s1 + $0x1c8] sm:$0xff]   ;;  %v1633_v3 = vld [vmem:[%s2125_s1 + $0x158] sm:$0xff]  }
  0x12   :  { %1423 = vmatprep.subr.bf16.mxu1 %v1606_v17  ;;  %v27_v45 = vld [vmem:[%s2126_s0 + $0x60] sm:$0xff]  ;;  %v1628_v55 = vld [vmem:[%s2125_s1 + $0x188] sm:$0xff]   ;;  %v1634_v5 = vld [vmem:[%s2125_s1 + $0x118] sm:$0xff]  }
  0x13   :  { %v1246_v46 = vcombine.high %v23_v44, %v27_v45  ;;  %v1245_v51 = vcombine.low %v23_v44, %v27_v45  ;;  %v31_v57 = vld [vmem:[%s2126_s0 + $0x80] sm:$0xff]  ;;  %v32_v59 = vld [vmem:[%s2126_s0 + $0x88] sm:$0xff]  ;;  %v1635_v12 = vld [vmem:[%s2125_s1 + $0x1d8] sm:$0xff]  }
  0x14   :  { %1366 = vmatpush3.bf16.msra.mxu0 %v1607_v18  ;;  %v35_v58 = vld [vmem:[%s2126_s0 + $0xa0] sm:$0xff]  ;;  %v36_v60 = vld [vmem:[%s2126_s0 + $0xa8] sm:$0xff]  ;;  %v1636_v13 = vld [vmem:[%s2125_s1 + $0x198] sm:$0xff]  }
  0x15   :  { %1424 = vmatpush3.bf16.msra.mxu1 %v1608_v19  ;;  %1367 = vmatprep.subr.bf16.mxu0 %v1609_v20  ;;  %v1254_v61 = vcombine.high %v31_v57, %v35_v58  ;;  %v1256_v62 = vcombine.high %v32_v59, %v36_v60  ;;  %v1253_v2 = vcombine.low %v31_v57, %v35_v58  ;;  %v39_v6 = vld [vmem:[%s2126_s0 + $0xc0] sm:$0xff]  ;;  %v40_v8 = vld [vmem:[%s2126_s0 + $0xc8] sm:$0xff]  ;;  %v1653_v44 = vld [vmem:[%s2125_s1 + $0x178] sm:$0xff]  }
  0x16   :  { %1425 = vmatprep.subr.bf16.mxu1 %v1610_v21  ;;  %v1255_v4 = vcombine.low %v32_v59, %v36_v60  ;;  %v43_v7 = vld [vmem:[%s2126_s0 + $0xe0] sm:$0xff]  ;;  %v44_v10 = vld [vmem:[%s2126_s0 + $0xe8] sm:$0xff]  ;;  %v1654_v45 = vld [vmem:[%s2125_s1 + $0x138] sm:$0xff]  }
  0x17   :  { %v1262_v9 = vcombine.high %v39_v6, %v43_v7  ;;  %v1264_v11 = vcombine.high %v40_v8, %v44_v10  ;;  %v1637_v14 = vld [vmem:[%s2125_s1 + $0x160] sm:$0xff]   ;;  %v1261_v16 = vcombine.low %v39_v6, %v43_v7  ;;  %v1263_v20 = vcombine.low %v40_v8, %v44_v10  ;;  %v56_v32 = vld [vmem:[%s2126_s0 + $0x148] sm:$0xff]  ;;  %v1656_v48 = vld [vmem:[%s2125_s1 + $0x1b8] sm:$0xff]  }
  0x18   :  { %1368 = vmatpush3.bf16.msra.mxu0 %v1611_v22  ;;  %v1638_v15 = vld [vmem:[%s2125_s1 + $0x120] sm:$0xff]   ;;  %v48_v22 = vld [vmem:[%s2126_s0 + $0x108] sm:$0xff]  ;;  %v25_v60 = vld [vmem:[%s2126_s0 + $0x50] sm:$0xff] }
  0x19   :  { %1426 = vmatpush3.bf16.msra.mxu1 %v1612_v23  ;;  %1369 = vmatprep.subr.bf16.mxu0 %v1613_v24  ;;  %v1639_v17 = vld [vmem:[%s2125_s1 + $0x1e0] sm:$0xff]   ;;  %v52_v23 = vld [vmem:[%s2126_s0 + $0x128] sm:$0xff]  ;;  %v34_v6 = vld [vmem:[%s2126_s0 + $0x98] sm:$0xff] }
  0x1a   :  { %1427 = vmatprep.subr.bf16.mxu1 %v1614_v25  ;;  %v47_v18 = vld [vmem:[%s2126_s0 + $0x100] sm:$0xff]  ;;  %v1272_v24 = vcombine.high %v48_v22, %v52_v23  ;;  %v60_v33 = vld [vmem:[%s2126_s0 + $0x168] sm:$0xff]  ;;  %v1271_v36 = vcombine.low %v48_v22, %v52_v23  ;;  %v38_v7 = vld [vmem:[%s2126_s0 + $0xb8] sm:$0xff] }
  0x1b   :  { %v51_v19 = vld [vmem:[%s2126_s0 + $0x120] sm:$0xff]  ;;  %v1280_v39 = vcombine.high %v56_v32, %v60_v33  ;;  %v50_v22 = vld [vmem:[%s2126_s0 + $0x118] sm:$0xff] }
  0x1c   :  { %1370 = vmatpush3.bf16.msra.mxu0 %v1615_v26  ;;  %v1270_v21 = vcombine.high %v47_v18, %v51_v19  ;;  %v1640_v25 = vld [vmem:[%s2125_s1 + $0x1a0] sm:$0xff]   ;;  %v1641_v26 = vld [vmem:[%s2125_s1 + $0x168] sm:$0xff]   ;;  %v1269_v34 = vcombine.low %v47_v18, %v51_v19  ;;  %v54_v23 = vld [vmem:[%s2126_s0 + $0x138] sm:$0xff] }
  0x1d   :  { %1428 = vmatpush3.bf16.msra.mxu1 %v1616_v27  ;;  %1371 = vmatprep.subr.bf16.mxu0 %v1617_v28  ;;  %v1642_v27 = vld [vmem:[%s2125_s1 + $0x128] sm:$0xff]  }
  0x1e   :  { %1429 = vmatprep.subr.bf16.mxu1 %v1618_v29  ;;  %v1643_v28 = vld [vmem:[%s2125_s1 + $0x1e8] sm:$0xff]  }
  0x1f   :  { %v1644_v29 = vld [vmem:[%s2125_s1 + $0x1a8] sm:$0xff]  }
  0x20   :  { %1372 = vmatpush3.bf16.msra.mxu0 %v1619_v30  ;;  %v55_v30 = vld [vmem:[%s2126_s0 + $0x140] sm:$0xff] }
  0x21   :  { %1430 = vmatpush3.bf16.msra.mxu1 %v1620_v31  ;;  %1473 = vmatprep.subr.bf16.mxu0 %v1621_v40  ;;  %v59_v31 = vld [vmem:[%s2126_s0 + $0x160] sm:$0xff]  ;;  %v1647_v40 = vld [vmem:[%s2125_s1 + $0x1f0] sm:$0xff]  }
  0x22   :  { %1531 = vmatprep.subr.bf16.mxu1 %v1623_v42  ;;  %v1278_v37 = vcombine.high %v55_v30, %v59_v31  ;;  %v63_v42 = vld [vmem:[%s2126_s0 + $0x180] sm:$0xff]  ;;  %v1277_v47 = vcombine.low %v55_v30, %v59_v31  ;;  %v58_v30 = vld [vmem:[%s2126_s0 + $0x158] sm:$0xff] }
  0x23   :  { %887 = vmatmul.mubr.bf16.vlgmr.msra.gmra.mrb[0].mxu0 %v1237_v35  ;;  %v1645_v35 = vld [vmem:[%s2125_s1 + $0x170] sm:$0xff]   ;;  %v62_v31 = vld [vmem:[%s2126_s0 + $0x178] sm:$0xff] }
  0x24   :  { %975 = vmatmul.mubr.bf16.vlgmr.msra.gmra.mrb[0].mxu1 %v1239_v38  ;;  %1474 = vmatpush3.bf16.msra.mxu0 %v1622_v41  ;;  %v1646_v38 = vld [vmem:[%s2125_s1 + $0x130] sm:$0xff]  }
  0x25   :  { %1532 = vmatpush3.bf16.msra.mxu1 %v1624_v43  ;;  %894 = vmatprep.mubr.bf16.mxu0 %v1246_v46  ;;  %v1648_v41 = vld [vmem:[%s2125_s1 + $0x1b0] sm:$0xff]   ;;  %v64_v43 = vld [vmem:[%s2126_s0 + $0x188] sm:$0xff]  ;;  %v1655_v46 = vld [vmem:[%s2125_s1 + $0x1f8] sm:$0xff]  }
  0x26   :  { %982 = vmatprep.mubr.bf16.mxu1 %v1248_v49  ;;  %1475 = vmatprep.subr.bf16.mxu0 %v1625_v50  ;;  %v1279_v49 = vcombine.low %v56_v32, %v60_v33  ;;  %v1286_v50 = vcombine.high %v63_v42, %v63_v42  ;;  %v1287_v57 = vcombine.low %v64_v43, %v64_v43 }
  0x27   :  { %1533 = vmatprep.subr.bf16.mxu1 %v1627_v54  ;;  %v18_v54 = vld [vmem:[%s2126_s0 + $0x18] sm:$0xff]  ;;  %v1275_v33 = vcombine.low %v50_v22, %v54_v23 }
  0x28   :  { %1476 = vmatpush3.bf16.msra.mxu0 %v1626_v52  ;;  %v17_v52 = vld [vmem:[%s2126_s0 + $0x10] sm:$0xff] }
  0x29   :  { %1534 = vmatpush3.bf16.msra.mxu1 %v1628_v55  ;;  %1477 = vmatprep.subr.bf16.mxu0 %v1629_v56  ;;  %v22_v55 = vld [vmem:[%s2126_s0 + $0x38] sm:$0xff]  ;;  %v1285_v56 = vcombine.low %v63_v42, %v63_v42 }
  0x2a   :  { %1535 = vmatprep.subr.bf16.mxu1 %v1631_v0  ;;  %v1244_v59 = vcombine.high %v18_v54, %v22_v55 }
  0x2b   :  { %895 = vmatmul.mubr.bf16.gmra.mrb[4].mxu0 %v1245_v51  ;;  %v1288_v51 = vcombine.high %v64_v43, %v64_v43 }
  0x2c   :  { %983 = vmatmul.mubr.bf16.gmra.mrb[4].mxu1 %v1247_v53  ;;  %902 = vmatprep.mubr.bf16.mxu0 %v1254_v61  ;;  %v21_v53 = vld [vmem:[%s2126_s0 + $0x30] sm:$0xff] }
  0x2d   :  { %990 = vmatprep.mubr.bf16.mxu1 %v1256_v62  ;;  %1478 = vmatpush3.bf16.msra.mxu0 %v1630_v63  ;;  %v1242_v58 = vcombine.high %v17_v52, %v21_v53  ;;  %v29_v61 = vld [vmem:[%s2126_s0 + $0x70] sm:$0xff]  ;;  %v26_v62 = vld [vmem:[%s2126_s0 + $0x58] sm:$0xff]  ;;  %v1241_v0 = vcombine.low %v17_v52, %v21_v53 }
  0x2e   :  { %1536 = vmatpush3.bf16.msra.mxu1 %v1632_v1  ;;  %1479 = vmatprep.subr.bf16.mxu0 %v1633_v3  ;;  %v30_v63 = vld [vmem:[%s2126_s0 + $0x78] sm:$0xff]  ;;  %v1243_v1 = vcombine.low %v18_v54, %v22_v55  ;;  %v1249_v8 = vcombine.low %v25_v60, %v29_v61 }
  0x2f   :  { %1537 = vmatprep.subr.bf16.mxu1 %v1635_v12  ;;  %v1252_v3 = vcombine.high %v26_v62, %v30_v63  ;;  %v41_v12 = vld [vmem:[%s2126_s0 + $0xd0] sm:$0xff] }
  0x31   :  { %1480 = vmatpush3.bf16.msra.mxu0 %v1634_v5  ;;  %v37_v5 = vld [vmem:[%s2126_s0 + $0xb0] sm:$0xff] }
  0x32   :  { %1538 = vmatpush3.bf16.msra.mxu1 %v1636_v13  ;;  %1481 = vmatprep.subr.bf16.mxu0 %v1637_v14  ;;  %v45_v13 = vld [vmem:[%s2126_s0 + $0xf0] sm:$0xff]  ;;  %v42_v14 = vld [vmem:[%s2126_s0 + $0xd8] sm:$0xff] }
  0x33   :  { %903 = vmatmul.mubr.bf16.gmra.mrb[8].mxu0 %v1253_v2  ;;  %1539 = vmatprep.subr.bf16.mxu1 %v1639_v17  ;;  %v1250_v2 = vcombine.high %v25_v60, %v29_v61  ;;  %v1259_v17 = vcombine.low %v34_v6, %v38_v7  ;;  %v1266_v18 = vcombine.high %v41_v12, %v45_v13 }
  0x34   :  { %991 = vmatmul.mubr.bf16.gmra.mrb[8].mxu1 %v1255_v4  ;;  %910 = vmatprep.mubr.bf16.mxu0 %v1262_v9  ;;  %v33_v4 = vld [vmem:[%s2126_s0 + $0x90] sm:$0xff]  ;;  %v1251_v9 = vcombine.low %v26_v62, %v30_v63 }
  0x35   :  { %998 = vmatprep.mubr.bf16.mxu1 %v1264_v11  ;;  %1482 = vmatpush3.bf16.msra.mxu0 %v1638_v15  ;;  %v1258_v10 = vcombine.high %v33_v4, %v37_v5  ;;  %v1260_v11 = vcombine.high %v34_v6, %v38_v7  ;;  %v46_v15 = vld [vmem:[%s2126_s0 + $0xf8] sm:$0xff] }
  0x36   :  { %1540 = vmatpush3.bf16.msra.mxu1 %v1640_v25  ;;  %1483 = vmatprep.subr.bf16.mxu0 %v1641_v26  ;;  %v1268_v19 = vcombine.high %v42_v14, %v46_v15  ;;  %v1267_v25 = vcombine.low %v42_v14, %v46_v15 }
  0x37   :  { %1541 = vmatprep.subr.bf16.mxu1 %v1643_v28  ;;  %v57_v28 = vld [vmem:[%s2126_s0 + $0x150] sm:$0xff] }
  0x39   :  { %1484 = vmatpush3.bf16.msra.mxu0 %v1642_v27  ;;  %v1276_v27 = vcombine.high %v50_v22, %v54_v23 }
  0x3a   :  { %1542 = vmatpush3.bf16.msra.mxu1 %v1644_v29  ;;  %1485 = vmatprep.subr.bf16.mxu0 %v1645_v35  ;;  %v61_v29 = vld [vmem:[%s2126_s0 + $0x170] sm:$0xff]  ;;  %v1284_v35 = vcombine.high %v58_v30, %v62_v31 }
  0x3b   :  { %911 = vmatmul.mubr.bf16.gmra.mrb[12].mxu0 %v1261_v16  ;;  %1543 = vmatprep.subr.bf16.mxu1 %v1647_v40  ;;  %v1257_v16 = vcombine.low %v33_v4, %v37_v5 }
  0x3c   :  { %999 = vmatmul.mubr.bf16.gmra.mrb[12].mxu1 %v1263_v20  ;;  %918 = vmatprep.mubr.bf16.mxu0 %v1270_v21  ;;  %v49_v20 = vld [vmem:[%s2126_s0 + $0x110] sm:$0xff] }
  0x3d   :  { %1006 = vmatprep.mubr.bf16.mxu1 %v1272_v24  ;;  %1486 = vmatpush3.bf16.msra.mxu0 %v1646_v38  ;;  %v53_v21 = vld [vmem:[%s2126_s0 + $0x130] sm:$0xff]  ;;  %v1265_v24 = vcombine.low %v41_v12, %v45_v13  ;;  %v1281_v38 = vcombine.low %v57_v28, %v61_v29 }
  0x3e   :  { %1544 = vmatpush3.bf16.msra.mxu1 %v1648_v41  ;;  %1487 = vmatprep.subr.bf16.mxu0 %v1653_v44  ;;  %v1274_v26 = vcombine.high %v49_v20, %v53_v21  ;;  %v1273_v32 = vcombine.low %v49_v20, %v53_v21 }
  0x3f   :  { %1545 = vmatprep.subr.bf16.mxu1 %v1655_v46  ;;  %v2032_v46 = vld [vmem:[%s2127_s2] ss:$0 sm:$0xff] }
  0x41   :  { %1488 = vmatpush3.bf16.msra.mxu0 %v1654_v45 }
  0x42   :  { %1546 = vmatpush3.bf16.msra.mxu1 %v1656_v48 }
  0x43   :  { %919 = vmatmul.mubr.bf16.gmra.mrb[16].mxu0 %v1269_v34  ;;  %v1282_v34 = vcombine.high %v57_v28, %v61_v29 }
  0x44   :  { %1007 = vmatmul.mubr.bf16.gmra.mrb[16].mxu1 %v1271_v36  ;;  %926 = vmatprep.mubr.bf16.mxu0 %v1278_v37  ;;  %v65_v36 = vld [vmem:[%s2126_s0 + $0x190] sm:$0xff]  ;;  %v66_v37 = vld [vmem:[%s2126_s0 + $0x198] sm:$0xff] }
  0x45   :  { %1014 = vmatprep.mubr.bf16.mxu1 %v1280_v39  ;;  %v1283_v39 = vcombine.low %v58_v30, %v62_v31  ;;  %v1290_v40 = vcombine.high %v65_v36, %v65_v36  ;;  %v1292_v41 = vcombine.high %v66_v37, %v66_v37  ;;  %v1289_v42 = vcombine.low %v65_v36, %v65_v36 }
  0x46   :  { %v1291_v43 = vcombine.low %v66_v37, %v66_v37 }
  0x4b   :  { %927 = vmatmul.mubr.bf16.gmra.mrb[20].mxu0 %v1277_v47 }
  0x4c   :  { %1015 = vmatmul.mubr.bf16.gmra.mrb[20].mxu1 %v1279_v49  ;;  %934 = vmatprep.mubr.bf16.mxu0 %v1286_v50 }
  0x4d   :  { %1022 = vmatprep.mubr.bf16.mxu1 %v1288_v51 }
  0x53   :  { %935 = vmatmul.mubr.bf16.gmra.mrb[24].mxu0 %v1285_v56 }
  0x54   :  { %1023 = vmatmul.mubr.bf16.gmra.mrb[24].mxu1 %v1287_v57  ;;  %1062 = vmatprep.mubr.bf16.mxu0 %v1242_v58 }
  0x55   :  { %1150 = vmatprep.mubr.bf16.mxu1 %v1244_v59 }
  0x5b   :  { %1063 = vmatmul.mubr.bf16.vlgmr.msra.gmra.mrb[28].mxu0 %v1241_v0 }
  0x5c   :  { %1151 = vmatmul.mubr.bf16.vlgmr.msra.gmra.mrb[28].mxu1 %v1243_v1  ;;  %1070 = vmatprep.mubr.bf16.mxu0 %v1250_v2 }
  0x5d   :  { %1158 = vmatprep.mubr.bf16.mxu1 %v1252_v3 }
  0x63   :  { %1071 = vmatmul.mubr.bf16.gmra.mrb[32].mxu0 %v1249_v8 }
  0x64   :  { %1159 = vmatmul.mubr.bf16.gmra.mrb[32].mxu1 %v1251_v9  ;;  %1078 = vmatprep.mubr.bf16.mxu0 %v1258_v10 }
  0x65   :  { %1166 = vmatprep.mubr.bf16.mxu1 %v1260_v11 }
  0x6b   :  { %1079 = vmatmul.mubr.bf16.gmra.mrb[36].mxu0 %v1257_v16 }
  0x6c   :  { %1167 = vmatmul.mubr.bf16.gmra.mrb[36].mxu1 %v1259_v17  ;;  %1086 = vmatprep.mubr.bf16.mxu0 %v1266_v18 }
  0x6d   :  { %1174 = vmatprep.mubr.bf16.mxu1 %v1268_v19 }
  0x73   :  { %1087 = vmatmul.mubr.bf16.gmra.mrb[40].mxu0 %v1265_v24 }
  0x74   :  { %1175 = vmatmul.mubr.bf16.gmra.mrb[40].mxu1 %v1267_v25  ;;  %1094 = vmatprep.mubr.bf16.mxu0 %v1274_v26 }
  0x75   :  { %1182 = vmatprep.mubr.bf16.mxu1 %v1276_v27 }
  0x7b   :  { %1095 = vmatmul.mubr.bf16.gmra.mrb[44].mxu0 %v1273_v32 }
  0x7c   :  { %1183 = vmatmul.mubr.bf16.gmra.mrb[44].mxu1 %v1275_v33  ;;  %1102 = vmatprep.mubr.bf16.mxu0 %v1282_v34 }
  0x7d   :  { %1190 = vmatprep.mubr.bf16.mxu1 %v1284_v35 }
  0x83   :  { %1103 = vmatmul.mubr.bf16.gmra.mrb[48].mxu0 %v1281_v38 }
  0x84   :  { %1191 = vmatmul.mubr.bf16.gmra.mrb[48].mxu1 %v1283_v39  ;;  %1110 = vmatprep.mubr.bf16.mxu0 %v1290_v40 }
  0x85   :  { %1198 = vmatprep.mubr.bf16.mxu1 %v1292_v41 }
  0x8b   :  { %1111 = vmatmul.mubr.bf16.gmra.mrb[52].mxu0 %v1289_v42 }
  0x8c   :  { %1199 = vmatmul.mubr.bf16.gmra.mrb[52].mxu1 %v1291_v43 }
  0xf6   :  { %v1373_v44 = vpop.f32.mrb[0].mxu0 }
  0xf7   :  { %v1431_v45 = vpop.f32.mrb[0].mxu1  ;;  %v1374_v47 = vpop.f32.mrb[1].mxu0 }
  0xf8   :  { %v1375_v48 = vadd.f32 %v1374_v47, %v1373_v44  ;;  %v1432_v49 = vpop.f32.mrb[1].mxu1  ;;  %v1376_v50 = vpop.f32.mrb[2].mxu0 }
  0xf9   :  { %v1433_v51 = vadd.f32 %v1432_v49, %v1431_v45  ;;  %v1434_v52 = vpop.f32.mrb[2].mxu1  ;;  %v1377_v53 = vpop.f32.mrb[3].mxu0 }
  0xfa   :  { %v889_v54 = vadd.f32 %v1375_v48, %v2032_v46  ;;  %v1378_v55 = vadd.f32 %v1377_v53, %v1376_v50  ;;  %v1435_v56 = vpop.f32.mrb[3].mxu1 }
  0xfb   :  { %v1436_v57 = vadd.f32 %v1435_v56, %v1434_v52 }
  0xfc   :  { %v2035_v58 = vadd.f32 %v1433_v51, %v889_v54  ;;  %v892_v59 = vadd.f32 %v1378_v55, %v2032_v46 }
  0xfe   :  { %v2038_v60 = vadd.f32 %v1436_v57, %v892_v59  ;;  %v1379_v61 = vpop.f32.mrb[4].mxu0 }
  0xff   :  { %v1437_v62 = vpop.f32.mrb[4].mxu1  ;;  %v1380_v63 = vpop.f32.mrb[5].mxu0 }
 0x100   :  { %v1381_v0 = vadd.f32 %v1380_v63, %v1379_v61  ;;  %v1438_v1 = vpop.f32.mrb[5].mxu1  ;;  %v1382_v2 = vpop.f32.mrb[6].mxu0 }
 0x101   :  { %v1439_v3 = vadd.f32 %v1438_v1, %v1437_v62  ;;  %v1440_v4 = vpop.f32.mrb[6].mxu1  ;;  %v1383_v5 = vpop.f32.mrb[7].mxu0 }
 0x102   :  { %v897_v6 = vadd.f32 %v1381_v0, %v2032_v46  ;;  %v1384_v7 = vadd.f32 %v1383_v5, %v1382_v2  ;;  %v1441_v8 = vpop.f32.mrb[7].mxu1 }
 0x103   :  { %v1442_v9 = vadd.f32 %v1441_v8, %v1440_v4 }
 0x104   :  { %v2041_v10 = vadd.f32 %v1439_v3, %v897_v6  ;;  %v900_v11 = vadd.f32 %v1384_v7, %v2032_v46 }
 0x106   :  { %v2044_v12 = vadd.f32 %v1442_v9, %v900_v11  ;;  %v1385_v13 = vpop.f32.mrb[8].mxu0 }
 0x107   :  { %v1443_v14 = vpop.f32.mrb[8].mxu1  ;;  %v1386_v15 = vpop.f32.mrb[9].mxu0 }
 0x108   :  { %v1387_v16 = vadd.f32 %v1386_v15, %v1385_v13  ;;  %v1444_v17 = vpop.f32.mrb[9].mxu1  ;;  %v1388_v18 = vpop.f32.mrb[10].mxu0 }
 0x109   :  { %v1445_v19 = vadd.f32 %v1444_v17, %v1443_v14  ;;  %v1446_v20 = vpop.f32.mrb[10].mxu1  ;;  %v1389_v21 = vpop.f32.mrb[11].mxu0 }
 0x10a   :  { %v905_v22 = vadd.f32 %v1387_v16, %v2032_v46  ;;  %v1390_v23 = vadd.f32 %v1389_v21, %v1388_v18  ;;  %v1447_v24 = vpop.f32.mrb[11].mxu1 }
 0x10b   :  { %v1448_v25 = vadd.f32 %v1447_v24, %v1446_v20 }
 0x10c   :  { %v2047_v26 = vadd.f32 %v1445_v19, %v905_v22  ;;  %v908_v27 = vadd.f32 %v1390_v23, %v2032_v46 }
 0x10e   :  { %v2050_v28 = vadd.f32 %v1448_v25, %v908_v27  ;;  %v1391_v29 = vpop.f32.mrb[12].mxu0 }
 0x10f   :  { %v1449_v30 = vpop.f32.mrb[12].mxu1  ;;  %v1392_v31 = vpop.f32.mrb[13].mxu0 }
 0x110   :  { %v1393_v32 = vadd.f32 %v1392_v31, %v1391_v29  ;;  %v1450_v33 = vpop.f32.mrb[13].mxu1  ;;  %v1394_v34 = vpop.f32.mrb[14].mxu0 }
 0x111   :  { %v1451_v35 = vadd.f32 %v1450_v33, %v1449_v30  ;;  %v1452_v36 = vpop.f32.mrb[14].mxu1  ;;  %v1395_v37 = vpop.f32.mrb[15].mxu0 }
 0x112   :  { %v913_v38 = vadd.f32 %v1393_v32, %v2032_v46  ;;  %v1396_v39 = vadd.f32 %v1395_v37, %v1394_v34  ;;  %v1453_v40 = vpop.f32.mrb[15].mxu1 }
 0x113   :  { %v1454_v41 = vadd.f32 %v1453_v40, %v1452_v36 }
 0x114   :  { %v2053_v42 = vadd.f32 %v1451_v35, %v913_v38  ;;  %v916_v43 = vadd.f32 %v1396_v39, %v2032_v46 }
 0x116   :  { %v2056_v44 = vadd.f32 %v1454_v41, %v916_v43  ;;  %v1397_v45 = vpop.f32.mrb[16].mxu0 }
 0x117   :  { %v1455_v47 = vpop.f32.mrb[16].mxu1  ;;  %v1398_v48 = vpop.f32.mrb[17].mxu0 }
 0x118   :  { %v1399_v49 = vadd.f32 %v1398_v48, %v1397_v45  ;;  %v1456_v50 = vpop.f32.mrb[17].mxu1  ;;  %v1400_v51 = vpop.f32.mrb[18].mxu0 }
 0x119   :  { %v1457_v52 = vadd.f32 %v1456_v50, %v1455_v47  ;;  %v1458_v53 = vpop.f32.mrb[18].mxu1  ;;  %v1401_v54 = vpop.f32.mrb[19].mxu0 }
 0x11a   :  { %v921_v55 = vadd.f32 %v1399_v49, %v2032_v46  ;;  %v1402_v56 = vadd.f32 %v1401_v54, %v1400_v51  ;;  %v1459_v57 = vpop.f32.mrb[19].mxu1 }
 0x11b   :  { %v1460_v59 = vadd.f32 %v1459_v57, %v1458_v53 }
 0x11c   :  { %v2059_v61 = vadd.f32 %v1457_v52, %v921_v55  ;;  %v924_v62 = vadd.f32 %v1402_v56, %v2032_v46 }
 0x11e   :  { %v2062_v63 = vadd.f32 %v1460_v59, %v924_v62  ;;  %v1403_v0 = vpop.f32.mrb[20].mxu0 }
 0x11f   :  { %v1461_v1 = vpop.f32.mrb[20].mxu1  ;;  %v1404_v2 = vpop.f32.mrb[21].mxu0 }
 0x120   :  { %v1405_v3 = vadd.f32 %v1404_v2, %v1403_v0  ;;  %v1462_v4 = vpop.f32.mrb[21].mxu1  ;;  %v1406_v5 = vpop.f32.mrb[22].mxu0 }
 0x121   :  { %v1463_v6 = vadd.f32 %v1462_v4, %v1461_v1  ;;  %v1464_v7 = vpop.f32.mrb[22].mxu1  ;;  %v1407_v8 = vpop.f32.mrb[23].mxu0 }
 0x122   :  { %v929_v9 = vadd.f32 %v1405_v3, %v2032_v46  ;;  %v1408_v11 = vadd.f32 %v1407_v8, %v1406_v5  ;;  %v1465_v13 = vpop.f32.mrb[23].mxu1 }
 0x123   :  { %v1466_v14 = vadd.f32 %v1465_v13, %v1464_v7 }
 0x124   :  { %v2065_v15 = vadd.f32 %v1463_v6, %v929_v9  ;;  %v932_v16 = vadd.f32 %v1408_v11, %v2032_v46 }
 0x126   :  { %v2068_v17 = vadd.f32 %v1466_v14, %v932_v16  ;;  %v1409_v18 = vpop.f32.mrb[24].mxu0 }
 0x127   :  { %v1467_v19 = vpop.f32.mrb[24].mxu1  ;;  %v1410_v20 = vpop.f32.mrb[25].mxu0 }
 0x128   :  { %v1411_v21 = vadd.f32 %v1410_v20, %v1409_v18  ;;  %v1468_v22 = vpop.f32.mrb[25].mxu1  ;;  %v1412_v23 = vpop.f32.mrb[26].mxu0 }
 0x129   :  { %v1469_v24 = vadd.f32 %v1468_v22, %v1467_v19  ;;  %v1470_v25 = vpop.f32.mrb[26].mxu1  ;;  %v1413_v27 = vpop.f32.mrb[27].mxu0 }
 0x12a   :  { %v937_v29 = vadd.f32 %v1411_v21, %v2032_v46  ;;  %v1471_v30 = vpop.f32.mrb[27].mxu1 }
 0x12c   :  { %v2071_v31 = vadd.f32 %v1469_v24, %v937_v29 }
 0x12e   :  { %v1489_v32 = vpop.f32.mrb[28].mxu0 }
 0x12f   :  { %v1547_v33 = vpop.f32.mrb[28].mxu1  ;;  %v1490_v34 = vpop.f32.mrb[29].mxu0 }
 0x130   :  { %v1491_v35 = vadd.f32 %v1490_v34, %v1489_v32  ;;  %v1548_v36 = vpop.f32.mrb[29].mxu1  ;;  %v1492_v37 = vpop.f32.mrb[30].mxu0 }
 0x131   :  { %v1549_v38 = vadd.f32 %v1548_v36, %v1547_v33  ;;  %v1550_v39 = vpop.f32.mrb[30].mxu1  ;;  %v1493_v40 = vpop.f32.mrb[31].mxu0 }
 0x132   :  { %v1065_v41 = vadd.f32 %v1491_v35, %v2035_v58  ;;  %v1494_v43 = vadd.f32 %v1493_v40, %v1492_v37  ;;  %v1551_v45 = vpop.f32.mrb[31].mxu1 }
 0x133   :  { %v1552_v47 = vadd.f32 %v1551_v45, %v1550_v39 }
 0x134   :  { %v1153_v48 = vadd.f32 %v1549_v38, %v1065_v41  ;;  %v1068_v46 = vadd.f32 %v1494_v43, %v2038_v60 }
 0x136   :  { %v1206_v49 = vmax.f32 %v1153_v48, 0.0  ;;  %v1156_v50 = vadd.f32 %v1552_v47, %v1068_v46  ;;  %v1495_v51 = vpop.f32.mrb[32].mxu0 }
 0x137   :  { %v1553_v52 = vpop.f32.mrb[32].mxu1  ;;  %v1496_v53 = vpop.f32.mrb[33].mxu0 }
 0x138   :  { %1219 = vst [vmem:[%s2128_s3] sm:$0xff] %v1206_v49  ;;  %v1207_v54 = vmax.f32 %v1156_v50, 0.0  ;;  %v1497_v55 = vadd.f32 %v1496_v53, %v1495_v51  ;;  %v1554_v56 = vpop.f32.mrb[33].mxu1  ;;  %v1498_v57 = vpop.f32.mrb[34].mxu0 }
 0x139   :  { %v1555_v58 = vadd.f32 %v1554_v56, %v1553_v52  ;;  %v1556_v59 = vpop.f32.mrb[34].mxu1  ;;  %v1499_v62 = vpop.f32.mrb[35].mxu0 }
 0x13a   :  { %1220 = vst [vmem:[%s2128_s3 + $0x8] sm:$0xff] %v1207_v54  ;;  %v1073_v60 = vadd.f32 %v1497_v55, %v2041_v10  ;;  %v1500_v0 = vadd.f32 %v1499_v62, %v1498_v57  ;;  %v1557_v1 = vpop.f32.mrb[35].mxu1 }
 0x13b   :  { %v1558_v2 = vadd.f32 %v1557_v1, %v1556_v59 }
 0x13c   :  { %v1161_v3 = vadd.f32 %v1555_v58, %v1073_v60  ;;  %v1076_v4 = vadd.f32 %v1500_v0, %v2044_v12 }
 0x13e   :  { %v1208_v5 = vmax.f32 %v1161_v3, 0.0  ;;  %v1164_v6 = vadd.f32 %v1558_v2, %v1076_v4  ;;  %v1501_v7 = vpop.f32.mrb[36].mxu0 }
 0x13f   :  { %v1559_v8 = vpop.f32.mrb[36].mxu1  ;;  %v1502_v9 = vpop.f32.mrb[37].mxu0 }
 0x140   :  { %1221 = vst [vmem:[%s2128_s3 + $0x10] sm:$0xff] %v1208_v5  ;;  %v1209_v11 = vmax.f32 %v1164_v6, 0.0  ;;  %v1503_v13 = vadd.f32 %v1502_v9, %v1501_v7  ;;  %v1560_v14 = vpop.f32.mrb[37].mxu1  ;;  %v1504_v16 = vpop.f32.mrb[38].mxu0 }
 0x141   :  { %v1561_v10 = vadd.f32 %v1560_v14, %v1559_v8  ;;  %v1562_v18 = vpop.f32.mrb[38].mxu1  ;;  %v1505_v19 = vpop.f32.mrb[39].mxu0 }
 0x142   :  { %1222 = vst [vmem:[%s2128_s3 + $0x18] sm:$0xff] %v1209_v11  ;;  %v1081_v12 = vadd.f32 %v1503_v13, %v2047_v26  ;;  %v1506_v20 = vadd.f32 %v1505_v19, %v1504_v16  ;;  %v1563_v21 = vpop.f32.mrb[39].mxu1 }
 0x143   :  { %v1564_v22 = vadd.f32 %v1563_v21, %v1562_v18 }
 0x144   :  { %v1169_v23 = vadd.f32 %v1561_v10, %v1081_v12  ;;  %v1084_v24 = vadd.f32 %v1506_v20, %v2050_v28 }
 0x146   :  { %v1210_v25 = vmax.f32 %v1169_v23, 0.0  ;;  %v1172_v27 = vadd.f32 %v1564_v22, %v1084_v24  ;;  %v1507_v29 = vpop.f32.mrb[40].mxu0 }
 0x147   :  { %v1565_v30 = vpop.f32.mrb[40].mxu1  ;;  %v1508_v32 = vpop.f32.mrb[41].mxu0 }
 0x148   :  { %1223 = vst [vmem:[%s2128_s3 + $0x20] sm:$0xff] %v1210_v25  ;;  %v1211_v33 = vmax.f32 %v1172_v27, 0.0  ;;  %v1509_v34 = vadd.f32 %v1508_v32, %v1507_v29  ;;  %v1566_v35 = vpop.f32.mrb[41].mxu1  ;;  %v1510_v36 = vpop.f32.mrb[42].mxu0 }
 0x149   :  { %v1567_v26 = vadd.f32 %v1566_v35, %v1565_v30  ;;  %v1568_v37 = vpop.f32.mrb[42].mxu1  ;;  %v1511_v38 = vpop.f32.mrb[43].mxu0 }
 0x14a   :  { %1224 = vst [vmem:[%s2128_s3 + $0x28] sm:$0xff] %v1211_v33  ;;  %v1089_v28 = vadd.f32 %v1509_v34, %v2053_v42  ;;  %v1512_v39 = vadd.f32 %v1511_v38, %v1510_v36  ;;  %v1569_v40 = vpop.f32.mrb[43].mxu1 }
 0x14b   :  { %v1570_v41 = vadd.f32 %v1569_v40, %v1568_v37 }
 0x14c   :  { %v1177_v43 = vadd.f32 %v1567_v26, %v1089_v28  ;;  %v1092_v45 = vadd.f32 %v1512_v39, %v2056_v44 }
 0x14e   :  { %v1212_v47 = vmax.f32 %v1177_v43, 0.0  ;;  %v1180_v48 = vadd.f32 %v1570_v41, %v1092_v45  ;;  %v1513_v46 = vpop.f32.mrb[44].mxu0 }
 0x14f   :  { %v1571_v49 = vpop.f32.mrb[44].mxu1  ;;  %v1514_v50 = vpop.f32.mrb[45].mxu0 }
 0x150   :  { %1225 = vst [vmem:[%s2128_s3 + $0x30] sm:$0xff] %v1212_v47  ;;  %v1213_v51 = vmax.f32 %v1180_v48, 0.0  ;;  %v1515_v52 = vadd.f32 %v1514_v50, %v1513_v46  ;;  %v1572_v53 = vpop.f32.mrb[45].mxu1  ;;  %v1516_v54 = vpop.f32.mrb[46].mxu0 }
 0x151   :  { %v1573_v42 = vadd.f32 %v1572_v53, %v1571_v49  ;;  %v1574_v55 = vpop.f32.mrb[46].mxu1  ;;  %v1517_v56 = vpop.f32.mrb[47].mxu0 }
 0x152   :  { %1226 = vst [vmem:[%s2128_s3 + $0x38] sm:$0xff] %v1213_v51  ;;  %v1097_v44 = vadd.f32 %v1515_v52, %v2059_v61  ;;  %v1518_v57 = vadd.f32 %v1517_v56, %v1516_v54  ;;  %v1575_v58 = vpop.f32.mrb[47].mxu1 }
 0x153   :  { %v1576_v59 = vadd.f32 %v1575_v58, %v1574_v55 }
 0x154   :  { %v1185_v62 = vadd.f32 %v1573_v42, %v1097_v44  ;;  %v1100_v60 = vadd.f32 %v1518_v57, %v2062_v63 }
 0x156   :  { %v1214_v0 = vmax.f32 %v1185_v62, 0.0  ;;  %v1188_v1 = vadd.f32 %v1576_v59, %v1100_v60  ;;  %v1519_v2 = vpop.f32.mrb[48].mxu0 }
 0x157   :  { %v1577_v3 = vpop.f32.mrb[48].mxu1  ;;  %v1520_v4 = vpop.f32.mrb[49].mxu0 }
 0x158   :  { %1227 = vst [vmem:[%s2128_s3 + $0x40] sm:$0xff] %v1214_v0  ;;  %v1215_v5 = vmax.f32 %v1188_v1, 0.0  ;;  %v1521_v6 = vadd.f32 %v1520_v4, %v1519_v2  ;;  %v1578_v7 = vpop.f32.mrb[49].mxu1  ;;  %v1522_v8 = vpop.f32.mrb[50].mxu0 }
 0x159   :  { %v1579_v61 = vadd.f32 %v1578_v7, %v1577_v3  ;;  %v1580_v9 = vpop.f32.mrb[50].mxu1  ;;  %v1523_v11 = vpop.f32.mrb[51].mxu0 }
 0x15a   :  { %1228 = vst [vmem:[%s2128_s3 + $0x48] sm:$0xff] %v1215_v5  ;;  %v1105_v63 = vadd.f32 %v1521_v6, %v2065_v15  ;;  %v1524_v13 = vadd.f32 %v1523_v11, %v1522_v8  ;;  %v1581_v14 = vpop.f32.mrb[51].mxu1 }
 0x15b   :  { %v1582_v16 = vadd.f32 %v1581_v14, %v1580_v9 }
 0x15c   :  { %v1193_v10 = vadd.f32 %v1579_v61, %v1105_v63  ;;  %v1108_v18 = vadd.f32 %v1524_v13, %v2068_v17 }
 0x15e   :  { %v1216_v19 = vmax.f32 %v1193_v10, 0.0  ;;  %v1196_v12 = vadd.f32 %v1582_v16, %v1108_v18  ;;  %v1525_v20 = vpop.f32.mrb[52].mxu0 }
 0x15f   :  { %v1583_v21 = vpop.f32.mrb[52].mxu1  ;;  %v1526_v22 = vpop.f32.mrb[53].mxu0 }
 0x160   :  { %1229 = vst [vmem:[%s2128_s3 + $0x50] sm:$0xff] %v1216_v19  ;;  %v1217_v23 = vmax.f32 %v1196_v12, 0.0  ;;  %v1527_v24 = vadd.f32 %v1526_v22, %v1525_v20  ;;  %v1584_v25 = vpop.f32.mrb[53].mxu1  ;;  %v1528_v27 = vpop.f32.mrb[54].mxu0 }
 0x161   :  { %v1585_v15 = vadd.f32 %v1584_v25, %v1583_v21  ;;  %v1586_v29 = vpop.f32.mrb[54].mxu1  ;;  %v1529_v30 = vpop.f32.mrb[55].mxu0 }
 0x162   :  { %1230 = vst [vmem:[%s2128_s3 + $0x58] sm:$0xff] %v1217_v23  ;;  %v1113_v17 = vadd.f32 %v1527_v24, %v2071_v31  ;;  %v1587_v32 = vpop.f32.mrb[55].mxu1 }
 0x164   :  { %v1201_v33 = vadd.f32 %v1585_v15, %v1113_v17 }
 0x166   :  { %v1218_v34 = vmax.f32 %v1201_v33, 0.0 }
 0x168   :  { %1231 = vst [vmem:[%s2128_s3 + $0x60] sm:$0xff] %v1218_v34 }

// kernel: conv_vlae_encoder_celeba_forward.8
= control target key start
LH: loop header
LB: loop body
LE: loop exit
PB: predicated region body
PF: predicated region fallthrough
CT: control target
= control target key end

     0   :  { %s2670_s1 = inlined_call_operand.vmem [shape: bf16[2048,128], index: 1, kind: input, shape index: {}]   ;;  %s2671_s0 = inlined_call_operand.vmem [shape: bf16[32,2048], index: 0, kind: input, shape index: {}]   ;;  %s2672_s2 = inlined_call_operand.vmem [shape: f32[1,128], index: 2, kind: input, shape index: {}]   ;;  %s2673_s3 = inlined_call_operand.vmem [shape: f32[32,128], index: 3, kind: output, shape index: {}]  }
   0x1   :  { %v2027_v0 = vld [vmem:[%s2670_s1 + $0x40] sm:$0xff]   ;;  %v2031_v4 = vld [vmem:[%s2670_s1 + $0x48] sm:$0xff]   ;;  %v2035_v8 = vld [vmem:[%s2670_s1 + $0x50] sm:$0xff]  }
   0x2   :  { %v2028_v1 = vld [vmem:[%s2670_s1 + $0xc0] sm:$0xff]   ;;  %1803 = vmatprep.subr.bf16.mxu0 %v2027_v0  ;;  %v2032_v5 = vld [vmem:[%s2670_s1 + $0xc8] sm:$0xff]   ;;  %v2036_v9 = vld [vmem:[%s2670_s1 + $0xd0] sm:$0xff]  }
   0x3   :  { %v2029_v2 = vld [vmem:[%s2670_s1] sm:$0xff]   ;;  %1831 = vmatprep.subr.bf16.mxu1 %v2028_v1  ;;  %v2033_v6 = vld [vmem:[%s2670_s1 + $0x8] sm:$0xff]   ;;  %v2037_v10 = vld [vmem:[%s2670_s1 + $0x10] sm:$0xff]  }
   0x4   :  { %v2030_v3 = vld [vmem:[%s2670_s1 + $0x80] sm:$0xff]   ;;  %1804 = vmatpush3.bf16.msra.mxu0 %v2029_v2  ;;  %v2034_v7 = vld [vmem:[%s2670_s1 + $0x88] sm:$0xff]   ;;  %v2038_v11 = vld [vmem:[%s2670_s1 + $0x90] sm:$0xff]  }
   0x5   :  { %1832 = vmatpush3.bf16.msra.mxu1 %v2030_v3  ;;  %1805 = vmatprep.subr.bf16.mxu0 %v2031_v4  ;;  %v2039_v12 = vld [vmem:[%s2670_s1 + $0x58] sm:$0xff]   ;;  %v2043_v16 = vld [vmem:[%s2670_s1 + $0x60] sm:$0xff]   ;;  %v2047_v20 = vld [vmem:[%s2670_s1 + $0x68] sm:$0xff]  }
   0x6   :  { %1833 = vmatprep.subr.bf16.mxu1 %v2032_v5  ;;  %v2040_v13 = vld [vmem:[%s2670_s1 + $0xd8] sm:$0xff]   ;;  %v2044_v17 = vld [vmem:[%s2670_s1 + $0xe0] sm:$0xff]   ;;  %v2048_v21 = vld [vmem:[%s2670_s1 + $0xe8] sm:$0xff]  }
   0x7   :  { %v2041_v14 = vld [vmem:[%s2670_s1 + $0x18] sm:$0xff]   ;;  %v2045_v18 = vld [vmem:[%s2670_s1 + $0x20] sm:$0xff]   ;;  %v2049_v22 = vld [vmem:[%s2670_s1 + $0x28] sm:$0xff]  }
   0x8   :  { %1806 = vmatpush3.bf16.msra.mxu0 %v2033_v6  ;;  %v2042_v15 = vld [vmem:[%s2670_s1 + $0x98] sm:$0xff]   ;;  %v2046_v19 = vld [vmem:[%s2670_s1 + $0xa0] sm:$0xff]   ;;  %v2050_v23 = vld [vmem:[%s2670_s1 + $0xa8] sm:$0xff]  }
   0x9   :  { %1834 = vmatpush3.bf16.msra.mxu1 %v2034_v7  ;;  %1807 = vmatprep.subr.bf16.mxu0 %v2035_v8  ;;  %v2051_v24 = vld [vmem:[%s2670_s1 + $0x70] sm:$0xff]   ;;  %v2055_v28 = vld [vmem:[%s2670_s1 + $0x78] sm:$0xff]   ;;  %v15_v32 = vld [vmem:[%s2671_s0] sm:$0xff] }
   0xa   :  { %1835 = vmatprep.subr.bf16.mxu1 %v2036_v9  ;;  %v2052_v25 = vld [vmem:[%s2670_s1 + $0xf0] sm:$0xff]   ;;  %v2056_v29 = vld [vmem:[%s2670_s1 + $0xf8] sm:$0xff]   ;;  %v23_v33 = vld [vmem:[%s2671_s0 + $0x40] sm:$0xff] }
   0xb   :  { %v2053_v26 = vld [vmem:[%s2670_s1 + $0x30] sm:$0xff]   ;;  %v2057_v30 = vld [vmem:[%s2670_s1 + $0x38] sm:$0xff]   ;;  %v16_v34 = vld [vmem:[%s2671_s0 + $0x8] sm:$0xff]  ;;  %v1643_v35 = vcombine.low %v15_v32, %v23_v33  ;;  %v1644_v36 = vcombine.high %v15_v32, %v23_v33 }
   0xc   :  { %1808 = vmatpush3.bf16.msra.mxu0 %v2037_v10  ;;  %v2054_v27 = vld [vmem:[%s2670_s1 + $0xb0] sm:$0xff]   ;;  %v2058_v31 = vld [vmem:[%s2670_s1 + $0xb8] sm:$0xff]   ;;  %v24_v37 = vld [vmem:[%s2671_s0 + $0x48] sm:$0xff] }
   0xd   :  { %1836 = vmatpush3.bf16.msra.mxu1 %v2038_v11  ;;  %1809 = vmatprep.subr.bf16.mxu0 %v2039_v12  ;;  %v1645_v38 = vcombine.low %v16_v34, %v24_v37  ;;  %v1646_v39 = vcombine.high %v16_v34, %v24_v37  ;;  %v2059_v40 = vld [vmem:[%s2670_s1 + $0x140] sm:$0xff]   ;;  %v2063_v44 = vld [vmem:[%s2670_s1 + $0x148] sm:$0xff]   ;;  %v2067_v48 = vld [vmem:[%s2670_s1 + $0x150] sm:$0xff]  }
   0xe   :  { %1837 = vmatprep.subr.bf16.mxu1 %v2040_v13  ;;  %1270 = vmatprep.mubr.bf16.mxu0 %v1644_v36  ;;  %v2060_v41 = vld [vmem:[%s2670_s1 + $0x1c0] sm:$0xff]   ;;  %v2064_v45 = vld [vmem:[%s2670_s1 + $0x1c8] sm:$0xff]   ;;  %v2068_v49 = vld [vmem:[%s2670_s1 + $0x1d0] sm:$0xff]  }
   0xf   :  { %1319 = vmatprep.mubr.bf16.mxu1 %v1646_v39  ;;  %v2061_v42 = vld [vmem:[%s2670_s1 + $0x100] sm:$0xff]   ;;  %v2065_v46 = vld [vmem:[%s2670_s1 + $0x108] sm:$0xff]   ;;  %v2069_v50 = vld [vmem:[%s2670_s1 + $0x110] sm:$0xff]  }
  0x10   :  { %1810 = vmatpush3.bf16.msra.mxu0 %v2041_v14  ;;  %v2062_v43 = vld [vmem:[%s2670_s1 + $0x180] sm:$0xff]   ;;  %v2066_v47 = vld [vmem:[%s2670_s1 + $0x188] sm:$0xff]   ;;  %v2070_v51 = vld [vmem:[%s2670_s1 + $0x190] sm:$0xff]  }
  0x11   :  { %1838 = vmatpush3.bf16.msra.mxu1 %v2042_v15  ;;  %1811 = vmatprep.subr.bf16.mxu0 %v2043_v16  ;;  %v2071_v52 = vld [vmem:[%s2670_s1 + $0x158] sm:$0xff]   ;;  %v2075_v56 = vld [vmem:[%s2670_s1 + $0x160] sm:$0xff]   ;;  %v2079_v60 = vld [vmem:[%s2670_s1 + $0x168] sm:$0xff]  }
  0x12   :  { %1839 = vmatprep.subr.bf16.mxu1 %v2044_v17  ;;  %v2072_v53 = vld [vmem:[%s2670_s1 + $0x1d8] sm:$0xff]   ;;  %v2076_v57 = vld [vmem:[%s2670_s1 + $0x1e0] sm:$0xff]   ;;  %v2080_v61 = vld [vmem:[%s2670_s1 + $0x1e8] sm:$0xff]  }
  0x13   :  { %v2073_v54 = vld [vmem:[%s2670_s1 + $0x118] sm:$0xff]   ;;  %v2077_v58 = vld [vmem:[%s2670_s1 + $0x120] sm:$0xff]   ;;  %v2081_v1 = vld [vmem:[%s2670_s1 + $0x128] sm:$0xff]  }
  0x14   :  { %1812 = vmatpush3.bf16.msra.mxu0 %v2045_v18  ;;  %v2074_v55 = vld [vmem:[%s2670_s1 + $0x198] sm:$0xff]   ;;  %v2078_v59 = vld [vmem:[%s2670_s1 + $0x1a0] sm:$0xff]   ;;  %v2082_v3 = vld [vmem:[%s2670_s1 + $0x1a8] sm:$0xff]  }
  0x15   :  { %1840 = vmatpush3.bf16.msra.mxu1 %v2046_v19  ;;  %1813 = vmatprep.subr.bf16.mxu0 %v2047_v20  ;;  %v31_v62 = vld [vmem:[%s2671_s0 + $0x80] sm:$0xff]  ;;  %v32_v4 = vld [vmem:[%s2671_s0 + $0x88] sm:$0xff]  ;;  %v2083_v8 = vld [vmem:[%s2670_s1 + $0x170] sm:$0xff]  }
  0x16   :  { %1841 = vmatprep.subr.bf16.mxu1 %v2048_v21  ;;  %v39_v63 = vld [vmem:[%s2671_s0 + $0xc0] sm:$0xff]  ;;  %v40_v5 = vld [vmem:[%s2671_s0 + $0xc8] sm:$0xff]  ;;  %v2084_v9 = vld [vmem:[%s2670_s1 + $0x1f0] sm:$0xff]  }
  0x17   :  { %v1660_v0 = vcombine.high %v31_v62, %v39_v63  ;;  %v1659_v2 = vcombine.low %v31_v62, %v39_v63  ;;  %v1662_v6 = vcombine.high %v32_v4, %v40_v5  ;;  %v1661_v7 = vcombine.low %v32_v4, %v40_v5  ;;  %v2085_v10 = vld [vmem:[%s2670_s1 + $0x130] sm:$0xff]   ;;  %v2087_v12 = vld [vmem:[%s2670_s1 + $0x178] sm:$0xff]   ;;  %v20_v4 = vld [vmem:[%s2671_s0 + $0x28] sm:$0xff] }
  0x18   :  { %1814 = vmatpush3.bf16.msra.mxu0 %v2049_v22  ;;  %v2086_v11 = vld [vmem:[%s2670_s1 + $0x1b0] sm:$0xff]   ;;  %v2088_v13 = vld [vmem:[%s2670_s1 + $0x1f8] sm:$0xff]   ;;  %v28_v5 = vld [vmem:[%s2671_s0 + $0x68] sm:$0xff] }
  0x19   :  { %1842 = vmatpush3.bf16.msra.mxu1 %v2050_v23  ;;  %1815 = vmatprep.subr.bf16.mxu0 %v2051_v24  ;;  %v2089_v14 = vld [vmem:[%s2670_s1 + $0x138] sm:$0xff]   ;;  %v17_v16 = vld [vmem:[%s2671_s0 + $0x10] sm:$0xff]  ;;  %v2091_v24 = vld [vmem:[%s2670_s1 + $0x240] sm:$0xff]  }
  0x1a   :  { %1843 = vmatprep.subr.bf16.mxu1 %v2052_v25  ;;  %v2090_v15 = vld [vmem:[%s2670_s1 + $0x1b8] sm:$0xff]   ;;  %v25_v17 = vld [vmem:[%s2671_s0 + $0x50] sm:$0xff]  ;;  %v2092_v25 = vld [vmem:[%s2670_s1 + $0x2c0] sm:$0xff]  }
  0x1b   :  { %v18_v18 = vld [vmem:[%s2671_s0 + $0x18] sm:$0xff]  ;;  %v1647_v20 = vcombine.low %v17_v16, %v25_v17  ;;  %v1648_v21 = vcombine.high %v17_v16, %v25_v17  ;;  %v33_v32 = vld [vmem:[%s2671_s0 + $0x90] sm:$0xff]  ;;  %v35_v16 = vld [vmem:[%s2671_s0 + $0xa0] sm:$0xff] }
  0x1c   :  { %1816 = vmatpush3.bf16.msra.mxu0 %v2053_v26  ;;  %v26_v19 = vld [vmem:[%s2671_s0 + $0x58] sm:$0xff]  ;;  %v2093_v26 = vld [vmem:[%s2670_s1 + $0x200] sm:$0xff]   ;;  %v41_v33 = vld [vmem:[%s2671_s0 + $0xd0] sm:$0xff] }
  0x1d   :  { %1844 = vmatpush3.bf16.msra.mxu1 %v2054_v27  ;;  %1817 = vmatprep.subr.bf16.mxu0 %v2055_v28  ;;  %v1649_v22 = vcombine.low %v18_v18, %v26_v19  ;;  %v1650_v23 = vcombine.high %v18_v18, %v26_v19  ;;  %v2094_v27 = vld [vmem:[%s2670_s1 + $0x280] sm:$0xff]   ;;  %v2095_v28 = vld [vmem:[%s2670_s1 + $0x248] sm:$0xff]   ;;  %v1664_v34 = vcombine.high %v33_v32, %v41_v33  ;;  %v2099_v36 = vld [vmem:[%s2670_s1 + $0x250] sm:$0xff]  }
  0x1e   :  { %1845 = vmatprep.subr.bf16.mxu1 %v2056_v29  ;;  %v2096_v29 = vld [vmem:[%s2670_s1 + $0x2c8] sm:$0xff]   ;;  %v2100_v37 = vld [vmem:[%s2670_s1 + $0x2d0] sm:$0xff]   ;;  %v42_v39 = vld [vmem:[%s2671_s0 + $0xd8] sm:$0xff] }
  0x1f   :  { %v2121_v62 = vld [vmem:[%s2670_s1 + $0x238] sm:$0xff]   ;;  %v43_v17 = vld [vmem:[%s2671_s0 + $0xe0] sm:$0xff] }
  0x20   :  { %1818 = vmatpush3.bf16.msra.mxu0 %v2057_v30  ;;  %v2097_v30 = vld [vmem:[%s2670_s1 + $0x208] sm:$0xff]   ;;  %v2122_v63 = vld [vmem:[%s2670_s1 + $0x2b8] sm:$0xff]   ;;  %v1668_v18 = vcombine.high %v35_v16, %v43_v17  ;;  %v1667_v19 = vcombine.low %v35_v16, %v43_v17 }
  0x21   :  { %1846 = vmatpush3.bf16.msra.mxu1 %v2058_v31  ;;  %1859 = vmatprep.subr.bf16.mxu0 %v2059_v40  ;;  %v2098_v31 = vld [vmem:[%s2670_s1 + $0x288] sm:$0xff]  }
  0x22   :  { %1887 = vmatprep.subr.bf16.mxu1 %v2060_v41  ;;  %v2101_v41 = vld [vmem:[%s2670_s1 + $0x210] sm:$0xff]  }
  0x23   :  { %1271 = vmatmul.mubr.bf16.vlgmr.msra.gmra.mrb[0].mxu0 %v1643_v35  ;;  %v1663_v35 = vcombine.low %v33_v32, %v41_v33  ;;  %v2139_v32 = vld [vmem:[%s2670_s1 + $0x360] sm:$0xff]  }
  0x24   :  { %1320 = vmatmul.mubr.bf16.vlgmr.msra.gmra.mrb[0].mxu1 %v1645_v38  ;;  %1860 = vmatpush3.bf16.msra.mxu0 %v2061_v42  ;;  %v34_v38 = vld [vmem:[%s2671_s0 + $0x98] sm:$0xff]  ;;  %v2140_v33 = vld [vmem:[%s2670_s1 + $0x3e0] sm:$0xff]  }
  0x25   :  { %1888 = vmatpush3.bf16.msra.mxu1 %v2062_v43  ;;  %1861 = vmatprep.subr.bf16.mxu0 %v2063_v44  ;;  %v1666_v40 = vcombine.high %v34_v38, %v42_v39  ;;  %v1665_v42 = vcombine.low %v34_v38, %v42_v39  ;;  %v2102_v43 = vld [vmem:[%s2670_s1 + $0x290] sm:$0xff]   ;;  %v2103_v44 = vld [vmem:[%s2670_s1 + $0x258] sm:$0xff]   ;;  %v2145_v38 = vld [vmem:[%s2670_s1 + $0x328] sm:$0xff]  }
  0x26   :  { %1889 = vmatprep.subr.bf16.mxu1 %v2064_v45  ;;  %1278 = vmatprep.mubr.bf16.mxu0 %v1660_v0  ;;  %v2104_v45 = vld [vmem:[%s2670_s1 + $0x2d8] sm:$0xff]   ;;  %v19_v0 = vld [vmem:[%s2671_s0 + $0x20] sm:$0xff]  ;;  %v2146_v39 = vld [vmem:[%s2670_s1 + $0x3a8] sm:$0xff]  }
  0x27   :  { %1327 = vmatprep.mubr.bf16.mxu1 %v1662_v6  ;;  %v1653_v6 = vcombine.low %v20_v4, %v28_v5 }
  0x28   :  { %1862 = vmatpush3.bf16.msra.mxu0 %v2065_v46  ;;  %v2105_v46 = vld [vmem:[%s2670_s1 + $0x218] sm:$0xff]  }
  0x29   :  { %1890 = vmatpush3.bf16.msra.mxu1 %v2066_v47  ;;  %1863 = vmatprep.subr.bf16.mxu0 %v2067_v48  ;;  %v2106_v47 = vld [vmem:[%s2670_s1 + $0x298] sm:$0xff]   ;;  %v2107_v48 = vld [vmem:[%s2670_s1 + $0x260] sm:$0xff]  }
  0x2a   :  { %1891 = vmatprep.subr.bf16.mxu1 %v2068_v49  ;;  %v2108_v49 = vld [vmem:[%s2670_s1 + $0x2e0] sm:$0xff]  }
  0x2b   :  { %1279 = vmatmul.mubr.bf16.gmra.mrb[4].mxu0 %v1659_v2 }
  0x2c   :  { %1864 = vmatpush3.bf16.msra.mxu0 %v2069_v50  ;;  %1328 = vmatmul.mubr.bf16.gmra.mrb[4].mxu1 %v1661_v7  ;;  %v2109_v50 = vld [vmem:[%s2670_s1 + $0x220] sm:$0xff]   ;;  %v1654_v7 = vcombine.high %v20_v4, %v28_v5 }
  0x2d   :  { %1892 = vmatpush3.bf16.msra.mxu1 %v2070_v51  ;;  %1865 = vmatprep.subr.bf16.mxu0 %v2071_v52  ;;  %v2110_v51 = vld [vmem:[%s2670_s1 + $0x2a0] sm:$0xff]   ;;  %v2111_v52 = vld [vmem:[%s2670_s1 + $0x268] sm:$0xff]  }
  0x2e   :  { %1893 = vmatprep.subr.bf16.mxu1 %v2072_v53  ;;  %1368 = vmatprep.mubr.bf16.mxu0 %v1648_v21  ;;  %v2112_v53 = vld [vmem:[%s2670_s1 + $0x2e8] sm:$0xff]   ;;  %v2132_v21 = vld [vmem:[%s2670_s1 + $0x3d0] sm:$0xff]  }
  0x2f   :  { %1417 = vmatprep.mubr.bf16.mxu1 %v1650_v23  ;;  %v44_v23 = vld [vmem:[%s2671_s0 + $0xe8] sm:$0xff] }
  0x30   :  { %1866 = vmatpush3.bf16.msra.mxu0 %v2073_v54  ;;  %v2113_v54 = vld [vmem:[%s2670_s1 + $0x228] sm:$0xff]  }
  0x31   :  { %1894 = vmatpush3.bf16.msra.mxu1 %v2074_v55  ;;  %1867 = vmatprep.subr.bf16.mxu0 %v2075_v56  ;;  %v2114_v55 = vld [vmem:[%s2670_s1 + $0x2a8] sm:$0xff]   ;;  %v2115_v56 = vld [vmem:[%s2670_s1 + $0x270] sm:$0xff]  }
  0x32   :  { %1895 = vmatprep.subr.bf16.mxu1 %v2076_v57  ;;  %v2116_v57 = vld [vmem:[%s2670_s1 + $0x2f0] sm:$0xff]  }
  0x34   :  { %1868 = vmatpush3.bf16.msra.mxu0 %v2077_v58  ;;  %v2117_v58 = vld [vmem:[%s2670_s1 + $0x230] sm:$0xff]  }
  0x35   :  { %1896 = vmatpush3.bf16.msra.mxu1 %v2078_v59  ;;  %1869 = vmatprep.subr.bf16.mxu0 %v2079_v60  ;;  %v2118_v59 = vld [vmem:[%s2670_s1 + $0x2b0] sm:$0xff]   ;;  %v2119_v60 = vld [vmem:[%s2670_s1 + $0x278] sm:$0xff]  }
  0x36   :  { %1897 = vmatprep.subr.bf16.mxu1 %v2080_v61  ;;  %v2120_v61 = vld [vmem:[%s2670_s1 + $0x2f8] sm:$0xff]  }
  0x38   :  { %1870 = vmatpush3.bf16.msra.mxu0 %v2081_v1  ;;  %v27_v1 = vld [vmem:[%s2671_s0 + $0x60] sm:$0xff] }
  0x39   :  { %1898 = vmatpush3.bf16.msra.mxu1 %v2082_v3  ;;  %1871 = vmatprep.subr.bf16.mxu0 %v2083_v8  ;;  %v1651_v2 = vcombine.low %v19_v0, %v27_v1  ;;  %v1652_v3 = vcombine.high %v19_v0, %v27_v1  ;;  %v2123_v8 = vld [vmem:[%s2670_s1 + $0x340] sm:$0xff]  }
  0x3a   :  { %1899 = vmatprep.subr.bf16.mxu1 %v2084_v9  ;;  %v2124_v9 = vld [vmem:[%s2670_s1 + $0x3c0] sm:$0xff]  }
  0x3c   :  { %1872 = vmatpush3.bf16.msra.mxu0 %v2085_v10  ;;  %v2125_v10 = vld [vmem:[%s2670_s1 + $0x300] sm:$0xff]  }
  0x3d   :  { %1900 = vmatpush3.bf16.msra.mxu1 %v2086_v11  ;;  %1873 = vmatprep.subr.bf16.mxu0 %v2087_v12  ;;  %v2126_v11 = vld [vmem:[%s2670_s1 + $0x380] sm:$0xff]   ;;  %v2127_v12 = vld [vmem:[%s2670_s1 + $0x348] sm:$0xff]  }
  0x3e   :  { %1901 = vmatprep.subr.bf16.mxu1 %v2088_v13  ;;  %v2128_v13 = vld [vmem:[%s2670_s1 + $0x3c8] sm:$0xff]  }
  0x40   :  { %1874 = vmatpush3.bf16.msra.mxu0 %v2089_v14  ;;  %v2129_v14 = vld [vmem:[%s2670_s1 + $0x308] sm:$0xff]  }
  0x41   :  { %1902 = vmatpush3.bf16.msra.mxu1 %v2090_v15  ;;  %1915 = vmatprep.subr.bf16.mxu0 %v2091_v24  ;;  %v2130_v15 = vld [vmem:[%s2670_s1 + $0x388] sm:$0xff]  }
  0x42   :  { %1943 = vmatprep.subr.bf16.mxu1 %v2092_v25  ;;  %v2133_v25 = vld [vmem:[%s2670_s1 + $0x310] sm:$0xff]  }
  0x43   :  { %1369 = vmatmul.mubr.bf16.vlgmr.msra.gmra.mrb[8].mxu0 %v1647_v20  ;;  %v2131_v20 = vld [vmem:[%s2670_s1 + $0x350] sm:$0xff]  }
  0x44   :  { %1418 = vmatmul.mubr.bf16.vlgmr.msra.gmra.mrb[8].mxu1 %v1649_v22  ;;  %1916 = vmatpush3.bf16.msra.mxu0 %v2093_v26  ;;  %v36_v22 = vld [vmem:[%s2671_s0 + $0xa8] sm:$0xff] }
  0x45   :  { %1944 = vmatpush3.bf16.msra.mxu1 %v2094_v27  ;;  %1917 = vmatprep.subr.bf16.mxu0 %v2095_v28  ;;  %v1670_v24 = vcombine.high %v36_v22, %v44_v23  ;;  %v1669_v26 = vcombine.low %v36_v22, %v44_v23  ;;  %v2134_v27 = vld [vmem:[%s2670_s1 + $0x390] sm:$0xff]   ;;  %v2135_v28 = vld [vmem:[%s2670_s1 + $0x358] sm:$0xff]  }
  0x46   :  { %1945 = vmatprep.subr.bf16.mxu1 %v2096_v29  ;;  %1376 = vmatprep.mubr.bf16.mxu0 %v1664_v34  ;;  %v2136_v29 = vld [vmem:[%s2670_s1 + $0x3d8] sm:$0xff]   ;;  %v2141_v34 = vld [vmem:[%s2670_s1 + $0x320] sm:$0xff]  }
  0x47   :  { %1425 = vmatprep.mubr.bf16.mxu1 %v1666_v40  ;;  %v2147_v40 = vld [vmem:[%s2670_s1 + $0x370] sm:$0xff]  }
  0x48   :  { %1918 = vmatpush3.bf16.msra.mxu0 %v2097_v30  ;;  %v2137_v30 = vld [vmem:[%s2670_s1 + $0x318] sm:$0xff]  }
  0x49   :  { %1946 = vmatpush3.bf16.msra.mxu1 %v2098_v31  ;;  %1919 = vmatprep.subr.bf16.mxu0 %v2099_v36  ;;  %v2138_v31 = vld [vmem:[%s2670_s1 + $0x398] sm:$0xff]   ;;  %v2143_v36 = vld [vmem:[%s2670_s1 + $0x368] sm:$0xff]  }
  0x4a   :  { %1947 = vmatprep.subr.bf16.mxu1 %v2100_v37  ;;  %v2144_v37 = vld [vmem:[%s2670_s1 + $0x3e8] sm:$0xff]  }
  0x4b   :  { %1377 = vmatmul.mubr.bf16.gmra.mrb[12].mxu0 %v1663_v35  ;;  %v2142_v35 = vld [vmem:[%s2670_s1 + $0x3a0] sm:$0xff]  }
  0x4c   :  { %1920 = vmatpush3.bf16.msra.mxu0 %v2101_v41  ;;  %1426 = vmatmul.mubr.bf16.gmra.mrb[12].mxu1 %v1665_v42  ;;  %v2148_v41 = vld [vmem:[%s2670_s1 + $0x3f0] sm:$0xff]  }
  0x4d   :  { %1948 = vmatpush3.bf16.msra.mxu1 %v2102_v43  ;;  %1921 = vmatprep.subr.bf16.mxu0 %v2103_v44  ;;  %v2149_v42 = vld [vmem:[%s2670_s1 + $0x330] sm:$0xff]   ;;  %v2151_v44 = vld [vmem:[%s2670_s1 + $0x378] sm:$0xff]  }
  0x4e   :  { %1949 = vmatprep.subr.bf16.mxu1 %v2104_v45  ;;  %1466 = vmatprep.mubr.bf16.mxu0 %v1652_v3  ;;  %v2150_v43 = vld [vmem:[%s2670_s1 + $0x3b0] sm:$0xff]   ;;  %v2152_v45 = vld [vmem:[%s2670_s1 + $0x3f8] sm:$0xff]  }
  0x4f   :  { %1515 = vmatprep.mubr.bf16.mxu1 %v1654_v7 }
  0x50   :  { %1922 = vmatpush3.bf16.msra.mxu0 %v2105_v46  ;;  %v2153_v46 = vld [vmem:[%s2670_s1 + $0x338] sm:$0xff]  }
  0x51   :  { %1950 = vmatpush3.bf16.msra.mxu1 %v2106_v47  ;;  %1923 = vmatprep.subr.bf16.mxu0 %v2107_v48  ;;  %v2154_v47 = vld [vmem:[%s2670_s1 + $0x3b8] sm:$0xff]   ;;  %v21_v48 = vld [vmem:[%s2671_s0 + $0x30] sm:$0xff] }
  0x52   :  { %1951 = vmatprep.subr.bf16.mxu1 %v2108_v49  ;;  %v29_v49 = vld [vmem:[%s2671_s0 + $0x70] sm:$0xff] }
  0x54   :  { %1924 = vmatpush3.bf16.msra.mxu0 %v2109_v50  ;;  %v22_v50 = vld [vmem:[%s2671_s0 + $0x38] sm:$0xff] }
  0x55   :  { %1952 = vmatpush3.bf16.msra.mxu1 %v2110_v51  ;;  %1925 = vmatprep.subr.bf16.mxu0 %v2111_v52  ;;  %v1655_v51 = vcombine.low %v21_v48, %v29_v49  ;;  %v1656_v52 = vcombine.high %v21_v48, %v29_v49 }
  0x56   :  { %1953 = vmatprep.subr.bf16.mxu1 %v2112_v53  ;;  %v30_v53 = vld [vmem:[%s2671_s0 + $0x78] sm:$0xff] }
  0x58   :  { %1926 = vmatpush3.bf16.msra.mxu0 %v2113_v54  ;;  %v37_v54 = vld [vmem:[%s2671_s0 + $0xb0] sm:$0xff] }
  0x59   :  { %1954 = vmatpush3.bf16.msra.mxu1 %v2114_v55  ;;  %1927 = vmatprep.subr.bf16.mxu0 %v2115_v56  ;;  %v45_v55 = vld [vmem:[%s2671_s0 + $0xf0] sm:$0xff]  ;;  %v1657_v56 = vcombine.low %v22_v50, %v30_v53 }
  0x5a   :  { %1955 = vmatprep.subr.bf16.mxu1 %v2116_v57  ;;  %v1658_v57 = vcombine.high %v22_v50, %v30_v53 }
  0x5c   :  { %1928 = vmatpush3.bf16.msra.mxu0 %v2117_v58  ;;  %v1672_v58 = vcombine.high %v37_v54, %v45_v55 }
  0x5d   :  { %1956 = vmatpush3.bf16.msra.mxu1 %v2118_v59  ;;  %1929 = vmatprep.subr.bf16.mxu0 %v2119_v60  ;;  %v38_v59 = vld [vmem:[%s2671_s0 + $0xb8] sm:$0xff] }
  0x5e   :  { %1957 = vmatprep.subr.bf16.mxu1 %v2120_v61  ;;  %v46_v60 = vld [vmem:[%s2671_s0 + $0xf8] sm:$0xff] }
  0x5f   :  { %v1674_v61 = vcombine.high %v38_v59, %v46_v60 }
  0x60   :  { %1930 = vmatpush3.bf16.msra.mxu0 %v2121_v62  ;;  %v1671_v62 = vcombine.low %v37_v54, %v45_v55 }
  0x61   :  { %1958 = vmatpush3.bf16.msra.mxu1 %v2122_v63  ;;  %1971 = vmatprep.subr.bf16.mxu0 %v2123_v8  ;;  %v1673_v63 = vcombine.low %v38_v59, %v46_v60 }
  0x62   :  { %1999 = vmatprep.subr.bf16.mxu1 %v2124_v9 }
  0x63   :  { %1467 = vmatmul.mubr.bf16.vlgmr.msra.gmra.mrb[16].mxu0 %v1651_v2  ;;  %v1642_v2 = vld [vmem:[%s2672_s2] ss:$0 sm:$0xff] }
  0x64   :  { %1516 = vmatmul.mubr.bf16.vlgmr.msra.gmra.mrb[16].mxu1 %v1653_v6  ;;  %1972 = vmatpush3.bf16.msra.mxu0 %v2125_v10 }
  0x65   :  { %2000 = vmatpush3.bf16.msra.mxu1 %v2126_v11  ;;  %1973 = vmatprep.subr.bf16.mxu0 %v2127_v12 }
  0x66   :  { %2001 = vmatprep.subr.bf16.mxu1 %v2128_v13  ;;  %1474 = vmatprep.mubr.bf16.mxu0 %v1668_v18 }
  0x67   :  { %1523 = vmatprep.mubr.bf16.mxu1 %v1670_v24 }
  0x68   :  { %1974 = vmatpush3.bf16.msra.mxu0 %v2129_v14 }
  0x69   :  { %2002 = vmatpush3.bf16.msra.mxu1 %v2130_v15  ;;  %1975 = vmatprep.subr.bf16.mxu0 %v2131_v20 }
  0x6a   :  { %2003 = vmatprep.subr.bf16.mxu1 %v2132_v21 }
  0x6b   :  { %1475 = vmatmul.mubr.bf16.gmra.mrb[20].mxu0 %v1667_v19 }
  0x6c   :  { %1976 = vmatpush3.bf16.msra.mxu0 %v2133_v25  ;;  %1524 = vmatmul.mubr.bf16.gmra.mrb[20].mxu1 %v1669_v26 }
  0x6d   :  { %2004 = vmatpush3.bf16.msra.mxu1 %v2134_v27  ;;  %1977 = vmatprep.subr.bf16.mxu0 %v2135_v28 }
  0x6e   :  { %2005 = vmatprep.subr.bf16.mxu1 %v2136_v29  ;;  %1564 = vmatprep.mubr.bf16.mxu0 %v1656_v52 }
  0x6f   :  { %1613 = vmatprep.mubr.bf16.mxu1 %v1658_v57 }
  0x70   :  { %1978 = vmatpush3.bf16.msra.mxu0 %v2137_v30 }
  0x71   :  { %2006 = vmatpush3.bf16.msra.mxu1 %v2138_v31  ;;  %1979 = vmatprep.subr.bf16.mxu0 %v2139_v32 }
  0x72   :  { %2007 = vmatprep.subr.bf16.mxu1 %v2140_v33 }
  0x74   :  { %1980 = vmatpush3.bf16.msra.mxu0 %v2141_v34 }
  0x75   :  { %2008 = vmatpush3.bf16.msra.mxu1 %v2142_v35  ;;  %1981 = vmatprep.subr.bf16.mxu0 %v2143_v36 }
  0x76   :  { %2009 = vmatprep.subr.bf16.mxu1 %v2144_v37 }
  0x78   :  { %1982 = vmatpush3.bf16.msra.mxu0 %v2145_v38 }
  0x79   :  { %2010 = vmatpush3.bf16.msra.mxu1 %v2146_v39  ;;  %1983 = vmatprep.subr.bf16.mxu0 %v2147_v40 }
  0x7a   :  { %2011 = vmatprep.subr.bf16.mxu1 %v2148_v41 }
  0x7c   :  { %1984 = vmatpush3.bf16.msra.mxu0 %v2149_v42 }
  0x7d   :  { %2012 = vmatpush3.bf16.msra.mxu1 %v2150_v43  ;;  %1985 = vmatprep.subr.bf16.mxu0 %v2151_v44 }
  0x7e   :  { %2013 = vmatprep.subr.bf16.mxu1 %v2152_v45 }
  0x80   :  { %1986 = vmatpush3.bf16.msra.mxu0 %v2153_v46 }
  0x81   :  { %2014 = vmatpush3.bf16.msra.mxu1 %v2154_v47 }
  0x83   :  { %1565 = vmatmul.mubr.bf16.vlgmr.msra.gmra.mrb[24].mxu0 %v1655_v51 }
  0x84   :  { %1614 = vmatmul.mubr.bf16.vlgmr.msra.gmra.mrb[24].mxu1 %v1657_v56  ;;  %1572 = vmatprep.mubr.bf16.mxu0 %v1672_v58 }
  0x85   :  { %1621 = vmatprep.mubr.bf16.mxu1 %v1674_v61 }
  0x8b   :  { %1573 = vmatmul.mubr.bf16.gmra.mrb[28].mxu0 %v1671_v62 }
  0x8c   :  { %1622 = vmatmul.mubr.bf16.gmra.mrb[28].mxu1 %v1673_v63 }
  0xf6   :  { %v1819_v0 = vpop.f32.mrb[0].mxu0 }
  0xf7   :  { %v1847_v1 = vpop.f32.mrb[0].mxu1  ;;  %v1820_v3 = vpop.f32.mrb[1].mxu0 }
  0xf8   :  { %v1821_v4 = vadd.f32 %v1820_v3, %v1819_v0  ;;  %v1848_v5 = vpop.f32.mrb[1].mxu1  ;;  %v1822_v6 = vpop.f32.mrb[2].mxu0 }
  0xf9   :  { %v1849_v7 = vadd.f32 %v1848_v5, %v1847_v1  ;;  %v1850_v8 = vpop.f32.mrb[2].mxu1  ;;  %v1823_v9 = vpop.f32.mrb[3].mxu0 }
  0xfa   :  { %v1273_v10 = vadd.f32 %v1821_v4, %v1642_v2  ;;  %v1824_v11 = vadd.f32 %v1823_v9, %v1822_v6  ;;  %v1851_v12 = vpop.f32.mrb[3].mxu1 }
  0xfb   :  { %v1852_v13 = vadd.f32 %v1851_v12, %v1850_v8 }
  0xfc   :  { %v1322_v14 = vadd.f32 %v1849_v7, %v1273_v10  ;;  %v1276_v15 = vadd.f32 %v1824_v11, %v1642_v2 }
  0xfe   :  { %v1325_v16 = vadd.f32 %v1852_v13, %v1276_v15  ;;  %v1825_v17 = vpop.f32.mrb[4].mxu0 }
  0xff   :  { %v1826_v18 = vpop.f32.mrb[5].mxu0  ;;  %v1853_v21 = vpop.f32.mrb[4].mxu1 }
 0x100   :  { %v1827_v19 = vadd.f32 %v1826_v18, %v1825_v17  ;;  %v1828_v20 = vpop.f32.mrb[6].mxu0  ;;  %v1854_v25 = vpop.f32.mrb[5].mxu1 }
 0x101   :  { %v1829_v22 = vpop.f32.mrb[7].mxu0  ;;  %v1855_v26 = vadd.f32 %v1854_v25, %v1853_v21  ;;  %v1856_v27 = vpop.f32.mrb[6].mxu1 }
 0x102   :  { %v1281_v23 = vadd.f32 %v1827_v19, %v1642_v2  ;;  %v1830_v24 = vadd.f32 %v1829_v22, %v1828_v20  ;;  %v1857_v29 = vpop.f32.mrb[7].mxu1 }
 0x103   :  { %v1858_v31 = vadd.f32 %v1857_v29, %v1856_v27 }
 0x104   :  { %v1284_v28 = vadd.f32 %v1830_v24, %v1642_v2  ;;  %v1330_v30 = vadd.f32 %v1855_v26, %v1281_v23 }
 0x106   :  { %v1333_v32 = vadd.f32 %v1858_v31, %v1284_v28 }
 0x116   :  { %v1875_v33 = vpop.f32.mrb[8].mxu0 }
 0x117   :  { %v1903_v34 = vpop.f32.mrb[8].mxu1  ;;  %v1876_v35 = vpop.f32.mrb[9].mxu0 }
 0x118   :  { %v1904_v36 = vpop.f32.mrb[9].mxu1  ;;  %v1877_v37 = vadd.f32 %v1876_v35, %v1875_v33  ;;  %v1878_v39 = vpop.f32.mrb[10].mxu0 }
 0x119   :  { %v1905_v38 = vadd.f32 %v1904_v36, %v1903_v34  ;;  %v1906_v40 = vpop.f32.mrb[10].mxu1  ;;  %v1879_v41 = vpop.f32.mrb[11].mxu0 }
 0x11a   :  { %v1907_v42 = vpop.f32.mrb[11].mxu1  ;;  %v1371_v43 = vadd.f32 %v1877_v37, %v1322_v14  ;;  %v1880_v44 = vadd.f32 %v1879_v41, %v1878_v39 }
 0x11b   :  { %v1908_v45 = vadd.f32 %v1907_v42, %v1906_v40 }
 0x11c   :  { %v1420_v46 = vadd.f32 %v1905_v38, %v1371_v43  ;;  %v1374_v47 = vadd.f32 %v1880_v44, %v1325_v16 }
 0x11e   :  { %v1423_v48 = vadd.f32 %v1908_v45, %v1374_v47  ;;  %v1881_v49 = vpop.f32.mrb[12].mxu0 }
 0x11f   :  { %v1882_v50 = vpop.f32.mrb[13].mxu0  ;;  %v1909_v55 = vpop.f32.mrb[12].mxu1 }
 0x120   :  { %v1883_v51 = vadd.f32 %v1882_v50, %v1881_v49  ;;  %v1884_v52 = vpop.f32.mrb[14].mxu0  ;;  %v1910_v57 = vpop.f32.mrb[13].mxu1 }
 0x121   :  { %v1885_v53 = vpop.f32.mrb[15].mxu0  ;;  %v1911_v59 = vadd.f32 %v1910_v57, %v1909_v55  ;;  %v1912_v60 = vpop.f32.mrb[14].mxu1 }
 0x122   :  { %v1379_v54 = vadd.f32 %v1883_v51, %v1330_v30  ;;  %v1886_v56 = vadd.f32 %v1885_v53, %v1884_v52  ;;  %v1913_v61 = vpop.f32.mrb[15].mxu1 }
 0x123   :  { %v1914_v63 = vadd.f32 %v1913_v61, %v1912_v60 }
 0x124   :  { %v1382_v58 = vadd.f32 %v1886_v56, %v1333_v32  ;;  %v1428_v62 = vadd.f32 %v1911_v59, %v1379_v54 }
 0x126   :  { %v1431_v0 = vadd.f32 %v1914_v63, %v1382_v58 }
 0x136   :  { %v1931_v1 = vpop.f32.mrb[16].mxu0 }
 0x137   :  { %v1959_v2 = vpop.f32.mrb[16].mxu1  ;;  %v1932_v3 = vpop.f32.mrb[17].mxu0 }
 0x138   :  { %v1933_v4 = vadd.f32 %v1932_v3, %v1931_v1  ;;  %v1960_v5 = vpop.f32.mrb[17].mxu1  ;;  %v1934_v6 = vpop.f32.mrb[18].mxu0 }
 0x139   :  { %v1961_v7 = vadd.f32 %v1960_v5, %v1959_v2  ;;  %v1962_v8 = vpop.f32.mrb[18].mxu1  ;;  %v1935_v9 = vpop.f32.mrb[19].mxu0 }
 0x13a   :  { %v1469_v10 = vadd.f32 %v1933_v4, %v1420_v46  ;;  %v1936_v11 = vadd.f32 %v1935_v9, %v1934_v6  ;;  %v1963_v12 = vpop.f32.mrb[19].mxu1 }
 0x13b   :  { %v1964_v13 = vadd.f32 %v1963_v12, %v1962_v8 }
 0x13c   :  { %v1518_v14 = vadd.f32 %v1961_v7, %v1469_v10  ;;  %v1472_v15 = vadd.f32 %v1936_v11, %v1423_v48 }
 0x13e   :  { %v1521_v16 = vadd.f32 %v1964_v13, %v1472_v15  ;;  %v1937_v17 = vpop.f32.mrb[20].mxu0 }
 0x13f   :  { %v1938_v18 = vpop.f32.mrb[21].mxu0  ;;  %v1965_v21 = vpop.f32.mrb[20].mxu1 }
 0x140   :  { %v1939_v19 = vadd.f32 %v1938_v18, %v1937_v17  ;;  %v1940_v20 = vpop.f32.mrb[22].mxu0  ;;  %v1966_v25 = vpop.f32.mrb[21].mxu1 }
 0x141   :  { %v1941_v22 = vpop.f32.mrb[23].mxu0  ;;  %v1967_v26 = vadd.f32 %v1966_v25, %v1965_v21  ;;  %v1968_v27 = vpop.f32.mrb[22].mxu1 }
 0x142   :  { %v1477_v23 = vadd.f32 %v1939_v19, %v1428_v62  ;;  %v1942_v24 = vadd.f32 %v1941_v22, %v1940_v20  ;;  %v1969_v29 = vpop.f32.mrb[23].mxu1 }
 0x143   :  { %v1970_v31 = vadd.f32 %v1969_v29, %v1968_v27 }
 0x144   :  { %v1480_v28 = vadd.f32 %v1942_v24, %v1431_v0  ;;  %v1526_v30 = vadd.f32 %v1967_v26, %v1477_v23 }
 0x146   :  { %v1529_v32 = vadd.f32 %v1970_v31, %v1480_v28 }
 0x156   :  { %v1987_v33 = vpop.f32.mrb[24].mxu0 }
 0x157   :  { %v2015_v34 = vpop.f32.mrb[24].mxu1  ;;  %v1988_v35 = vpop.f32.mrb[25].mxu0 }
 0x158   :  { %v1989_v36 = vadd.f32 %v1988_v35, %v1987_v33  ;;  %v2016_v37 = vpop.f32.mrb[25].mxu1  ;;  %v1990_v38 = vpop.f32.mrb[26].mxu0 }
 0x159   :  { %v2017_v39 = vadd.f32 %v2016_v37, %v2015_v34  ;;  %v2018_v40 = vpop.f32.mrb[26].mxu1  ;;  %v1991_v41 = vpop.f32.mrb[27].mxu0 }
 0x15a   :  { %v1567_v42 = vadd.f32 %v1989_v36, %v1518_v14  ;;  %v1992_v43 = vadd.f32 %v1991_v41, %v1990_v38  ;;  %v2019_v44 = vpop.f32.mrb[27].mxu1 }
 0x15b   :  { %v2020_v45 = vadd.f32 %v2019_v44, %v2018_v40 }
 0x15c   :  { %v1616_v46 = vadd.f32 %v2017_v39, %v1567_v42  ;;  %v1570_v47 = vadd.f32 %v1992_v43, %v1521_v16 }
 0x15e   :  { %v1630_v48 = vmax.f32 %v1616_v46, 0.0  ;;  %v1619_v49 = vadd.f32 %v2020_v45, %v1570_v47  ;;  %v1993_v50 = vpop.f32.mrb[28].mxu0 }
 0x15f   :  { %v2021_v51 = vpop.f32.mrb[28].mxu1  ;;  %v1994_v52 = vpop.f32.mrb[29].mxu0 }
 0x160   :  { %1634 = vst [vmem:[%s2673_s3] sm:$0xff] %v1630_v48  ;;  %v1631_v53 = vmax.f32 %v1619_v49, 0.0  ;;  %v1995_v54 = vadd.f32 %v1994_v52, %v1993_v50  ;;  %v2022_v55 = vpop.f32.mrb[29].mxu1  ;;  %v1996_v56 = vpop.f32.mrb[30].mxu0 }
 0x161   :  { %v2023_v57 = vadd.f32 %v2022_v55, %v2021_v51  ;;  %v2024_v58 = vpop.f32.mrb[30].mxu1  ;;  %v1997_v59 = vpop.f32.mrb[31].mxu0 }
 0x162   :  { %1635 = vst [vmem:[%s2673_s3 + $0x8] sm:$0xff] %v1631_v53  ;;  %v1575_v60 = vadd.f32 %v1995_v54, %v1526_v30  ;;  %v1998_v61 = vadd.f32 %v1997_v59, %v1996_v56  ;;  %v2025_v62 = vpop.f32.mrb[31].mxu1 }
 0x163   :  { %v2026_v63 = vadd.f32 %v2025_v62, %v2024_v58 }
 0x164   :  { %v1624_v0 = vadd.f32 %v2023_v57, %v1575_v60  ;;  %v1578_v1 = vadd.f32 %v1998_v61, %v1529_v32 }
 0x166   :  { %v1632_v2 = vmax.f32 %v1624_v0, 0.0  ;;  %v1627_v3 = vadd.f32 %v2026_v63, %v1578_v1 }
 0x168   :  { %1636 = vst [vmem:[%s2673_s3 + $0x10] sm:$0xff] %v1632_v2  ;;  %v1633_v4 = vmax.f32 %v1627_v3, 0.0 }
 0x16a   :  { %1637 = vst [vmem:[%s2673_s3 + $0x18] sm:$0xff] %v1633_v4 }

// kernel: conv_vlae_encoder_celeba_forward.9
= control target key start
LH: loop header
LB: loop body
LE: loop exit
PB: predicated region body
PF: predicated region fallthrough
CT: control target
= control target key end

     0   :  { %s3519_s1 = inlined_call_operand.vmem [shape: bf16[2048,256], index: 1, kind: input, shape index: {}]   ;;  %s3520_s0 = inlined_call_operand.vmem [shape: bf16[8,2048], index: 0, kind: input, shape index: {}]   ;;  %s3521_s2 = inlined_call_operand.vmem [shape: f32[1,256], index: 2, kind: input, shape index: {}]   ;;  %s3522_s3 = inlined_call_operand.vmem [shape: f32[8,256], index: 3, kind: output, shape index: {}]  }
   0x1   :  { %v2262_v0 = vld [vmem:[%s3519_s1 + $0x4] ss:$8 sps:$4 sm:$0xff]   ;;  %v2266_v2 = vld [vmem:[%s3519_s1] ss:$8 sps:$4 sm:$0xff]   ;;  %v2268_v4 = vld [vmem:[%s3519_s1 + $0x14] ss:$8 sps:$4 sm:$0xff]  }
   0x2   :  { %v2264_v1 = vld [vmem:[%s3519_s1 + $0x404] ss:$8 sps:$4 sm:$0xff]   ;;  %1626 = vmatprep.subr.bf16.mxu1 %v2262_v0  ;;  %v2267_v3 = vld [vmem:[%s3519_s1 + $0x400] ss:$8 sps:$4 sm:$0xff]   ;;  %v2270_v5 = vld [vmem:[%s3519_s1 + $0x414] ss:$8 sps:$4 sm:$0xff]  }
   0x3   :  { %1790 = vmatprep.subr.bf16.mxu0 %v2264_v1  ;;  %1627 = vmatpush1.bf16.msra.mxu1 %v2266_v2  ;;  %v2272_v6 = vld [vmem:[%s3519_s1 + $0x10] ss:$8 sps:$4 sm:$0xff]   ;;  %v2274_v8 = vld [vmem:[%s3519_s1 + $0x24] ss:$8 sps:$4 sm:$0xff]   ;;  %v2278_v10 = vld [vmem:[%s3519_s1 + $0x20] ss:$8 sps:$4 sm:$0xff]  }
   0x4   :  { %1791 = vmatpush1.bf16.msra.mxu0 %v2267_v3  ;;  %1628 = vmatprep.subr.bf16.mxu1 %v2268_v4  ;;  %v2273_v7 = vld [vmem:[%s3519_s1 + $0x410] ss:$8 sps:$4 sm:$0xff]   ;;  %v2276_v9 = vld [vmem:[%s3519_s1 + $0x424] ss:$8 sps:$4 sm:$0xff]   ;;  %v2279_v11 = vld [vmem:[%s3519_s1 + $0x420] ss:$8 sps:$4 sm:$0xff]  }
   0x5   :  { %1792 = vmatprep.subr.bf16.mxu0 %v2270_v5  ;;  %v2280_v12 = vld [vmem:[%s3519_s1 + $0x34] ss:$8 sps:$4 sm:$0xff]   ;;  %v2284_v14 = vld [vmem:[%s3519_s1 + $0x30] ss:$8 sps:$4 sm:$0xff]   ;;  %v2286_v16 = vld [vmem:[%s3519_s1 + $0x44] ss:$8 sps:$4 sm:$0xff]  }
   0x6   :  { %v2282_v13 = vld [vmem:[%s3519_s1 + $0x434] ss:$8 sps:$4 sm:$0xff]   ;;  %v2285_v15 = vld [vmem:[%s3519_s1 + $0x430] ss:$8 sps:$4 sm:$0xff]   ;;  %v2288_v17 = vld [vmem:[%s3519_s1 + $0x444] ss:$8 sps:$4 sm:$0xff]  }
   0x7   :  { %1629 = vmatpush1.bf16.msra.mxu1 %v2272_v6  ;;  %v2290_v18 = vld [vmem:[%s3519_s1 + $0x40] ss:$8 sps:$4 sm:$0xff]   ;;  %v2292_v20 = vld [vmem:[%s3519_s1 + $0x54] ss:$8 sps:$4 sm:$0xff]   ;;  %v2296_v22 = vld [vmem:[%s3519_s1 + $0x50] ss:$8 sps:$4 sm:$0xff]  }
   0x8   :  { %1793 = vmatpush1.bf16.msra.mxu0 %v2273_v7  ;;  %1630 = vmatprep.subr.bf16.mxu1 %v2274_v8  ;;  %v2291_v19 = vld [vmem:[%s3519_s1 + $0x440] ss:$8 sps:$4 sm:$0xff]   ;;  %v2294_v21 = vld [vmem:[%s3519_s1 + $0x454] ss:$8 sps:$4 sm:$0xff]   ;;  %v2297_v23 = vld [vmem:[%s3519_s1 + $0x450] ss:$8 sps:$4 sm:$0xff]  }
   0x9   :  { %1794 = vmatprep.subr.bf16.mxu0 %v2276_v9  ;;  %v2298_v24 = vld [vmem:[%s3519_s1 + $0x64] ss:$8 sps:$4 sm:$0xff]   ;;  %v2302_v26 = vld [vmem:[%s3519_s1 + $0x60] ss:$8 sps:$4 sm:$0xff]   ;;  %v2304_v28 = vld [vmem:[%s3519_s1 + $0x74] ss:$8 sps:$4 sm:$0xff]  }
   0xa   :  { %v2300_v25 = vld [vmem:[%s3519_s1 + $0x464] ss:$8 sps:$4 sm:$0xff]   ;;  %v2303_v27 = vld [vmem:[%s3519_s1 + $0x460] ss:$8 sps:$4 sm:$0xff]   ;;  %v2306_v29 = vld [vmem:[%s3519_s1 + $0x474] ss:$8 sps:$4 sm:$0xff]  }
   0xb   :  { %1631 = vmatpush1.bf16.msra.mxu1 %v2278_v10  ;;  %v2308_v30 = vld [vmem:[%s3519_s1 + $0x70] ss:$8 sps:$4 sm:$0xff]   ;;  %v2310_v32 = vld [vmem:[%s3519_s1 + $0x84] ss:$8 sps:$4 sm:$0xff]   ;;  %v2314_v34 = vld [vmem:[%s3519_s1 + $0x80] ss:$8 sps:$4 sm:$0xff]  }
   0xc   :  { %1795 = vmatpush1.bf16.msra.mxu0 %v2279_v11  ;;  %1632 = vmatprep.subr.bf16.mxu1 %v2280_v12  ;;  %v2309_v31 = vld [vmem:[%s3519_s1 + $0x470] ss:$8 sps:$4 sm:$0xff]   ;;  %v2312_v33 = vld [vmem:[%s3519_s1 + $0x484] ss:$8 sps:$4 sm:$0xff]   ;;  %v2315_v35 = vld [vmem:[%s3519_s1 + $0x480] ss:$8 sps:$4 sm:$0xff]  }
   0xd   :  { %1796 = vmatprep.subr.bf16.mxu0 %v2282_v13  ;;  %v2316_v36 = vld [vmem:[%s3519_s1 + $0x94] ss:$8 sps:$4 sm:$0xff]   ;;  %v2320_v38 = vld [vmem:[%s3519_s1 + $0x90] ss:$8 sps:$4 sm:$0xff]   ;;  %v2322_v40 = vld [vmem:[%s3519_s1 + $0xa4] ss:$8 sps:$4 sm:$0xff]  }
   0xe   :  { %v2318_v37 = vld [vmem:[%s3519_s1 + $0x494] ss:$8 sps:$4 sm:$0xff]   ;;  %v2321_v39 = vld [vmem:[%s3519_s1 + $0x490] ss:$8 sps:$4 sm:$0xff]   ;;  %v2324_v41 = vld [vmem:[%s3519_s1 + $0x4a4] ss:$8 sps:$4 sm:$0xff]  }
   0xf   :  { %1633 = vmatpush1.bf16.msra.mxu1 %v2284_v14  ;;  %v2326_v42 = vld [vmem:[%s3519_s1 + $0xa0] ss:$8 sps:$4 sm:$0xff]   ;;  %v2328_v44 = vld [vmem:[%s3519_s1 + $0xb4] ss:$8 sps:$4 sm:$0xff]   ;;  %v2332_v47 = vld [vmem:[%s3519_s1 + $0xb0] ss:$8 sps:$4 sm:$0xff]  }
  0x10   :  { %1797 = vmatpush1.bf16.msra.mxu0 %v2285_v15  ;;  %1634 = vmatprep.subr.bf16.mxu1 %v2286_v16  ;;  %v2327_v43 = vld [vmem:[%s3519_s1 + $0x4a0] ss:$8 sps:$4 sm:$0xff]   ;;  %v2330_v45 = vld [vmem:[%s3519_s1 + $0x4b4] ss:$8 sps:$4 sm:$0xff]   ;;  %v2333_v49 = vld [vmem:[%s3519_s1 + $0x4b0] ss:$8 sps:$4 sm:$0xff]  }
  0x11   :  { %1798 = vmatprep.subr.bf16.mxu0 %v2288_v17  ;;  %v14_v46 = vld [vmem:[%s3520_s0] sm:$0xff]  ;;  %v2340_v56 = vld [vmem:[%s3519_s1 + $0xd4] ss:$8 sps:$4 sm:$0xff]   ;;  %v2344_v58 = vld [vmem:[%s3519_s1 + $0xd0] ss:$8 sps:$4 sm:$0xff]  }
  0x12   :  { %v1963_v48 = vcombine.high %v14_v46, %v14_v46  ;;  %v18_v50 = vld [vmem:[%s3520_s0 + $0x20] sm:$0xff]  ;;  %v2342_v57 = vld [vmem:[%s3519_s1 + $0x4d4] ss:$8 sps:$4 sm:$0xff]   ;;  %v2345_v59 = vld [vmem:[%s3519_s1 + $0x4d0] ss:$8 sps:$4 sm:$0xff]   ;;  %v1962_v6 = vcombine.low %v14_v46, %v14_v46 }
  0x13   :  { %1635 = vmatpush1.bf16.msra.mxu1 %v2290_v18  ;;  %v2334_v51 = vld [vmem:[%s3519_s1 + $0xc4] ss:$8 sps:$4 sm:$0xff]   ;;  %v1971_v53 = vcombine.high %v18_v50, %v18_v50  ;;  %v2338_v54 = vld [vmem:[%s3519_s1 + $0xc0] ss:$8 sps:$4 sm:$0xff]   ;;  %v2352_v0 = vld [vmem:[%s3519_s1 + $0xf4] ss:$8 sps:$4 sm:$0xff]   ;;  %v1970_v7 = vcombine.low %v18_v50, %v18_v50 }
  0x14   :  { %1799 = vmatpush1.bf16.msra.mxu0 %v2291_v19  ;;  %1636 = vmatprep.subr.bf16.mxu1 %v2292_v20  ;;  %v2336_v52 = vld [vmem:[%s3519_s1 + $0x4c4] ss:$8 sps:$4 sm:$0xff]   ;;  %v2339_v55 = vld [vmem:[%s3519_s1 + $0x4c0] ss:$8 sps:$4 sm:$0xff]   ;;  %v2354_v1 = vld [vmem:[%s3519_s1 + $0x4f4] ss:$8 sps:$4 sm:$0xff]  }
  0x15   :  { %1800 = vmatprep.subr.bf16.mxu0 %v2294_v21  ;;  %1658 = vmatprep.mubr.bf16.mxu1 %v1963_v48  ;;  %v2346_v60 = vld [vmem:[%s3519_s1 + $0xe4] ss:$8 sps:$4 sm:$0xff]   ;;  %v2350_v62 = vld [vmem:[%s3519_s1 + $0xe0] ss:$8 sps:$4 sm:$0xff]   ;;  %v2356_v2 = vld [vmem:[%s3519_s1 + $0xf0] ss:$8 sps:$4 sm:$0xff]  }
  0x16   :  { %1822 = vmatprep.mubr.bf16.mxu0 %v1971_v53  ;;  %v2348_v61 = vld [vmem:[%s3519_s1 + $0x4e4] ss:$8 sps:$4 sm:$0xff]   ;;  %v2351_v63 = vld [vmem:[%s3519_s1 + $0x4e0] ss:$8 sps:$4 sm:$0xff]   ;;  %v2357_v3 = vld [vmem:[%s3519_s1 + $0x4f0] ss:$8 sps:$4 sm:$0xff]  }
  0x17   :  { %1637 = vmatpush1.bf16.msra.mxu1 %v2296_v22  ;;  %v2362_v4 = vld [vmem:[%s3519_s1 + $0x104] ss:$8 sps:$4 sm:$0xff]   ;;  %v2360_v8 = vld [vmem:[%s3519_s1 + $0x100] ss:$8 sps:$4 sm:$0xff]   ;;  %v2370_v10 = vld [vmem:[%s3519_s1 + $0x114] ss:$8 sps:$4 sm:$0xff]  }
  0x18   :  { %1801 = vmatpush1.bf16.msra.mxu0 %v2297_v23  ;;  %1638 = vmatprep.subr.bf16.mxu1 %v2298_v24  ;;  %v2367_v5 = vld [vmem:[%s3519_s1 + $0x504] ss:$8 sps:$4 sm:$0xff]   ;;  %v2365_v9 = vld [vmem:[%s3519_s1 + $0x500] ss:$8 sps:$4 sm:$0xff]   ;;  %v2373_v11 = vld [vmem:[%s3519_s1 + $0x514] ss:$8 sps:$4 sm:$0xff]  }
  0x19   :  { %1802 = vmatprep.subr.bf16.mxu0 %v2300_v25  ;;  %v2368_v12 = vld [vmem:[%s3519_s1 + $0x110] ss:$8 sps:$4 sm:$0xff]   ;;  %v2376_v14 = vld [vmem:[%s3519_s1 + $0x124] ss:$8 sps:$4 sm:$0xff]   ;;  %v2374_v16 = vld [vmem:[%s3519_s1 + $0x120] ss:$8 sps:$4 sm:$0xff]  }
  0x1a   :  { %v2371_v13 = vld [vmem:[%s3519_s1 + $0x510] ss:$8 sps:$4 sm:$0xff]   ;;  %v2379_v15 = vld [vmem:[%s3519_s1 + $0x524] ss:$8 sps:$4 sm:$0xff]   ;;  %v2377_v17 = vld [vmem:[%s3519_s1 + $0x520] ss:$8 sps:$4 sm:$0xff]  }
  0x1b   :  { %1639 = vmatpush1.bf16.msra.mxu1 %v2302_v26  ;;  %v2382_v18 = vld [vmem:[%s3519_s1 + $0x134] ss:$8 sps:$4 sm:$0xff]   ;;  %v2380_v20 = vld [vmem:[%s3519_s1 + $0x130] ss:$8 sps:$4 sm:$0xff]   ;;  %v2388_v22 = vld [vmem:[%s3519_s1 + $0x144] ss:$8 sps:$4 sm:$0xff]  }
  0x1c   :  { %1803 = vmatpush1.bf16.msra.mxu0 %v2303_v27  ;;  %1640 = vmatprep.subr.bf16.mxu1 %v2304_v28  ;;  %v2385_v19 = vld [vmem:[%s3519_s1 + $0x534] ss:$8 sps:$4 sm:$0xff]   ;;  %v2383_v21 = vld [vmem:[%s3519_s1 + $0x530] ss:$8 sps:$4 sm:$0xff]   ;;  %v2391_v23 = vld [vmem:[%s3519_s1 + $0x544] ss:$8 sps:$4 sm:$0xff]  }
  0x1d   :  { %1804 = vmatprep.subr.bf16.mxu0 %v2306_v29  ;;  %v2386_v24 = vld [vmem:[%s3519_s1 + $0x140] ss:$8 sps:$4 sm:$0xff]   ;;  %v2394_v26 = vld [vmem:[%s3519_s1 + $0x154] ss:$8 sps:$4 sm:$0xff]   ;;  %v2392_v28 = vld [vmem:[%s3519_s1 + $0x150] ss:$8 sps:$4 sm:$0xff]  }
  0x1e   :  { %v2389_v25 = vld [vmem:[%s3519_s1 + $0x540] ss:$8 sps:$4 sm:$0xff]   ;;  %v2397_v27 = vld [vmem:[%s3519_s1 + $0x554] ss:$8 sps:$4 sm:$0xff]   ;;  %v2395_v29 = vld [vmem:[%s3519_s1 + $0x550] ss:$8 sps:$4 sm:$0xff]  }
  0x1f   :  { %1641 = vmatpush1.bf16.msra.mxu1 %v2308_v30  ;;  %v2400_v30 = vld [vmem:[%s3519_s1 + $0x164] ss:$8 sps:$4 sm:$0xff]   ;;  %v2418_v46 = vld [vmem:[%s3519_s1 + $0x194] ss:$8 sps:$4 sm:$0xff]   ;;  %v2416_v48 = vld [vmem:[%s3519_s1 + $0x190] ss:$8 sps:$4 sm:$0xff]  }
  0x20   :  { %1805 = vmatpush1.bf16.msra.mxu0 %v2309_v31  ;;  %1642 = vmatprep.subr.bf16.mxu1 %v2310_v32  ;;  %v2403_v31 = vld [vmem:[%s3519_s1 + $0x564] ss:$8 sps:$4 sm:$0xff]   ;;  %v2425_v53 = vld [vmem:[%s3519_s1 + $0x5a0] ss:$8 sps:$4 sm:$0xff]  }
  0x21   :  { %1806 = vmatprep.subr.bf16.mxu0 %v2312_v33  ;;  %v2961_v32 = vld [vmem:[%s3520_s0 + $0x8] sm:$0xff] }
  0x22   :  { %v2398_v33 = vld [vmem:[%s3519_s1 + $0x160] ss:$8 sps:$4 sm:$0xff]   ;;  %v2424_v50 = vld [vmem:[%s3519_s1 + $0x1a4] ss:$8 sps:$4 sm:$0xff]  }
  0x23   :  { %1643 = vmatpush1.bf16.msra.mxu1 %v2314_v34  ;;  %v2401_v34 = vld [vmem:[%s3519_s1 + $0x560] ss:$8 sps:$4 sm:$0xff]  }
  0x24   :  { %1807 = vmatpush1.bf16.msra.mxu0 %v2315_v35  ;;  %1644 = vmatprep.subr.bf16.mxu1 %v2316_v36  ;;  %v1965_v35 = vcombine.high %v2961_v32, %v2961_v32  ;;  %v2974_v36 = vld [vmem:[%s3520_s0 + $0x28] sm:$0xff] }
  0x25   :  { %1808 = vmatprep.subr.bf16.mxu0 %v2318_v37  ;;  %v2406_v37 = vld [vmem:[%s3519_s1 + $0x174] ss:$8 sps:$4 sm:$0xff]  }
  0x27   :  { %1645 = vmatpush1.bf16.msra.mxu1 %v2320_v38  ;;  %v1973_v38 = vcombine.high %v2974_v36, %v2974_v36 }
  0x28   :  { %1809 = vmatpush1.bf16.msra.mxu0 %v2321_v39  ;;  %1646 = vmatprep.subr.bf16.mxu1 %v2322_v40  ;;  %v2409_v39 = vld [vmem:[%s3519_s1 + $0x574] ss:$8 sps:$4 sm:$0xff]   ;;  %v2404_v40 = vld [vmem:[%s3519_s1 + $0x170] ss:$8 sps:$4 sm:$0xff]  }
  0x29   :  { %1810 = vmatprep.subr.bf16.mxu0 %v2324_v41  ;;  %v2407_v41 = vld [vmem:[%s3519_s1 + $0x570] ss:$8 sps:$4 sm:$0xff]  }
  0x2b   :  { %1647 = vmatpush1.bf16.msra.mxu1 %v2326_v42  ;;  %v2412_v42 = vld [vmem:[%s3519_s1 + $0x184] ss:$8 sps:$4 sm:$0xff]  }
  0x2c   :  { %1811 = vmatpush1.bf16.msra.mxu0 %v2327_v43  ;;  %1648 = vmatprep.subr.bf16.mxu1 %v2328_v44  ;;  %v2415_v43 = vld [vmem:[%s3519_s1 + $0x584] ss:$8 sps:$4 sm:$0xff]   ;;  %v2410_v44 = vld [vmem:[%s3519_s1 + $0x180] ss:$8 sps:$4 sm:$0xff]  }
  0x2d   :  { %1812 = vmatprep.subr.bf16.mxu0 %v2330_v45  ;;  %v2413_v45 = vld [vmem:[%s3519_s1 + $0x580] ss:$8 sps:$4 sm:$0xff]  }
  0x2f   :  { %1649 = vmatpush1.bf16.msra.mxu1 %v2332_v47  ;;  %v2421_v47 = vld [vmem:[%s3519_s1 + $0x594] ss:$8 sps:$4 sm:$0xff]  }
  0x30   :  { %1813 = vmatpush1.bf16.msra.mxu0 %v2333_v49  ;;  %1650 = vmatprep.subr.bf16.mxu1 %v2334_v51  ;;  %v2419_v49 = vld [vmem:[%s3519_s1 + $0x590] ss:$8 sps:$4 sm:$0xff]   ;;  %v2427_v51 = vld [vmem:[%s3519_s1 + $0x5a4] ss:$8 sps:$4 sm:$0xff]  }
  0x31   :  { %1814 = vmatprep.subr.bf16.mxu0 %v2336_v52  ;;  %v2422_v52 = vld [vmem:[%s3519_s1 + $0x1a0] ss:$8 sps:$4 sm:$0xff]  }
  0x33   :  { %1651 = vmatpush1.bf16.msra.mxu1 %v2338_v54  ;;  %v2430_v54 = vld [vmem:[%s3519_s1 + $0x1b4] ss:$8 sps:$4 sm:$0xff]  }
  0x34   :  { %1815 = vmatpush1.bf16.msra.mxu0 %v2339_v55  ;;  %1652 = vmatprep.subr.bf16.mxu1 %v2340_v56  ;;  %v2433_v55 = vld [vmem:[%s3519_s1 + $0x5b4] ss:$8 sps:$4 sm:$0xff]   ;;  %v2428_v56 = vld [vmem:[%s3519_s1 + $0x1b0] ss:$8 sps:$4 sm:$0xff]  }
  0x35   :  { %1816 = vmatprep.subr.bf16.mxu0 %v2342_v57  ;;  %v2431_v57 = vld [vmem:[%s3519_s1 + $0x5b0] ss:$8 sps:$4 sm:$0xff]  }
  0x37   :  { %1653 = vmatpush1.bf16.msra.mxu1 %v2344_v58  ;;  %v2436_v58 = vld [vmem:[%s3519_s1 + $0x1c4] ss:$8 sps:$4 sm:$0xff]  }
  0x38   :  { %1817 = vmatpush1.bf16.msra.mxu0 %v2345_v59  ;;  %1654 = vmatprep.subr.bf16.mxu1 %v2346_v60  ;;  %v2439_v59 = vld [vmem:[%s3519_s1 + $0x5c4] ss:$8 sps:$4 sm:$0xff]   ;;  %v2434_v60 = vld [vmem:[%s3519_s1 + $0x1c0] ss:$8 sps:$4 sm:$0xff]  }
  0x39   :  { %1818 = vmatprep.subr.bf16.mxu0 %v2348_v61  ;;  %v2437_v61 = vld [vmem:[%s3519_s1 + $0x5c0] ss:$8 sps:$4 sm:$0xff]  }
  0x3b   :  { %1655 = vmatpush1.bf16.msra.mxu1 %v2350_v62  ;;  %v2442_v62 = vld [vmem:[%s3519_s1 + $0x1d4] ss:$8 sps:$4 sm:$0xff]  }
  0x3c   :  { %1819 = vmatpush1.bf16.msra.mxu0 %v2351_v63  ;;  %1656 = vmatprep.subr.bf16.mxu1 %v2352_v0  ;;  %v2445_v63 = vld [vmem:[%s3519_s1 + $0x5d4] ss:$8 sps:$4 sm:$0xff]   ;;  %v2440_v0 = vld [vmem:[%s3519_s1 + $0x1d0] ss:$8 sps:$4 sm:$0xff]  }
  0x3d   :  { %1820 = vmatprep.subr.bf16.mxu0 %v2354_v1  ;;  %v2443_v1 = vld [vmem:[%s3519_s1 + $0x5d0] ss:$8 sps:$4 sm:$0xff]  }
  0x3f   :  { %1657 = vmatpush1.bf16.msra.mxu1 %v2356_v2  ;;  %v2448_v2 = vld [vmem:[%s3519_s1 + $0x1e4] ss:$8 sps:$4 sm:$0xff]  }
  0x40   :  { %1821 = vmatpush1.bf16.msra.mxu0 %v2357_v3  ;;  %1667 = vmatprep.subr.bf16.mxu1 %v2362_v4  ;;  %v2451_v3 = vld [vmem:[%s3519_s1 + $0x5e4] ss:$8 sps:$4 sm:$0xff]   ;;  %v2446_v4 = vld [vmem:[%s3519_s1 + $0x1e0] ss:$8 sps:$4 sm:$0xff]  }
  0x41   :  { %1831 = vmatprep.subr.bf16.mxu0 %v2367_v5  ;;  %v2449_v5 = vld [vmem:[%s3519_s1 + $0x5e0] ss:$8 sps:$4 sm:$0xff]  }
  0x42   :  { %1659 = vmatmul.mubr.bf16.vlgmr.msra.gmra.mrb[0].mxu1 %v1962_v6  ;;  %v2454_v6 = vld [vmem:[%s3519_s1 + $0x1f4] ss:$8 sps:$4 sm:$0xff]  }
  0x43   :  { %1823 = vmatmul.mubr.bf16.vlgmr.msra.gmra.mrb[0].mxu0 %v1970_v7  ;;  %1668 = vmatpush1.bf16.msra.mxu1 %v2360_v8  ;;  %v2457_v7 = vld [vmem:[%s3519_s1 + $0x5f4] ss:$8 sps:$4 sm:$0xff]   ;;  %v2452_v8 = vld [vmem:[%s3519_s1 + $0x1f0] ss:$8 sps:$4 sm:$0xff]  }
  0x44   :  { %1832 = vmatpush1.bf16.msra.mxu0 %v2365_v9  ;;  %1669 = vmatprep.subr.bf16.mxu1 %v2370_v10  ;;  %v2455_v9 = vld [vmem:[%s3519_s1 + $0x5f0] ss:$8 sps:$4 sm:$0xff]   ;;  %v2462_v10 = vld [vmem:[%s3519_s1 + $0x204] ss:$8 sps:$4 sm:$0xff]  }
  0x45   :  { %1833 = vmatprep.subr.bf16.mxu0 %v2373_v11  ;;  %1699 = vmatprep.mubr.bf16.mxu1 %v1965_v35  ;;  %v2467_v11 = vld [vmem:[%s3519_s1 + $0x604] ss:$8 sps:$4 sm:$0xff]   ;;  %v2489_v35 = vld [vmem:[%s3519_s1 + $0x640] ss:$8 sps:$4 sm:$0xff]  }
  0x46   :  { %1863 = vmatprep.mubr.bf16.mxu0 %v1973_v38  ;;  %v2492_v38 = vld [vmem:[%s3519_s1 + $0x250] ss:$8 sps:$4 sm:$0xff]  }
  0x47   :  { %1670 = vmatpush1.bf16.msra.mxu1 %v2368_v12  ;;  %v1964_v12 = vcombine.low %v2961_v32, %v2961_v32  ;;  %v2488_v32 = vld [vmem:[%s3519_s1 + $0x244] ss:$8 sps:$4 sm:$0xff]  }
  0x48   :  { %1834 = vmatpush1.bf16.msra.mxu0 %v2371_v13  ;;  %1671 = vmatprep.subr.bf16.mxu1 %v2376_v14  ;;  %v2460_v13 = vld [vmem:[%s3519_s1 + $0x200] ss:$8 sps:$4 sm:$0xff]   ;;  %v1972_v14 = vcombine.low %v2974_v36, %v2974_v36  ;;  %v2494_v36 = vld [vmem:[%s3519_s1 + $0x254] ss:$8 sps:$4 sm:$0xff]  }
  0x49   :  { %1835 = vmatprep.subr.bf16.mxu0 %v2379_v15  ;;  %v2465_v15 = vld [vmem:[%s3519_s1 + $0x600] ss:$8 sps:$4 sm:$0xff]  }
  0x4b   :  { %1672 = vmatpush1.bf16.msra.mxu1 %v2374_v16  ;;  %v2470_v16 = vld [vmem:[%s3519_s1 + $0x214] ss:$8 sps:$4 sm:$0xff]  }
  0x4c   :  { %1836 = vmatpush1.bf16.msra.mxu0 %v2377_v17  ;;  %1673 = vmatprep.subr.bf16.mxu1 %v2382_v18  ;;  %v2473_v17 = vld [vmem:[%s3519_s1 + $0x614] ss:$8 sps:$4 sm:$0xff]  }
  0x4d   :  { %1837 = vmatprep.subr.bf16.mxu0 %v2385_v19  ;;  %v3111_v18 = vld [vmem:[%s3520_s0 + $0x10] sm:$0xff] }
  0x4e   :  { %v1967_v19 = vcombine.high %v3111_v18, %v3111_v18 }
  0x4f   :  { %1674 = vmatpush1.bf16.msra.mxu1 %v2380_v20  ;;  %v3118_v20 = vld [vmem:[%s3520_s0 + $0x30] sm:$0xff] }
  0x50   :  { %1838 = vmatpush1.bf16.msra.mxu0 %v2383_v21  ;;  %1675 = vmatprep.subr.bf16.mxu1 %v2388_v22  ;;  %v2468_v21 = vld [vmem:[%s3519_s1 + $0x210] ss:$8 sps:$4 sm:$0xff]  }
  0x51   :  { %1839 = vmatprep.subr.bf16.mxu0 %v2391_v23  ;;  %v2471_v22 = vld [vmem:[%s3519_s1 + $0x610] ss:$8 sps:$4 sm:$0xff]   ;;  %v1975_v23 = vcombine.high %v3118_v20, %v3118_v20 }
  0x53   :  { %1676 = vmatpush1.bf16.msra.mxu1 %v2386_v24  ;;  %v2476_v24 = vld [vmem:[%s3519_s1 + $0x224] ss:$8 sps:$4 sm:$0xff]  }
  0x54   :  { %1840 = vmatpush1.bf16.msra.mxu0 %v2389_v25  ;;  %1677 = vmatprep.subr.bf16.mxu1 %v2394_v26  ;;  %v2479_v25 = vld [vmem:[%s3519_s1 + $0x624] ss:$8 sps:$4 sm:$0xff]   ;;  %v2474_v26 = vld [vmem:[%s3519_s1 + $0x220] ss:$8 sps:$4 sm:$0xff]  }
  0x55   :  { %1841 = vmatprep.subr.bf16.mxu0 %v2397_v27  ;;  %v2477_v27 = vld [vmem:[%s3519_s1 + $0x620] ss:$8 sps:$4 sm:$0xff]  }
  0x57   :  { %1678 = vmatpush1.bf16.msra.mxu1 %v2392_v28  ;;  %v2482_v28 = vld [vmem:[%s3519_s1 + $0x234] ss:$8 sps:$4 sm:$0xff]  }
  0x58   :  { %1842 = vmatpush1.bf16.msra.mxu0 %v2395_v29  ;;  %1679 = vmatprep.subr.bf16.mxu1 %v2400_v30  ;;  %v2485_v29 = vld [vmem:[%s3519_s1 + $0x634] ss:$8 sps:$4 sm:$0xff]   ;;  %v2480_v30 = vld [vmem:[%s3519_s1 + $0x230] ss:$8 sps:$4 sm:$0xff]  }
  0x59   :  { %1843 = vmatprep.subr.bf16.mxu0 %v2403_v31  ;;  %v2483_v31 = vld [vmem:[%s3519_s1 + $0x630] ss:$8 sps:$4 sm:$0xff]  }
  0x5b   :  { %1680 = vmatpush1.bf16.msra.mxu1 %v2398_v33  ;;  %v2491_v33 = vld [vmem:[%s3519_s1 + $0x644] ss:$8 sps:$4 sm:$0xff]  }
  0x5c   :  { %1844 = vmatpush1.bf16.msra.mxu0 %v2401_v34  ;;  %1681 = vmatprep.subr.bf16.mxu1 %v2406_v37  ;;  %v2486_v34 = vld [vmem:[%s3519_s1 + $0x240] ss:$8 sps:$4 sm:$0xff]   ;;  %v2497_v37 = vld [vmem:[%s3519_s1 + $0x654] ss:$8 sps:$4 sm:$0xff]  }
  0x5d   :  { %1845 = vmatprep.subr.bf16.mxu0 %v2409_v39  ;;  %v2495_v39 = vld [vmem:[%s3519_s1 + $0x650] ss:$8 sps:$4 sm:$0xff]  }
  0x5f   :  { %1682 = vmatpush1.bf16.msra.mxu1 %v2404_v40  ;;  %v2500_v40 = vld [vmem:[%s3519_s1 + $0x264] ss:$8 sps:$4 sm:$0xff]  }
  0x60   :  { %1846 = vmatpush1.bf16.msra.mxu0 %v2407_v41  ;;  %1683 = vmatprep.subr.bf16.mxu1 %v2412_v42  ;;  %v2503_v41 = vld [vmem:[%s3519_s1 + $0x664] ss:$8 sps:$4 sm:$0xff]   ;;  %v2498_v42 = vld [vmem:[%s3519_s1 + $0x260] ss:$8 sps:$4 sm:$0xff]  }
  0x61   :  { %1847 = vmatprep.subr.bf16.mxu0 %v2415_v43  ;;  %v2501_v43 = vld [vmem:[%s3519_s1 + $0x660] ss:$8 sps:$4 sm:$0xff]  }
  0x63   :  { %1684 = vmatpush1.bf16.msra.mxu1 %v2410_v44  ;;  %v2506_v44 = vld [vmem:[%s3519_s1 + $0x274] ss:$8 sps:$4 sm:$0xff]  }
  0x64   :  { %1848 = vmatpush1.bf16.msra.mxu0 %v2413_v45  ;;  %1685 = vmatprep.subr.bf16.mxu1 %v2418_v46  ;;  %v2509_v45 = vld [vmem:[%s3519_s1 + $0x674] ss:$8 sps:$4 sm:$0xff]   ;;  %v2504_v46 = vld [vmem:[%s3519_s1 + $0x270] ss:$8 sps:$4 sm:$0xff]  }
  0x65   :  { %1849 = vmatprep.subr.bf16.mxu0 %v2421_v47  ;;  %v2507_v47 = vld [vmem:[%s3519_s1 + $0x670] ss:$8 sps:$4 sm:$0xff]  }
  0x67   :  { %1686 = vmatpush1.bf16.msra.mxu1 %v2416_v48  ;;  %v2512_v48 = vld [vmem:[%s3519_s1 + $0x284] ss:$8 sps:$4 sm:$0xff]  }
  0x68   :  { %1850 = vmatpush1.bf16.msra.mxu0 %v2419_v49  ;;  %1687 = vmatprep.subr.bf16.mxu1 %v2424_v50  ;;  %v2515_v49 = vld [vmem:[%s3519_s1 + $0x684] ss:$8 sps:$4 sm:$0xff]   ;;  %v2510_v50 = vld [vmem:[%s3519_s1 + $0x280] ss:$8 sps:$4 sm:$0xff]  }
  0x69   :  { %1851 = vmatprep.subr.bf16.mxu0 %v2427_v51  ;;  %v2513_v51 = vld [vmem:[%s3519_s1 + $0x680] ss:$8 sps:$4 sm:$0xff]  }
  0x6b   :  { %1688 = vmatpush1.bf16.msra.mxu1 %v2422_v52  ;;  %v2518_v52 = vld [vmem:[%s3519_s1 + $0x294] ss:$8 sps:$4 sm:$0xff]  }
  0x6c   :  { %1852 = vmatpush1.bf16.msra.mxu0 %v2425_v53  ;;  %1689 = vmatprep.subr.bf16.mxu1 %v2430_v54  ;;  %v2521_v53 = vld [vmem:[%s3519_s1 + $0x694] ss:$8 sps:$4 sm:$0xff]   ;;  %v2516_v54 = vld [vmem:[%s3519_s1 + $0x290] ss:$8 sps:$4 sm:$0xff]  }
  0x6d   :  { %1853 = vmatprep.subr.bf16.mxu0 %v2433_v55  ;;  %v2519_v55 = vld [vmem:[%s3519_s1 + $0x690] ss:$8 sps:$4 sm:$0xff]  }
  0x6f   :  { %1690 = vmatpush1.bf16.msra.mxu1 %v2428_v56  ;;  %v2524_v56 = vld [vmem:[%s3519_s1 + $0x2a4] ss:$8 sps:$4 sm:$0xff]  }
  0x70   :  { %1854 = vmatpush1.bf16.msra.mxu0 %v2431_v57  ;;  %1691 = vmatprep.subr.bf16.mxu1 %v2436_v58  ;;  %v2527_v57 = vld [vmem:[%s3519_s1 + $0x6a4] ss:$8 sps:$4 sm:$0xff]   ;;  %v2522_v58 = vld [vmem:[%s3519_s1 + $0x2a0] ss:$8 sps:$4 sm:$0xff]  }
  0x71   :  { %1855 = vmatprep.subr.bf16.mxu0 %v2439_v59  ;;  %v2525_v59 = vld [vmem:[%s3519_s1 + $0x6a0] ss:$8 sps:$4 sm:$0xff]  }
  0x73   :  { %1692 = vmatpush1.bf16.msra.mxu1 %v2434_v60  ;;  %v2530_v60 = vld [vmem:[%s3519_s1 + $0x2b4] ss:$8 sps:$4 sm:$0xff]  }
  0x74   :  { %1856 = vmatpush1.bf16.msra.mxu0 %v2437_v61  ;;  %1693 = vmatprep.subr.bf16.mxu1 %v2442_v62  ;;  %v2533_v61 = vld [vmem:[%s3519_s1 + $0x6b4] ss:$8 sps:$4 sm:$0xff]   ;;  %v2528_v62 = vld [vmem:[%s3519_s1 + $0x2b0] ss:$8 sps:$4 sm:$0xff]  }
  0x75   :  { %1857 = vmatprep.subr.bf16.mxu0 %v2445_v63  ;;  %v2531_v63 = vld [vmem:[%s3519_s1 + $0x6b0] ss:$8 sps:$4 sm:$0xff]  }
  0x77   :  { %1694 = vmatpush1.bf16.msra.mxu1 %v2440_v0  ;;  %v2536_v0 = vld [vmem:[%s3519_s1 + $0x2c4] ss:$8 sps:$4 sm:$0xff]  }
  0x78   :  { %1858 = vmatpush1.bf16.msra.mxu0 %v2443_v1  ;;  %1695 = vmatprep.subr.bf16.mxu1 %v2448_v2  ;;  %v2539_v1 = vld [vmem:[%s3519_s1 + $0x6c4] ss:$8 sps:$4 sm:$0xff]   ;;  %v2534_v2 = vld [vmem:[%s3519_s1 + $0x2c0] ss:$8 sps:$4 sm:$0xff]  }
  0x79   :  { %1859 = vmatprep.subr.bf16.mxu0 %v2451_v3  ;;  %v2537_v3 = vld [vmem:[%s3519_s1 + $0x6c0] ss:$8 sps:$4 sm:$0xff]  }
  0x7b   :  { %1696 = vmatpush1.bf16.msra.mxu1 %v2446_v4  ;;  %v2542_v4 = vld [vmem:[%s3519_s1 + $0x2d4] ss:$8 sps:$4 sm:$0xff]  }
  0x7c   :  { %1860 = vmatpush1.bf16.msra.mxu0 %v2449_v5  ;;  %1697 = vmatprep.subr.bf16.mxu1 %v2454_v6  ;;  %v2545_v5 = vld [vmem:[%s3519_s1 + $0x6d4] ss:$8 sps:$4 sm:$0xff]   ;;  %v2540_v6 = vld [vmem:[%s3519_s1 + $0x2d0] ss:$8 sps:$4 sm:$0xff]  }
  0x7d   :  { %1861 = vmatprep.subr.bf16.mxu0 %v2457_v7  ;;  %v2543_v7 = vld [vmem:[%s3519_s1 + $0x6d0] ss:$8 sps:$4 sm:$0xff]  }
  0x7f   :  { %1698 = vmatpush1.bf16.msra.mxu1 %v2452_v8  ;;  %v2548_v8 = vld [vmem:[%s3519_s1 + $0x2e4] ss:$8 sps:$4 sm:$0xff]  }
  0x80   :  { %1862 = vmatpush1.bf16.msra.mxu0 %v2455_v9  ;;  %1708 = vmatprep.subr.bf16.mxu1 %v2462_v10  ;;  %v2551_v9 = vld [vmem:[%s3519_s1 + $0x6e4] ss:$8 sps:$4 sm:$0xff]   ;;  %v2546_v10 = vld [vmem:[%s3519_s1 + $0x2e0] ss:$8 sps:$4 sm:$0xff]  }
  0x81   :  { %1872 = vmatprep.subr.bf16.mxu0 %v2467_v11  ;;  %v2549_v11 = vld [vmem:[%s3519_s1 + $0x6e0] ss:$8 sps:$4 sm:$0xff]  }
  0x82   :  { %1700 = vmatmul.mubr.bf16.vlgmr.msra.gmra.mrb[0].mxu1 %v1964_v12  ;;  %v2554_v12 = vld [vmem:[%s3519_s1 + $0x2f4] ss:$8 sps:$4 sm:$0xff]  }
  0x83   :  { %1864 = vmatmul.mubr.bf16.vlgmr.msra.gmra.mrb[0].mxu0 %v1972_v14  ;;  %1709 = vmatpush1.bf16.msra.mxu1 %v2460_v13  ;;  %v2557_v13 = vld [vmem:[%s3519_s1 + $0x6f4] ss:$8 sps:$4 sm:$0xff]   ;;  %v2552_v14 = vld [vmem:[%s3519_s1 + $0x2f0] ss:$8 sps:$4 sm:$0xff]  }
  0x84   :  { %1873 = vmatpush1.bf16.msra.mxu0 %v2465_v15  ;;  %1710 = vmatprep.subr.bf16.mxu1 %v2470_v16  ;;  %v2555_v15 = vld [vmem:[%s3519_s1 + $0x6f0] ss:$8 sps:$4 sm:$0xff]   ;;  %v2562_v16 = vld [vmem:[%s3519_s1 + $0x304] ss:$8 sps:$4 sm:$0xff]  }
  0x85   :  { %1874 = vmatprep.subr.bf16.mxu0 %v2473_v17  ;;  %1740 = vmatprep.mubr.bf16.mxu1 %v1967_v19  ;;  %v2567_v17 = vld [vmem:[%s3519_s1 + $0x704] ss:$8 sps:$4 sm:$0xff]   ;;  %v1966_v19 = vcombine.low %v3111_v18, %v3111_v18  ;;  %v2565_v18 = vld [vmem:[%s3519_s1 + $0x700] ss:$8 sps:$4 sm:$0xff]  }
  0x86   :  { %1904 = vmatprep.mubr.bf16.mxu0 %v1975_v23  ;;  %v3314_v23 = vld [vmem:[%s3520_s0 + $0x38] sm:$0xff] }
  0x87   :  { %1711 = vmatpush1.bf16.msra.mxu1 %v2468_v21  ;;  %v1974_v21 = vcombine.low %v3118_v20, %v3118_v20  ;;  %v2570_v20 = vld [vmem:[%s3519_s1 + $0x314] ss:$8 sps:$4 sm:$0xff]  }
  0x88   :  { %1875 = vmatpush1.bf16.msra.mxu0 %v2471_v22  ;;  %1712 = vmatprep.subr.bf16.mxu1 %v2476_v24  ;;  %v3309_v22 = vld [vmem:[%s3520_s0 + $0x18] sm:$0xff]  ;;  %v2560_v24 = vld [vmem:[%s3519_s1 + $0x300] ss:$8 sps:$4 sm:$0xff]  }
  0x89   :  { %1876 = vmatprep.subr.bf16.mxu0 %v2479_v25  ;;  %v2573_v25 = vld [vmem:[%s3519_s1 + $0x714] ss:$8 sps:$4 sm:$0xff]  }
  0x8b   :  { %1713 = vmatpush1.bf16.msra.mxu1 %v2474_v26  ;;  %v1969_v26 = vcombine.high %v3309_v22, %v3309_v22 }
  0x8c   :  { %1877 = vmatpush1.bf16.msra.mxu0 %v2477_v27  ;;  %1714 = vmatprep.subr.bf16.mxu1 %v2482_v28  ;;  %v1977_v27 = vcombine.high %v3314_v23, %v3314_v23  ;;  %v2568_v28 = vld [vmem:[%s3519_s1 + $0x310] ss:$8 sps:$4 sm:$0xff]  }
  0x8d   :  { %1878 = vmatprep.subr.bf16.mxu0 %v2485_v29  ;;  %v2571_v29 = vld [vmem:[%s3519_s1 + $0x710] ss:$8 sps:$4 sm:$0xff]  }
  0x8f   :  { %1715 = vmatpush1.bf16.msra.mxu1 %v2480_v30  ;;  %v2576_v30 = vld [vmem:[%s3519_s1 + $0x324] ss:$8 sps:$4 sm:$0xff]  }
  0x90   :  { %1879 = vmatpush1.bf16.msra.mxu0 %v2483_v31  ;;  %1716 = vmatprep.subr.bf16.mxu1 %v2488_v32  ;;  %v2579_v31 = vld [vmem:[%s3519_s1 + $0x724] ss:$8 sps:$4 sm:$0xff]   ;;  %v2574_v32 = vld [vmem:[%s3519_s1 + $0x320] ss:$8 sps:$4 sm:$0xff]  }
  0x91   :  { %1880 = vmatprep.subr.bf16.mxu0 %v2491_v33  ;;  %v2577_v33 = vld [vmem:[%s3519_s1 + $0x720] ss:$8 sps:$4 sm:$0xff]  }
  0x93   :  { %1717 = vmatpush1.bf16.msra.mxu1 %v2486_v34  ;;  %v2582_v34 = vld [vmem:[%s3519_s1 + $0x334] ss:$8 sps:$4 sm:$0xff]  }
  0x94   :  { %1881 = vmatpush1.bf16.msra.mxu0 %v2489_v35  ;;  %1718 = vmatprep.subr.bf16.mxu1 %v2494_v36  ;;  %v2585_v35 = vld [vmem:[%s3519_s1 + $0x734] ss:$8 sps:$4 sm:$0xff]   ;;  %v2580_v36 = vld [vmem:[%s3519_s1 + $0x330] ss:$8 sps:$4 sm:$0xff]  }
  0x95   :  { %1882 = vmatprep.subr.bf16.mxu0 %v2497_v37  ;;  %v2583_v37 = vld [vmem:[%s3519_s1 + $0x730] ss:$8 sps:$4 sm:$0xff]  }
  0x97   :  { %1719 = vmatpush1.bf16.msra.mxu1 %v2492_v38  ;;  %v2588_v38 = vld [vmem:[%s3519_s1 + $0x344] ss:$8 sps:$4 sm:$0xff]  }
  0x98   :  { %1883 = vmatpush1.bf16.msra.mxu0 %v2495_v39  ;;  %1720 = vmatprep.subr.bf16.mxu1 %v2500_v40  ;;  %v2591_v39 = vld [vmem:[%s3519_s1 + $0x744] ss:$8 sps:$4 sm:$0xff]   ;;  %v2586_v40 = vld [vmem:[%s3519_s1 + $0x340] ss:$8 sps:$4 sm:$0xff]  }
  0x99   :  { %1884 = vmatprep.subr.bf16.mxu0 %v2503_v41  ;;  %v2589_v41 = vld [vmem:[%s3519_s1 + $0x740] ss:$8 sps:$4 sm:$0xff]  }
  0x9b   :  { %1721 = vmatpush1.bf16.msra.mxu1 %v2498_v42  ;;  %v2594_v42 = vld [vmem:[%s3519_s1 + $0x354] ss:$8 sps:$4 sm:$0xff]  }
  0x9c   :  { %1885 = vmatpush1.bf16.msra.mxu0 %v2501_v43  ;;  %1722 = vmatprep.subr.bf16.mxu1 %v2506_v44  ;;  %v2597_v43 = vld [vmem:[%s3519_s1 + $0x754] ss:$8 sps:$4 sm:$0xff]   ;;  %v2592_v44 = vld [vmem:[%s3519_s1 + $0x350] ss:$8 sps:$4 sm:$0xff]  }
  0x9d   :  { %1886 = vmatprep.subr.bf16.mxu0 %v2509_v45  ;;  %v2595_v45 = vld [vmem:[%s3519_s1 + $0x750] ss:$8 sps:$4 sm:$0xff]  }
  0x9f   :  { %1723 = vmatpush1.bf16.msra.mxu1 %v2504_v46  ;;  %v2600_v46 = vld [vmem:[%s3519_s1 + $0x364] ss:$8 sps:$4 sm:$0xff]  }
  0xa0   :  { %1887 = vmatpush1.bf16.msra.mxu0 %v2507_v47  ;;  %1724 = vmatprep.subr.bf16.mxu1 %v2512_v48  ;;  %v2603_v47 = vld [vmem:[%s3519_s1 + $0x764] ss:$8 sps:$4 sm:$0xff]   ;;  %v2598_v48 = vld [vmem:[%s3519_s1 + $0x360] ss:$8 sps:$4 sm:$0xff]  }
  0xa1   :  { %1888 = vmatprep.subr.bf16.mxu0 %v2515_v49  ;;  %v2601_v49 = vld [vmem:[%s3519_s1 + $0x760] ss:$8 sps:$4 sm:$0xff]  }
  0xa3   :  { %1725 = vmatpush1.bf16.msra.mxu1 %v2510_v50  ;;  %v2606_v50 = vld [vmem:[%s3519_s1 + $0x374] ss:$8 sps:$4 sm:$0xff]  }
  0xa4   :  { %1889 = vmatpush1.bf16.msra.mxu0 %v2513_v51  ;;  %1726 = vmatprep.subr.bf16.mxu1 %v2518_v52  ;;  %v2609_v51 = vld [vmem:[%s3519_s1 + $0x774] ss:$8 sps:$4 sm:$0xff]   ;;  %v2604_v52 = vld [vmem:[%s3519_s1 + $0x370] ss:$8 sps:$4 sm:$0xff]  }
  0xa5   :  { %1890 = vmatprep.subr.bf16.mxu0 %v2521_v53  ;;  %v2607_v53 = vld [vmem:[%s3519_s1 + $0x770] ss:$8 sps:$4 sm:$0xff]  }
  0xa7   :  { %1727 = vmatpush1.bf16.msra.mxu1 %v2516_v54  ;;  %v2612_v54 = vld [vmem:[%s3519_s1 + $0x384] ss:$8 sps:$4 sm:$0xff]  }
  0xa8   :  { %1891 = vmatpush1.bf16.msra.mxu0 %v2519_v55  ;;  %1728 = vmatprep.subr.bf16.mxu1 %v2524_v56  ;;  %v2615_v55 = vld [vmem:[%s3519_s1 + $0x784] ss:$8 sps:$4 sm:$0xff]   ;;  %v2610_v56 = vld [vmem:[%s3519_s1 + $0x380] ss:$8 sps:$4 sm:$0xff]  }
  0xa9   :  { %1892 = vmatprep.subr.bf16.mxu0 %v2527_v57  ;;  %v2613_v57 = vld [vmem:[%s3519_s1 + $0x780] ss:$8 sps:$4 sm:$0xff]  }
  0xab   :  { %1729 = vmatpush1.bf16.msra.mxu1 %v2522_v58  ;;  %v2618_v58 = vld [vmem:[%s3519_s1 + $0x394] ss:$8 sps:$4 sm:$0xff]  }
  0xac   :  { %1893 = vmatpush1.bf16.msra.mxu0 %v2525_v59  ;;  %1730 = vmatprep.subr.bf16.mxu1 %v2530_v60  ;;  %v2621_v59 = vld [vmem:[%s3519_s1 + $0x794] ss:$8 sps:$4 sm:$0xff]   ;;  %v2616_v60 = vld [vmem:[%s3519_s1 + $0x390] ss:$8 sps:$4 sm:$0xff]  }
  0xad   :  { %1894 = vmatprep.subr.bf16.mxu0 %v2533_v61  ;;  %v2619_v61 = vld [vmem:[%s3519_s1 + $0x790] ss:$8 sps:$4 sm:$0xff]  }
  0xaf   :  { %1731 = vmatpush1.bf16.msra.mxu1 %v2528_v62  ;;  %v2624_v62 = vld [vmem:[%s3519_s1 + $0x3a4] ss:$8 sps:$4 sm:$0xff]  }
  0xb0   :  { %1895 = vmatpush1.bf16.msra.mxu0 %v2531_v63  ;;  %1732 = vmatprep.subr.bf16.mxu1 %v2536_v0  ;;  %v2627_v63 = vld [vmem:[%s3519_s1 + $0x7a4] ss:$8 sps:$4 sm:$0xff]   ;;  %v2622_v0 = vld [vmem:[%s3519_s1 + $0x3a0] ss:$8 sps:$4 sm:$0xff]  }
  0xb1   :  { %1896 = vmatprep.subr.bf16.mxu0 %v2539_v1  ;;  %v2625_v1 = vld [vmem:[%s3519_s1 + $0x7a0] ss:$8 sps:$4 sm:$0xff]  }
  0xb3   :  { %1733 = vmatpush1.bf16.msra.mxu1 %v2534_v2  ;;  %v2630_v2 = vld [vmem:[%s3519_s1 + $0x3b4] ss:$8 sps:$4 sm:$0xff]  }
  0xb4   :  { %1897 = vmatpush1.bf16.msra.mxu0 %v2537_v3  ;;  %1734 = vmatprep.subr.bf16.mxu1 %v2542_v4  ;;  %v2633_v3 = vld [vmem:[%s3519_s1 + $0x7b4] ss:$8 sps:$4 sm:$0xff]   ;;  %v2628_v4 = vld [vmem:[%s3519_s1 + $0x3b0] ss:$8 sps:$4 sm:$0xff]  }
  0xb5   :  { %1898 = vmatprep.subr.bf16.mxu0 %v2545_v5  ;;  %v2631_v5 = vld [vmem:[%s3519_s1 + $0x7b0] ss:$8 sps:$4 sm:$0xff]  }
  0xb7   :  { %1735 = vmatpush1.bf16.msra.mxu1 %v2540_v6  ;;  %v2636_v6 = vld [vmem:[%s3519_s1 + $0x3c4] ss:$8 sps:$4 sm:$0xff]  }
  0xb8   :  { %1899 = vmatpush1.bf16.msra.mxu0 %v2543_v7  ;;  %1736 = vmatprep.subr.bf16.mxu1 %v2548_v8  ;;  %v2639_v7 = vld [vmem:[%s3519_s1 + $0x7c4] ss:$8 sps:$4 sm:$0xff]   ;;  %v2634_v8 = vld [vmem:[%s3519_s1 + $0x3c0] ss:$8 sps:$4 sm:$0xff]  }
  0xb9   :  { %1900 = vmatprep.subr.bf16.mxu0 %v2551_v9  ;;  %v2637_v9 = vld [vmem:[%s3519_s1 + $0x7c0] ss:$8 sps:$4 sm:$0xff]  }
  0xbb   :  { %1737 = vmatpush1.bf16.msra.mxu1 %v2546_v10  ;;  %v2642_v10 = vld [vmem:[%s3519_s1 + $0x3d4] ss:$8 sps:$4 sm:$0xff]  }
  0xbc   :  { %1901 = vmatpush1.bf16.msra.mxu0 %v2549_v11  ;;  %1738 = vmatprep.subr.bf16.mxu1 %v2554_v12  ;;  %v2645_v11 = vld [vmem:[%s3519_s1 + $0x7d4] ss:$8 sps:$4 sm:$0xff]   ;;  %v2640_v12 = vld [vmem:[%s3519_s1 + $0x3d0] ss:$8 sps:$4 sm:$0xff]  }
  0xbd   :  { %1902 = vmatprep.subr.bf16.mxu0 %v2557_v13  ;;  %v2643_v13 = vld [vmem:[%s3519_s1 + $0x7d0] ss:$8 sps:$4 sm:$0xff]  }
  0xbf   :  { %1739 = vmatpush1.bf16.msra.mxu1 %v2552_v14  ;;  %v2648_v14 = vld [vmem:[%s3519_s1 + $0x3e4] ss:$8 sps:$4 sm:$0xff]  }
  0xc0   :  { %1903 = vmatpush1.bf16.msra.mxu0 %v2555_v15  ;;  %1749 = vmatprep.subr.bf16.mxu1 %v2562_v16  ;;  %v2651_v15 = vld [vmem:[%s3519_s1 + $0x7e4] ss:$8 sps:$4 sm:$0xff]   ;;  %v2646_v16 = vld [vmem:[%s3519_s1 + $0x3e0] ss:$8 sps:$4 sm:$0xff]  }
  0xc1   :  { %1913 = vmatprep.subr.bf16.mxu0 %v2567_v17  ;;  %v2649_v17 = vld [vmem:[%s3519_s1 + $0x7e0] ss:$8 sps:$4 sm:$0xff]  }
  0xc2   :  { %1741 = vmatmul.mubr.bf16.vlgmr.msra.gmra.mrb[0].mxu1 %v1966_v19  ;;  %v2654_v19 = vld [vmem:[%s3519_s1 + $0x3f4] ss:$8 sps:$4 sm:$0xff]  }
  0xc3   :  { %1905 = vmatmul.mubr.bf16.vlgmr.msra.gmra.mrb[0].mxu0 %v1974_v21  ;;  %1750 = vmatpush1.bf16.msra.mxu1 %v2560_v24  ;;  %v2657_v21 = vld [vmem:[%s3519_s1 + $0x7f4] ss:$8 sps:$4 sm:$0xff]   ;;  %v2652_v24 = vld [vmem:[%s3519_s1 + $0x3f0] ss:$8 sps:$4 sm:$0xff]  }
  0xc4   :  { %1914 = vmatpush1.bf16.msra.mxu0 %v2565_v18  ;;  %1751 = vmatprep.subr.bf16.mxu1 %v2570_v20  ;;  %v2655_v18 = vld [vmem:[%s3519_s1 + $0x7f0] ss:$8 sps:$4 sm:$0xff]   ;;  %v1968_v20 = vcombine.low %v3309_v22, %v3309_v22 }
  0xc5   :  { %1915 = vmatprep.subr.bf16.mxu0 %v2573_v25  ;;  %1781 = vmatprep.mubr.bf16.mxu1 %v1969_v26  ;;  %v1976_v25 = vcombine.low %v3314_v23, %v3314_v23  ;;  %v280_v26 = vlaneseq }
  0xc6   :  { %1945 = vmatprep.mubr.bf16.mxu0 %v1977_v27 }
  0xc7   :  { %1752 = vmatpush1.bf16.msra.mxu1 %v2568_v28  ;;  %v281_v27 = vshrl.u32 %v280_v26, 7 }
  0xc8   :  { %1916 = vmatpush1.bf16.msra.mxu0 %v2571_v29  ;;  %1753 = vmatprep.subr.bf16.mxu1 %v2576_v30  ;;  %v278_v29 = vld [vmem:[%s3521_s2] sm:$0x3] }
  0xc9   :  { %1917 = vmatprep.subr.bf16.mxu0 %v2579_v31  ;;  %v282_v28 = vsub.s32 0, %v281_v27  ;;  %v286_v30 = vsub.s32 1, %v281_v27 }
  0xcb   :  { %1754 = vmatpush1.bf16.msra.mxu1 %v2574_v32  ;;  %v283_v31 = vrot.slane %v278_v29, %v282_v28  ;;  %v287_v32 = vrot.slane %v278_v29, %v286_v30 }
  0xcc   :  { %1918 = vmatpush1.bf16.msra.mxu0 %v2577_v33  ;;  %1755 = vmatprep.subr.bf16.mxu1 %v2582_v34 }
  0xcd   :  { %1919 = vmatprep.subr.bf16.mxu0 %v2585_v35 }
  0xcf   :  { %1756 = vmatpush1.bf16.msra.mxu1 %v2580_v36 }
  0xd0   :  { %1920 = vmatpush1.bf16.msra.mxu0 %v2583_v37  ;;  %1757 = vmatprep.subr.bf16.mxu1 %v2588_v38 }
  0xd1   :  { %1921 = vmatprep.subr.bf16.mxu0 %v2591_v39 }
  0xd3   :  { %1758 = vmatpush1.bf16.msra.mxu1 %v2586_v40 }
  0xd4   :  { %1922 = vmatpush1.bf16.msra.mxu0 %v2589_v41  ;;  %1759 = vmatprep.subr.bf16.mxu1 %v2594_v42 }
  0xd5   :  { %1923 = vmatprep.subr.bf16.mxu0 %v2597_v43 }
  0xd7   :  { %1760 = vmatpush1.bf16.msra.mxu1 %v2592_v44 }
  0xd8   :  { %1924 = vmatpush1.bf16.msra.mxu0 %v2595_v45  ;;  %1761 = vmatprep.subr.bf16.mxu1 %v2600_v46 }
  0xd9   :  { %1925 = vmatprep.subr.bf16.mxu0 %v2603_v47 }
  0xdb   :  { %1762 = vmatpush1.bf16.msra.mxu1 %v2598_v48 }
  0xdc   :  { %1926 = vmatpush1.bf16.msra.mxu0 %v2601_v49  ;;  %1763 = vmatprep.subr.bf16.mxu1 %v2606_v50 }
  0xdd   :  { %1927 = vmatprep.subr.bf16.mxu0 %v2609_v51 }
  0xdf   :  { %1764 = vmatpush1.bf16.msra.mxu1 %v2604_v52 }
  0xe0   :  { %1928 = vmatpush1.bf16.msra.mxu0 %v2607_v53  ;;  %1765 = vmatprep.subr.bf16.mxu1 %v2612_v54 }
  0xe1   :  { %1929 = vmatprep.subr.bf16.mxu0 %v2615_v55 }
  0xe3   :  { %1766 = vmatpush1.bf16.msra.mxu1 %v2610_v56 }
  0xe4   :  { %1930 = vmatpush1.bf16.msra.mxu0 %v2613_v57  ;;  %1767 = vmatprep.subr.bf16.mxu1 %v2618_v58 }
  0xe5   :  { %1931 = vmatprep.subr.bf16.mxu0 %v2621_v59 }
  0xe7   :  { %1768 = vmatpush1.bf16.msra.mxu1 %v2616_v60 }
  0xe8   :  { %1932 = vmatpush1.bf16.msra.mxu0 %v2619_v61  ;;  %1769 = vmatprep.subr.bf16.mxu1 %v2624_v62 }
  0xe9   :  { %1933 = vmatprep.subr.bf16.mxu0 %v2627_v63 }
  0xeb   :  { %1770 = vmatpush1.bf16.msra.mxu1 %v2622_v0 }
  0xec   :  { %1934 = vmatpush1.bf16.msra.mxu0 %v2625_v1  ;;  %1771 = vmatprep.subr.bf16.mxu1 %v2630_v2 }
  0xed   :  { %1935 = vmatprep.subr.bf16.mxu0 %v2633_v3 }
  0xef   :  { %1772 = vmatpush1.bf16.msra.mxu1 %v2628_v4 }
  0xf0   :  { %1936 = vmatpush1.bf16.msra.mxu0 %v2631_v5  ;;  %1773 = vmatprep.subr.bf16.mxu1 %v2636_v6 }
  0xf1   :  { %1937 = vmatprep.subr.bf16.mxu0 %v2639_v7 }
  0xf3   :  { %1774 = vmatpush1.bf16.msra.mxu1 %v2634_v8 }
  0xf4   :  { %1938 = vmatpush1.bf16.msra.mxu0 %v2637_v9  ;;  %1775 = vmatprep.subr.bf16.mxu1 %v2642_v10 }
  0xf5   :  { %1939 = vmatprep.subr.bf16.mxu0 %v2645_v11 }
  0xf7   :  { %1776 = vmatpush1.bf16.msra.mxu1 %v2640_v12 }
  0xf8   :  { %1940 = vmatpush1.bf16.msra.mxu0 %v2643_v13  ;;  %1777 = vmatprep.subr.bf16.mxu1 %v2648_v14 }
  0xf9   :  { %1941 = vmatprep.subr.bf16.mxu0 %v2651_v15 }
  0xfb   :  { %1778 = vmatpush1.bf16.msra.mxu1 %v2646_v16 }
  0xfc   :  { %1942 = vmatpush1.bf16.msra.mxu0 %v2649_v17  ;;  %1779 = vmatprep.subr.bf16.mxu1 %v2654_v19 }
  0xfd   :  { %1943 = vmatprep.subr.bf16.mxu0 %v2657_v21 }
  0xff   :  { %1780 = vmatpush1.bf16.msra.mxu1 %v2652_v24 }
 0x100   :  { %1944 = vmatpush1.bf16.msra.mxu0 %v2655_v18 }
 0x102   :  { %1782 = vmatmul.mubr.bf16.vlgmr.msra.gmra.mrb[0].mxu1 %v1968_v20 }
 0x103   :  { %1946 = vmatmul.mubr.bf16.vlgmr.msra.gmra.mrb[0].mxu0 %v1976_v25 }
 0x1d5   :  { %v1783_v33 = vpop.f32.mrb[0].mxu1 }
 0x1d6   :  { %v1947_v34 = vpop.f32.mrb[0].mxu0  ;;  %v2234_v22 = vadd.f32 %v1783_v33, %v283_v31  ;;  %v1785_v35 = vpop.f32.mrb[1].mxu1 }
 0x1d7   :  { %v1949_v36 = vpop.f32.mrb[1].mxu0  ;;  %v2236_v23 = vadd.f32 %v1785_v35, %v287_v32  ;;  %v1787_v37 = vpop.f32.mrb[2].mxu1 }
 0x1d8   :  { %v1951_v38 = vpop.f32.mrb[2].mxu0  ;;  %v2235_v39 = vadd.f32 %v2234_v22, %v1947_v34  ;;  %v1788_v40 = vpop.f32.mrb[3].mxu1 }
 0x1d9   :  { %v1952_v41 = vpop.f32.mrb[3].mxu0  ;;  %v2237_v42 = vadd.f32 %v2236_v23, %v1949_v36 }
 0x1da   :  { %v1954_v43 = vmax.f32 %v2235_v39, 0.0 }
 0x1db   :  { %v1955_v44 = vmax.f32 %v2237_v42, 0.0 }
 0x1dc   :  { %1956 = vst [vmem:[%s3522_s3] sm:$0xff] %v1954_v43 }
 0x1dd   :  { %1957 = vst [vmem:[%s3522_s3 + $0x8] sm:$0xff] %v1955_v44 }

</bundles_post_ra>
